<compile_context>
chip_gen: v7x
topology: tpu7x:2x2x1
jax: 0.10.0
libtpu: 0.0.40
codegen_flags: <defaults>
</compile_context>

<pallas_src>
import jax
import jax.numpy as jnp
from jax import lax
from jax.experimental import pallas as pl
from jax.experimental.pallas import tpu as pltpu

EPS = 1e-5

H_RAW = (2000, 1000, 200)   # PyTorch hidden widths
H_PAD = (2048, 1024, 256)   # lane-aligned padded widths


def _bn_relu(y, gamma, beta):
    # Training-mode BatchNorm1d over the full batch (biased variance), two-pass for
    # numerical robustness, folded into one scale/shift (2 VPU ops/elem) + ReLU.
    inv_n = 1.0 / y.shape[0]
    mean = jnp.sum(y, axis=0, keepdims=True) * inv_n
    d = y - mean
    var = jnp.sum(d * d, axis=0, keepdims=True) * inv_n
    scale = gamma * lax.rsqrt(var + EPS)
    shift = beta - mean * scale
    return jnp.maximum(y * scale + shift, 0.0)


def _fused_kernel(x_ref,
                  w1_ref, g1_ref, be1_ref,
                  w2_hbm_ref, g2_ref, be2_ref,
                  w3_ref, g3_ref, be3_ref,
                  w4_ref, b4_ref,
                  o_ref,
                  w2_vmem, w2_sem):
    # Stream the dominant weight (w2, ~4 MB bf16) from HBM while layer 1 runs.
    w2_copy = pltpu.make_async_copy(w2_hbm_ref, w2_vmem, w2_sem)
    w2_copy.start()

    # Layer 1: fc (bias dropped -- cancelled by BN mean subtraction) -> BN -> ReLU
    h = _bn_relu(
        jnp.dot(x_ref[...].astype(jnp.bfloat16), w1_ref[...],
                preferred_element_type=jnp.float32),
        g1_ref[...], be1_ref[...])

    # Layer 2 (uses the streamed w2)
    w2_copy.wait()
    h = _bn_relu(
        jnp.dot(h.astype(jnp.bfloat16), w2_vmem[...],
                preferred_element_type=jnp.float32),
        g2_ref[...], be2_ref[...])

    # Layer 3
    h = _bn_relu(
        jnp.dot(h.astype(jnp.bfloat16), w3_ref[...],
                preferred_element_type=jnp.float32),
        g3_ref[...], be3_ref[...])

    # Layer 4: plain fc (bias kept; no BN afterwards)
    y = jnp.dot(h.astype(jnp.bfloat16), w4_ref[...],
                preferred_element_type=jnp.float32) + b4_ref[...]
    o_ref[...] = y.astype(o_ref.dtype)


def _full_spec(shape):
    # Whole-array block (block_shape == full dims, so (8,128) divisibility not required).
    return pl.BlockSpec(shape, lambda: (0,) * len(shape))


def _pad2(a, rows, cols):
    return jnp.pad(a, ((0, rows - a.shape[0]), (0, cols - a.shape[1])))


def _pad_vec(v, n):
    return jnp.pad(v, (0, n - v.shape[0])).reshape(1, n)


def prepare_params(params, in_dim, out_dim):
    """Pad to lane-aligned widths, cast weights to bf16, drop BN-cancelled biases."""
    out_pad = max(128, pl.cdiv(out_dim, 128) * 128)
    fan_in = (in_dim,) + H_PAD          # fan-ins of layers 1..4
    fan_out = H_PAD + (out_pad,)        # padded fan-outs of layers 1..4
    pp = {}
    for i in range(4):
        pp[f"w{i+1}"] = _pad2(params[f"w{i+1}"], fan_in[i], fan_out[i]).astype(jnp.bfloat16)
    pp["b4"] = _pad_vec(params["b4"], out_pad)          # b1..b3 cancelled by BatchNorm
    for i in range(1, 4):
        pp[f"gamma{i}"] = _pad_vec(params[f"gamma{i}"], H_PAD[i - 1])
        pp[f"beta{i}"] = _pad_vec(params[f"beta{i}"], H_PAD[i - 1])
    return pp


def behavior_cloning_forward(pp, x, out_dim):
    n, in_dim = x.shape
    out_pad = pp["w4"].shape[1]
    h1, h2, h3 = H_PAD

    args = [
        x,
        pp["w1"], pp["gamma1"], pp["beta1"],
        pp["w2"], pp["gamma2"], pp["beta2"],
        pp["w3"], pp["gamma3"], pp["beta3"],
        pp["w4"], pp["b4"],
    ]
    W2_IDX = 4  # w2 stays in HBM and is streamed inside the kernel
    in_specs = [
        pl.BlockSpec(memory_space=pl.ANY) if i == W2_IDX else _full_spec(a.shape)
        for i, a in enumerate(args)
    ]

    flops = 2 * n * (in_dim * h1 + h1 * h2 + h2 * h3 + h3 * out_pad)
    bytes_accessed = sum(int(a.size) * a.dtype.itemsize for a in args) + n * out_pad * 4
    cost = pl.CostEstimate(flops=flops,
                           transcendentals=h1 + h2 + h3,    # one rsqrt per BN feature
                           bytes_accessed=bytes_accessed)

    out = pl.pallas_call(
        _fused_kernel,
        out_shape=jax.ShapeDtypeStruct((n, out_pad), jnp.float32),
        grid=(),
        in_specs=in_specs,
        out_specs=_full_spec((n, out_pad)),
        scratch_shapes=[pltpu.VMEM((h1, h2), jnp.bfloat16),   # w2 landing buffer
                        pltpu.SemaphoreType.DMA],
        cost_estimate=cost,
        compiler_params=pltpu.CompilerParams(vmem_limit_bytes=32 << 20),
    )(*args)
    return out[:, :out_dim]


def init_params(key, in_dim, out_dim):
    """Deterministic synthetic params matching nn.Linear / nn.BatchNorm1d shapes."""
    dims = [in_dim, *H_RAW, out_dim]
    params = {}
    for i in range(4):
        fan_in, fan_out = dims[i], dims[i + 1]
        key, kw, kb = jax.random.split(key, 3)
        bound = 1.0 / jnp.sqrt(fan_in)
        # PyTorch stores (out, in); we pre-transpose to (in, out) for the kernel.
        params[f"w{i+1}"] = jax.random.uniform(kw, (fan_in, fan_out), jnp.float32, -bound, bound)
        params[f"b{i+1}"] = jax.random.uniform(kb, (fan_out,), jnp.float32, -bound, bound)
    for i, c in enumerate(H_RAW, start=1):
        key, kg, kbt = jax.random.split(key, 3)
        params[f"gamma{i}"] = 1.0 + 0.1 * jax.random.normal(kg, (c,), jnp.float32)
        params[f"beta{i}"] = 0.1 * jax.random.normal(kbt, (c,), jnp.float32)
    return params


def _reference_forward(params, x):
    """Pure-JAX reference: same math as the PyTorch forward in train() mode, using the
    same bf16-weight / f32-accumulate matmul precision policy as the kernel (and the
    original b1..b3 biases retained -- BN cancels them, so results must still agree)."""
    h = x
    for i in range(1, 4):
        w = params[f"w{i}"].astype(jnp.bfloat16)
        y = jnp.dot(h.astype(jnp.bfloat16), w,
                    preferred_element_type=jnp.float32) + params[f"b{i}"]
        mean = jnp.mean(y, axis=0, keepdims=True)
        var = jnp.mean((y - mean) ** 2, axis=0, keepdims=True)
        y = (y - mean) / jnp.sqrt(var + EPS) * params[f"gamma{i}"] + params[f"beta{i}"]
        h = jnp.maximum(y, 0.0)
    w4 = params["w4"].astype(jnp.bfloat16)
    return jnp.dot(h.astype(jnp.bfloat16), w4,
                   preferred_element_type=jnp.float32) + params["b4"]


if __name__ == "__main__":
    in_dim, out_dim, batch = 32, 8, 8
    key = jax.random.PRNGKey(0)
    kp, kx = jax.random.split(key)
    params = init_params(kp, in_dim, out_dim)
    x = jax.random.normal(kx, (batch, in_dim), jnp.float32)

    pp = prepare_params(params, in_dim, out_dim)
    out = behavior_cloning_forward(pp, x, out_dim)
    out = jax.block_until_ready(out)

    ref = _reference_forward(params, x)
    assert out.shape == (batch, out_dim)
    assert bool(jnp.allclose(out, ref, atol=2e-3, rtol=2e-3)), float(jnp.max(jnp.abs(out - ref)))
    print("KERNEL_OK")
</pallas_src>

<mosaic_0001>
module attributes {stable_mosaic.version = 11 : i64} {
  func.func @_fused_kernel(%arg0: memref<8x32xf32, #tpu.memory_space<vmem>>, %arg1: memref<32x2048xbf16, #tpu.memory_space<vmem>>, %arg2: memref<1x2048xf32, #tpu.memory_space<vmem>>, %arg3: memref<1x2048xf32, #tpu.memory_space<vmem>>, %arg4: memref<2048x1024xbf16, #tpu.memory_space<any>>, %arg5: memref<1x1024xf32, #tpu.memory_space<vmem>>, %arg6: memref<1x1024xf32, #tpu.memory_space<vmem>>, %arg7: memref<1024x256xbf16, #tpu.memory_space<vmem>>, %arg8: memref<1x256xf32, #tpu.memory_space<vmem>>, %arg9: memref<1x256xf32, #tpu.memory_space<vmem>>, %arg10: memref<256x128xbf16, #tpu.memory_space<vmem>>, %arg11: memref<1x128xf32, #tpu.memory_space<vmem>>, %arg12: memref<8x128xf32, #tpu.memory_space<vmem>>, %arg13: memref<2048x1024xbf16, #tpu.memory_space<vmem>>, %arg14: memref<!tpu.dma_semaphore, #tpu.memory_space<semaphore_mem>>) attributes {dimension_semantics = [], scalar_prefetch = 0 : i64, scratch_operands = 2 : i64, tpu.core_type = #tpu.core_type<tc>} {
    tpu.enqueue_dma source(%arg4 : memref<2048x1024xbf16, #tpu.memory_space<any>>) target(%arg13 : memref<2048x1024xbf16, #tpu.memory_space<vmem>>) target_semaphore(%arg14 : memref<!tpu.dma_semaphore, #tpu.memory_space<semaphore_mem>>)
    %c0 = arith.constant 0 : index
    %c0_0 = arith.constant 0 : index
    %0 = vector.load %arg0[%c0, %c0_0] : memref<8x32xf32, #tpu.memory_space<vmem>>, vector<8x32xf32>
    %1 = arith.truncf %0 : vector<8x32xf32> to vector<8x32xbf16>
    %c0_1 = arith.constant 0 : index
    %c0_2 = arith.constant 0 : index
    %2 = vector.load %arg1[%c0_1, %c0_2] : memref<32x2048xbf16, #tpu.memory_space<vmem>>, vector<32x2048xbf16>
    %cst = arith.constant dense<0.000000e+00> : vector<8x2048xf32>
    %3 = tpu.matmul %1, %2, %cst {dimension_numbers = #tpu.dot_dimension_numbers<[1], [0], [0], [1], [0, 0, 1, 1], [], []>} : vector<8x32xbf16>, vector<32x2048xbf16>, vector<8x2048xf32> -> vector<8x2048xf32>
    %c0_3 = arith.constant 0 : index
    %c0_4 = arith.constant 0 : index
    %4 = vector.load %arg2[%c0_3, %c0_4] : memref<1x2048xf32, #tpu.memory_space<vmem>>, vector<1x2048xf32>
    %c0_5 = arith.constant 0 : index
    %c0_6 = arith.constant 0 : index
    %5 = vector.load %arg3[%c0_5, %c0_6] : memref<1x2048xf32, #tpu.memory_space<vmem>>, vector<1x2048xf32>
    %cst_7 = arith.constant dense<0.000000e+00> : vector<2048xf32>
    %6 = vector.multi_reduction <add>, %3, %cst_7 [0] : vector<8x2048xf32> to vector<2048xf32>
    %7 = vector.shape_cast %6 : vector<2048xf32> to vector<1x2048xf32>
    %cst_8 = arith.constant 1.250000e-01 : f32
    %8 = vector.broadcast %cst_8 : f32 to vector<1x2048xf32>
    %9 = arith.mulf %7, %8 : vector<1x2048xf32>
    %10 = vector.broadcast %9 : vector<1x2048xf32> to vector<8x2048xf32>
    %11 = arith.subf %3, %10 : vector<8x2048xf32>
    %12 = arith.mulf %11, %11 : vector<8x2048xf32>
    %cst_9 = arith.constant dense<0.000000e+00> : vector<2048xf32>
    %13 = vector.multi_reduction <add>, %12, %cst_9 [0] : vector<8x2048xf32> to vector<2048xf32>
    %14 = vector.shape_cast %13 : vector<2048xf32> to vector<1x2048xf32>
    %cst_10 = arith.constant 1.250000e-01 : f32
    %15 = vector.broadcast %cst_10 : f32 to vector<1x2048xf32>
    %16 = arith.mulf %14, %15 : vector<1x2048xf32>
    %cst_11 = arith.constant 9.99999974E-6 : f32
    %17 = vector.broadcast %cst_11 : f32 to vector<1x2048xf32>
    %18 = arith.addf %16, %17 : vector<1x2048xf32>
    %19 = math.rsqrt %18 : vector<1x2048xf32>
    %20 = arith.mulf %4, %19 : vector<1x2048xf32>
    %21 = arith.mulf %9, %20 : vector<1x2048xf32>
    %22 = arith.subf %5, %21 : vector<1x2048xf32>
    %23 = vector.broadcast %20 : vector<1x2048xf32> to vector<8x2048xf32>
    %24 = arith.mulf %3, %23 : vector<8x2048xf32>
    %25 = vector.broadcast %22 : vector<1x2048xf32> to vector<8x2048xf32>
    %26 = arith.addf %24, %25 : vector<8x2048xf32>
    %cst_12 = arith.constant 0.000000e+00 : f32
    %27 = vector.broadcast %cst_12 : f32 to vector<8x2048xf32>
    %28 = arith.maximumf %26, %27 : vector<8x2048xf32>
    tpu.wait_dma2 semaphore(%arg14 : memref<!tpu.dma_semaphore, #tpu.memory_space<semaphore_mem>>) src(%arg4 : memref<2048x1024xbf16, #tpu.memory_space<any>>) dst(%arg13 : memref<2048x1024xbf16, #tpu.memory_space<vmem>>)
    %29 = arith.truncf %28 : vector<8x2048xf32> to vector<8x2048xbf16>
    %c0_13 = arith.constant 0 : index
    %c0_14 = arith.constant 0 : index
    %30 = vector.load %arg13[%c0_13, %c0_14] : memref<2048x1024xbf16, #tpu.memory_space<vmem>>, vector<2048x1024xbf16>
    %cst_15 = arith.constant dense<0.000000e+00> : vector<8x1024xf32>
    %31 = tpu.matmul %29, %30, %cst_15 {dimension_numbers = #tpu.dot_dimension_numbers<[1], [0], [0], [1], [0, 0, 1, 1], [], []>} : vector<8x2048xbf16>, vector<2048x1024xbf16>, vector<8x1024xf32> -> vector<8x1024xf32>
    %c0_16 = arith.constant 0 : index
    %c0_17 = arith.constant 0 : index
    %32 = vector.load %arg5[%c0_16, %c0_17] : memref<1x1024xf32, #tpu.memory_space<vmem>>, vector<1x1024xf32>
    %c0_18 = arith.constant 0 : index
    %c0_19 = arith.constant 0 : index
    %33 = vector.load %arg6[%c0_18, %c0_19] : memref<1x1024xf32, #tpu.memory_space<vmem>>, vector<1x1024xf32>
    %cst_20 = arith.constant dense<0.000000e+00> : vector<1024xf32>
    %34 = vector.multi_reduction <add>, %31, %cst_20 [0] : vector<8x1024xf32> to vector<1024xf32>
    %35 = vector.shape_cast %34 : vector<1024xf32> to vector<1x1024xf32>
    %cst_21 = arith.constant 1.250000e-01 : f32
    %36 = vector.broadcast %cst_21 : f32 to vector<1x1024xf32>
    %37 = arith.mulf %35, %36 : vector<1x1024xf32>
    %38 = vector.broadcast %37 : vector<1x1024xf32> to vector<8x1024xf32>
    %39 = arith.subf %31, %38 : vector<8x1024xf32>
    %40 = arith.mulf %39, %39 : vector<8x1024xf32>
    %cst_22 = arith.constant dense<0.000000e+00> : vector<1024xf32>
    %41 = vector.multi_reduction <add>, %40, %cst_22 [0] : vector<8x1024xf32> to vector<1024xf32>
    %42 = vector.shape_cast %41 : vector<1024xf32> to vector<1x1024xf32>
    %cst_23 = arith.constant 1.250000e-01 : f32
    %43 = vector.broadcast %cst_23 : f32 to vector<1x1024xf32>
    %44 = arith.mulf %42, %43 : vector<1x1024xf32>
    %cst_24 = arith.constant 9.99999974E-6 : f32
    %45 = vector.broadcast %cst_24 : f32 to vector<1x1024xf32>
    %46 = arith.addf %44, %45 : vector<1x1024xf32>
    %47 = math.rsqrt %46 : vector<1x1024xf32>
    %48 = arith.mulf %32, %47 : vector<1x1024xf32>
    %49 = arith.mulf %37, %48 : vector<1x1024xf32>
    %50 = arith.subf %33, %49 : vector<1x1024xf32>
    %51 = vector.broadcast %48 : vector<1x1024xf32> to vector<8x1024xf32>
    %52 = arith.mulf %31, %51 : vector<8x1024xf32>
    %53 = vector.broadcast %50 : vector<1x1024xf32> to vector<8x1024xf32>
    %54 = arith.addf %52, %53 : vector<8x1024xf32>
    %cst_25 = arith.constant 0.000000e+00 : f32
    %55 = vector.broadcast %cst_25 : f32 to vector<8x1024xf32>
    %56 = arith.maximumf %54, %55 : vector<8x1024xf32>
    %57 = arith.truncf %56 : vector<8x1024xf32> to vector<8x1024xbf16>
    %c0_26 = arith.constant 0 : index
    %c0_27 = arith.constant 0 : index
    %58 = vector.load %arg7[%c0_26, %c0_27] : memref<1024x256xbf16, #tpu.memory_space<vmem>>, vector<1024x256xbf16>
    %cst_28 = arith.constant dense<0.000000e+00> : vector<8x256xf32>
    %59 = tpu.matmul %57, %58, %cst_28 {dimension_numbers = #tpu.dot_dimension_numbers<[1], [0], [0], [1], [0, 0, 1, 1], [], []>} : vector<8x1024xbf16>, vector<1024x256xbf16>, vector<8x256xf32> -> vector<8x256xf32>
    %c0_29 = arith.constant 0 : index
    %c0_30 = arith.constant 0 : index
    %60 = vector.load %arg8[%c0_29, %c0_30] : memref<1x256xf32, #tpu.memory_space<vmem>>, vector<1x256xf32>
    %c0_31 = arith.constant 0 : index
    %c0_32 = arith.constant 0 : index
    %61 = vector.load %arg9[%c0_31, %c0_32] : memref<1x256xf32, #tpu.memory_space<vmem>>, vector<1x256xf32>
    %cst_33 = arith.constant dense<0.000000e+00> : vector<256xf32>
    %62 = vector.multi_reduction <add>, %59, %cst_33 [0] : vector<8x256xf32> to vector<256xf32>
    %63 = vector.shape_cast %62 : vector<256xf32> to vector<1x256xf32>
    %cst_34 = arith.constant 1.250000e-01 : f32
    %64 = vector.broadcast %cst_34 : f32 to vector<1x256xf32>
    %65 = arith.mulf %63, %64 : vector<1x256xf32>
    %66 = vector.broadcast %65 : vector<1x256xf32> to vector<8x256xf32>
    %67 = arith.subf %59, %66 : vector<8x256xf32>
    %68 = arith.mulf %67, %67 : vector<8x256xf32>
    %cst_35 = arith.constant dense<0.000000e+00> : vector<256xf32>
    %69 = vector.multi_reduction <add>, %68, %cst_35 [0] : vector<8x256xf32> to vector<256xf32>
    %70 = vector.shape_cast %69 : vector<256xf32> to vector<1x256xf32>
    %cst_36 = arith.constant 1.250000e-01 : f32
    %71 = vector.broadcast %cst_36 : f32 to vector<1x256xf32>
    %72 = arith.mulf %70, %71 : vector<1x256xf32>
    %cst_37 = arith.constant 9.99999974E-6 : f32
    %73 = vector.broadcast %cst_37 : f32 to vector<1x256xf32>
    %74 = arith.addf %72, %73 : vector<1x256xf32>
    %75 = math.rsqrt %74 : vector<1x256xf32>
    %76 = arith.mulf %60, %75 : vector<1x256xf32>
    %77 = arith.mulf %65, %76 : vector<1x256xf32>
    %78 = arith.subf %61, %77 : vector<1x256xf32>
    %79 = vector.broadcast %76 : vector<1x256xf32> to vector<8x256xf32>
    %80 = arith.mulf %59, %79 : vector<8x256xf32>
    %81 = vector.broadcast %78 : vector<1x256xf32> to vector<8x256xf32>
    %82 = arith.addf %80, %81 : vector<8x256xf32>
    %cst_38 = arith.constant 0.000000e+00 : f32
    %83 = vector.broadcast %cst_38 : f32 to vector<8x256xf32>
    %84 = arith.maximumf %82, %83 : vector<8x256xf32>
    %85 = arith.truncf %84 : vector<8x256xf32> to vector<8x256xbf16>
    %c0_39 = arith.constant 0 : index
    %c0_40 = arith.constant 0 : index
    %86 = vector.load %arg10[%c0_39, %c0_40] : memref<256x128xbf16, #tpu.memory_space<vmem>>, vector<256x128xbf16>
    %cst_41 = arith.constant dense<0.000000e+00> : vector<8x128xf32>
    %87 = tpu.matmul %85, %86, %cst_41 {dimension_numbers = #tpu.dot_dimension_numbers<[1], [0], [0], [1], [0, 0, 1, 1], [], []>} : vector<8x256xbf16>, vector<256x128xbf16>, vector<8x128xf32> -> vector<8x128xf32>
    %c0_42 = arith.constant 0 : index
    %c0_43 = arith.constant 0 : index
    %88 = vector.load %arg11[%c0_42, %c0_43] : memref<1x128xf32, #tpu.memory_space<vmem>>, vector<1x128xf32>
    %89 = vector.broadcast %88 : vector<1x128xf32> to vector<8x128xf32>
    %90 = arith.addf %87, %89 : vector<8x128xf32>
    %c0_44 = arith.constant 0 : index
    %c0_45 = arith.constant 0 : index
    %91 = vector.load %arg12[%c0_44, %c0_45] : memref<8x128xf32, #tpu.memory_space<vmem>>, vector<8x128xf32>
    tpu.vector_store %arg12[%c0_44, %c0_45], %90 {strides = array<i32>} : memref<8x128xf32, #tpu.memory_space<vmem>>, vector<8x128xf32>,
    return
  }
}

</mosaic_0001>

<bundles_post_ra>
// kernel: tpu_custom_call.1
= control target key start
LH: loop header
LB: loop body
LE: loop exit
PB: predicated region body
PF: predicated region fallthrough
CT: control target
= control target key end

     0   :  { %17 = vsyncpa [#allocation5], 0  ;;  %s7291_s0 = inlined_call_operand.hbm [shape: f32[8,32], index: 0, kind: input, shape index: {}]   ;;  %s7292_s1 = inlined_call_operand.hbm [shape: bf16[32,2048], index: 1, kind: input, shape index: {}]   ;;  %s7293_s2 = inlined_call_operand.hbm [shape: f32[1,2048], index: 2, kind: input, shape index: {}]   ;;  %s7294_s3 = inlined_call_operand.hbm [shape: f32[1,2048], index: 3, kind: input, shape index: {}]   ;;  %s7295_s4 = inlined_call_operand.hbm [shape: bf16[2048,1024], index: 4, kind: input, shape index: {}]   ;;  %s7296_s5 = inlined_call_operand.hbm [shape: f32[1,1024], index: 5, kind: input, shape index: {}]   ;;  %s7297_s6 = inlined_call_operand.hbm [shape: f32[1,1024], index: 6, kind: input, shape index: {}]   ;;  %s7298_s7 = inlined_call_operand.hbm [shape: bf16[1024,256], index: 7, kind: input, shape index: {}]   ;;  %s7299_s8 = inlined_call_operand.hbm [shape: f32[1,256], index: 8, kind: input, shape index: {}]   ;;  %s7300_s9 = inlined_call_operand.hbm [shape: f32[1,256], index: 9, kind: input, shape index: {}]   ;;  %s7301_s10 = inlined_call_operand.hbm [shape: bf16[256,128], index: 10, kind: input, shape index: {}]   ;;  %s7302_s11 = inlined_call_operand.hbm [shape: f32[1,128], index: 11, kind: input, shape index: {}]   ;;  %s7303_s12 = inlined_call_operand.hbm [shape: f32[8,128], index: 12, kind: output, shape index: {}]  }
   0x1   :  { %18 = vsyncpa [#allocation8], 0 }
   0x2   :  { %19 = vsyncpa [#allocation11], 0 }
   0x3   :  { %20 = vsyncpa [#allocation14], 0 }
   0x4   :  { %21 = vsyncpa [#allocation17], 0 }
   0x5   :  { %22 = vsyncpa [#allocation20], 0 }
   0x6   :  { %23 = vsyncpa [#allocation6], 0  ;;  %s6371_s21 = smov [#allocation7]   ;;  %s6091_s25 = scalar_lea.hbm %s7292_s1, 4096 }
   0x7   :  { %s39_s22 = sshll.u32 %s6371_s21, 4  ;;  %p6092_p0 = scmp.ne.s32.totalorder %s7292_s1, %s6091_s25  ;;  %s40_s22 = int_to_ptr.vmem [resolvable:$true] %s39_s22 }
   0x8   :  { %p6095_p1 = scmp.lt.u32.totalorder %s6091_s25, %s7292_s1 }
   0xa   :  { %p6097_p2 = pnand %p6095_p1, %p6092_p0 }
   0xc   :  { %6100 = shalt.err (!%p6097_p2)
}
   0xd   :  { %s6101_s30 = scalar_lea.vmem %s40_s22, 4096  ;;  %p6106_p4 = scmp.lt.s32.totalorder %s40_s22, %s40_s22 }
   0xe   :  { %p6102_p3 = scmp.ne.s32.totalorder %s40_s22, %s6101_s30  ;;  %p6107_p5 = scmp.lt.s32.totalorder %s6101_s30, %s6101_s30 }
  0x10   :  { %p6108_p6 = por %p6107_p5, %p6106_p4 }
  0x12   :  { %p6109_p7 = pnand %p6108_p6, %p6102_p3 }
  0x14   :  { %6112 = shalt.err (!%p6109_p7)
}
  0x15   :  { %s6372_s13 = smov 1024   ;;  %s6373_s14 = smov 64  }
  0x16   :  { %45 = dma.hbm_to_vmem [thread:$0]  %s7292_s1, 4096, %s40_s22, [#allocation8], %s6372_s13, %s6372_s13, %s6373_s14  }
  0x17   :  { %s6374_s17 = smov [#allocation10]   ;;  %s6375_s19 = smov [#allocation13]  }
  0x18   :  { %s62_s18 = sshll.u32 %s6374_s17, 4  ;;  %s82_s20 = sshll.u32 %s6375_s19, 4  ;;  %s63_s18 = int_to_ptr.vmem [resolvable:$true] %s62_s18  ;;  %s83_s20 = int_to_ptr.vmem [resolvable:$true] %s82_s20 }
  0x19   :  { %s6113_s24 = scalar_lea.hbm %s7294_s3, 256 }
  0x1a   :  { %p6114_p8 = scmp.ne.s32.totalorder %s7294_s3, %s6113_s24  ;;  %p6117_p9 = scmp.lt.u32.totalorder %s6113_s24, %s7294_s3 }
  0x1c   :  { %p6119_p10 = pnand %p6117_p9, %p6114_p8 }
  0x1e   :  { %6122 = shalt.err (!%p6119_p10)
}
  0x1f   :  { %s6123_s1 = scalar_lea.vmem %s63_s18, 256  ;;  %p6128_p12 = scmp.lt.s32.totalorder %s63_s18, %s63_s18 }
  0x20   :  { %p6124_p11 = scmp.ne.s32.totalorder %s63_s18, %s6123_s1  ;;  %p6129_p13 = scmp.lt.s32.totalorder %s6123_s1, %s6123_s1 }
  0x22   :  { %p6130_p0 = por %p6129_p13, %p6128_p12 }
  0x24   :  { %p6131_p1 = pnand %p6130_p0, %p6124_p11 }
  0x26   :  { %6134 = shalt.err (!%p6131_p1)
}
  0x27   :  { %65 = dma.hbm_to_vmem [thread:$0]  %s7294_s3, 256, %s63_s18, [#allocation11]  }
  0x28   :  { %s6135_s16 = scalar_lea.hbm %s7297_s6, 128 }
  0x29   :  { %p6136_p2 = scmp.ne.s32.totalorder %s7297_s6, %s6135_s16  ;;  %p6139_p3 = scmp.lt.u32.totalorder %s6135_s16, %s7297_s6 }
  0x2b   :  { %p6141_p4 = pnand %p6139_p3, %p6136_p2 }
  0x2d   :  { %6144 = shalt.err (!%p6141_p4)
}
  0x2e   :  { %s6145_s24 = scalar_lea.vmem %s83_s20, 128  ;;  %p6150_p6 = scmp.lt.s32.totalorder %s83_s20, %s83_s20 }
  0x2f   :  { %p6146_p5 = scmp.ne.s32.totalorder %s83_s20, %s6145_s24  ;;  %p6151_p7 = scmp.lt.s32.totalorder %s6145_s24, %s6145_s24 }
  0x31   :  { %p6152_p8 = por %p6151_p7, %p6150_p6 }
  0x33   :  { %p6153_p9 = pnand %p6152_p8, %p6146_p5 }
  0x35   :  { %6156 = shalt.err (!%p6153_p9)
}
  0x36   :  { %85 = dma.hbm_to_vmem [thread:$0]  %s7297_s6, 128, %s83_s20, [#allocation14]  }
  0x37   :  { %s6376_s25 = smov [#allocation16]   ;;  %s6377_s27 = smov [#allocation19]  }
  0x38   :  { %s104_s26 = sshll.u32 %s6376_s25, 4  ;;  %s123_s28 = sshll.u32 %s6377_s27, 4  ;;  %s105_s26 = int_to_ptr.vmem [resolvable:$true] %s104_s26  ;;  %s124_s28 = int_to_ptr.vmem [resolvable:$true] %s123_s28 }
  0x39   :  { %s6157_s29 = scalar_lea.hbm %s7299_s8, 32 }
  0x3a   :  { %p6158_p10 = scmp.ne.s32.totalorder %s7299_s8, %s6157_s29  ;;  %p6161_p11 = scmp.lt.u32.totalorder %s6157_s29, %s7299_s8 }
  0x3c   :  { %p6163_p12 = pnand %p6161_p11, %p6158_p10 }
  0x3e   :  { %6166 = shalt.err (!%p6163_p12)
}
  0x3f   :  { %s6167_s6 = scalar_lea.vmem %s105_s26, 32  ;;  %p6172_p0 = scmp.lt.s32.totalorder %s105_s26, %s105_s26 }
  0x40   :  { %p6168_p13 = scmp.ne.s32.totalorder %s105_s26, %s6167_s6  ;;  %p6173_p1 = scmp.lt.s32.totalorder %s6167_s6, %s6167_s6 }
  0x42   :  { %p6174_p2 = por %p6173_p1, %p6172_p0 }
  0x44   :  { %p6175_p3 = pnand %p6174_p2, %p6168_p13 }
  0x46   :  { %6178 = shalt.err (!%p6175_p3)
}
  0x47   :  { %107 = dma.hbm_to_vmem [thread:$0]  %s7299_s8, 32, %s105_s26, [#allocation17]  }
  0x48   :  { %s6179_s24 = scalar_lea.hbm %s7301_s10, 2048 }
  0x49   :  { %p6180_p4 = scmp.ne.s32.totalorder %s7301_s10, %s6179_s24  ;;  %p6183_p5 = scmp.lt.u32.totalorder %s6179_s24, %s7301_s10 }
  0x4b   :  { %p6185_p6 = pnand %p6183_p5, %p6180_p4 }
  0x4d   :  { %6188 = shalt.err (!%p6185_p6)
}
  0x4e   :  { %s6189_s1 = scalar_lea.vmem %s124_s28, 2048  ;;  %p6194_p8 = scmp.lt.s32.totalorder %s124_s28, %s124_s28 }
  0x4f   :  { %p6190_p7 = scmp.ne.s32.totalorder %s124_s28, %s6189_s1  ;;  %p6195_p9 = scmp.lt.s32.totalorder %s6189_s1, %s6189_s1 }
  0x51   :  { %p6196_p10 = por %p6195_p9, %p6194_p8 }
  0x53   :  { %p6197_p11 = pnand %p6196_p10, %p6190_p7 }
  0x55   :  { %6200 = shalt.err (!%p6197_p11)
}
  0x56   :  { %s6378_s8 = smov 4   ;;  %s6379_s29 = smov [#allocation4]  }
  0x57   :  { %129 = dma.hbm_to_vmem [thread:$0]  %s7301_s10, 2048, %s124_s28, [#allocation20], %s6373_s14, %s6373_s14, %s6378_s8  }
  0x58   :  { %s30_s30 = sshll.u32 %s6379_s29, 4  ;;  %s6380_s15 = smov [#allocation9]   ;;  %s31_s30 = int_to_ptr.vmem [resolvable:$true] %s30_s30 }
  0x59   :  { %s52_s16 = sshll.u32 %s6380_s15, 4  ;;  %s6201_s20 = scalar_lea.hbm %s7291_s0, 128  ;;  %s53_s16 = int_to_ptr.vmem [resolvable:$true] %s52_s16 }
  0x5a   :  { %p6202_p12 = scmp.ne.s32.totalorder %s7291_s0, %s6201_s20  ;;  %p6205_p13 = scmp.lt.u32.totalorder %s6201_s20, %s7291_s0 }
  0x5c   :  { %p6207_p0 = pnand %p6205_p13, %p6202_p12 }
  0x5e   :  { %6210 = shalt.err (!%p6207_p0)
}
  0x5f   :  { %s6211_s10 = scalar_lea.vmem %s31_s30, 128  ;;  %p6216_p2 = scmp.lt.s32.totalorder %s31_s30, %s31_s30 }
  0x60   :  { %p6212_p1 = scmp.ne.s32.totalorder %s31_s30, %s6211_s10  ;;  %p6217_p3 = scmp.lt.s32.totalorder %s6211_s10, %s6211_s10 }
  0x62   :  { %p6218_p4 = por %p6217_p3, %p6216_p2 }
  0x64   :  { %p6219_p5 = pnand %p6218_p4, %p6212_p1 }
  0x66   :  { %6222 = shalt.err (!%p6219_p5)
}
  0x67   :  { %33 = dma.hbm_to_vmem [thread:$0]  %s7291_s0, 128, %s31_s30, [#allocation5]  }
  0x68   :  { %s6223_s27 = scalar_lea.hbm %s7293_s2, 256 }
  0x69   :  { %p6224_p6 = scmp.ne.s32.totalorder %s7293_s2, %s6223_s27  ;;  %p6227_p7 = scmp.lt.u32.totalorder %s6223_s27, %s7293_s2 }
  0x6b   :  { %p6229_p8 = pnand %p6227_p7, %p6224_p6 }
  0x6d   :  { %6232 = shalt.err (!%p6229_p8)
}
  0x6e   :  { %s6233_s15 = scalar_lea.vmem %s53_s16, 256  ;;  %p6238_p10 = scmp.lt.s32.totalorder %s53_s16, %s53_s16 }
  0x6f   :  { %p6234_p9 = scmp.ne.s32.totalorder %s53_s16, %s6233_s15  ;;  %p6239_p11 = scmp.lt.s32.totalorder %s6233_s15, %s6233_s15 }
  0x71   :  { %p6240_p12 = por %p6239_p11, %p6238_p10 }
  0x73   :  { %p6241_p13 = pnand %p6240_p12, %p6234_p9 }
  0x75   :  { %6244 = shalt.err (!%p6241_p13)
}
  0x76   :  { %55 = dma.hbm_to_vmem [thread:$0]  %s7293_s2, 256, %s53_s16, [#allocation8]  }
  0x77   :  { %s6381_s17 = smov [#allocation12]   ;;  %s6382_s20 = smov [#allocation15]  }
  0x78   :  { %s72_s6 = sshll.u32 %s6381_s17, 4  ;;  %s91_s19 = sshll.u32 %s6382_s20, 4  ;;  %s73_s6 = int_to_ptr.vmem [resolvable:$true] %s72_s6  ;;  %s6550_s19 = int_to_ptr.vmem [resolvable:$true] %s91_s19 }
  0x79   :  { %s6245_s24 = scalar_lea.hbm %s7296_s5, 128 }
  0x7a   :  { %p6246_p0 = scmp.ne.s32.totalorder %s7296_s5, %s6245_s24  ;;  %p6249_p1 = scmp.lt.u32.totalorder %s6245_s24, %s7296_s5 }
  0x7c   :  { %p6251_p2 = pnand %p6249_p1, %p6246_p0 }
  0x7e   :  { %6254 = shalt.err (!%p6251_p2)
}
  0x7f   :  { %s6255_s2 = scalar_lea.vmem %s73_s6, 128  ;;  %p6260_p4 = scmp.lt.s32.totalorder %s73_s6, %s73_s6 }
  0x80   :  { %p6256_p3 = scmp.ne.s32.totalorder %s73_s6, %s6255_s2  ;;  %p6261_p5 = scmp.lt.s32.totalorder %s6255_s2, %s6255_s2 }
  0x82   :  { %p6262_p6 = por %p6261_p5, %p6260_p4 }
  0x84   :  { %p6263_p7 = pnand %p6262_p6, %p6256_p3 }
  0x86   :  { %6266 = shalt.err (!%p6263_p7)
}
  0x87   :  { %75 = dma.hbm_to_vmem [thread:$0]  %s7296_s5, 128, %s73_s6, [#allocation11]  }
  0x88   :  { %s6267_s26 = scalar_lea.hbm %s7298_s7, 16384 }
  0x89   :  { %p6268_p8 = scmp.ne.s32.totalorder %s7298_s7, %s6267_s26  ;;  %p6271_p9 = scmp.lt.u32.totalorder %s6267_s26, %s7298_s7 }
  0x8b   :  { %p6273_p10 = pnand %p6271_p9, %p6268_p8 }
  0x8d   :  { %6276 = shalt.err (!%p6273_p10)
}
  0x8e   :  { %s6277_s30 = scalar_lea.vmem %s6550_s19, 16384  ;;  %p6282_p12 = scmp.lt.s32.totalorder %s6550_s19, %s6550_s19 }
  0x8f   :  { %p6278_p11 = scmp.ne.s32.totalorder %s6550_s19, %s6277_s30  ;;  %p6283_p13 = scmp.lt.s32.totalorder %s6277_s30, %s6277_s30 }
  0x91   :  { %p6284_p0 = por %p6283_p13, %p6282_p12 }
  0x93   :  { %p6285_p1 = pnand %p6284_p0, %p6278_p11 }
  0x95   :  { %6288 = shalt.err (!%p6285_p1)
}
  0x96   :  { %s6383_s5 = smov 128   ;;  %s6384_s17 = smov 8  }
  0x97   :  { %97 = dma.hbm_to_vmem [thread:$0]  %s7298_s7, 16384, %s6550_s19, [#allocation14], %s6383_s5, %s6383_s5, %s6384_s17  }
  0x98   :  { %s6385_s21 = smov [#allocation18]   ;;  %s6386_s24 = smov [#allocation21]  }
  0x99   :  { %s114_s23 = sshll.u32 %s6385_s21, 4  ;;  %s136_s10 = sshll.u32 %s6386_s24, 4  ;;  %s115_s23 = int_to_ptr.vmem [resolvable:$true] %s114_s23  ;;  %s137_s10 = int_to_ptr.vmem [resolvable:$true] %s136_s10 }
  0x9a   :  { %s6289_s18 = scalar_lea.hbm %s7300_s9, 32 }
  0x9b   :  { %p6290_p2 = scmp.ne.s32.totalorder %s7300_s9, %s6289_s18  ;;  %p6293_p3 = scmp.lt.u32.totalorder %s6289_s18, %s7300_s9 }
  0x9d   :  { %p6295_p4 = pnand %p6293_p3, %p6290_p2 }
  0x9f   :  { %6298 = shalt.err (!%p6295_p4)
}
  0xa0   :  { %s6299_s7 = scalar_lea.vmem %s115_s23, 32  ;;  %p6304_p6 = scmp.lt.s32.totalorder %s115_s23, %s115_s23 }
  0xa1   :  { %p6300_p5 = scmp.ne.s32.totalorder %s115_s23, %s6299_s7  ;;  %p6305_p7 = scmp.lt.s32.totalorder %s6299_s7, %s6299_s7 }
  0xa3   :  { %p6306_p8 = por %p6305_p7, %p6304_p6 }
  0xa5   :  { %p6307_p9 = pnand %p6306_p8, %p6300_p5 }
  0xa7   :  { %6310 = shalt.err (!%p6307_p9)
}
  0xa8   :  { %117 = dma.hbm_to_vmem [thread:$0]  %s7300_s9, 32, %s115_s23, [#allocation17]  }
  0xa9   :  { %s6311_s29 = scalar_lea.hbm %s7302_s11, 16 }
  0xaa   :  { %p6312_p10 = scmp.ne.s32.totalorder %s7302_s11, %s6311_s29  ;;  %p6315_p11 = scmp.lt.u32.totalorder %s6311_s29, %s7302_s11 }
  0xac   :  { %p6317_p12 = pnand %p6315_p11, %p6312_p10 }
  0xae   :  { %6320 = shalt.err (!%p6317_p12)
}
  0xaf   :  { %s6321_s20 = scalar_lea.vmem %s137_s10, 16  ;;  %s6325_s21 = scalar_lea.vmem %s137_s10, 32 }
  0xb0   :  { %p6322_p13 = scmp.ne.s32.totalorder %s137_s10, %s6321_s20  ;;  %p6326_p0 = scmp.lt.s32.totalorder %s137_s10, %s137_s10 }
  0xb1   :  { %p6327_p1 = scmp.lt.s32.totalorder %s6325_s21, %s6321_s20 }
  0xb3   :  { %p6328_p2 = por %p6327_p1, %p6326_p0 }
  0xb5   :  { %p6329_p3 = pnand %p6328_p2, %p6322_p13 }
  0xb7   :  { %6332 = shalt.err (!%p6329_p3)
}
  0xb8   :  { %139 = dma.hbm_to_vmem [thread:$0]  %s7302_s11, 16, %s137_s10, [#allocation20]  }
  0xb9   :  { %6355 = dma.done.wait [#allocation5], 128  }
  0xba   :  { %6356 = vsyncadd [#allocation5], 4294967168 }
  0xbb   :  { %6357 = dma.done.wait [#allocation8], 4352  }
  0xbc   :  { %6358 = vsyncadd [#allocation8], 4294962944 }
  0xbd   :  { %6359 = dma.done.wait [#allocation11], 384  }
  0xbe   :  { %6360 = vsyncadd [#allocation11], 4294966912 }
  0xbf   :  { %6361 = dma.done.wait [#allocation14], 16512  }
  0xc0   :  { %6362 = vsyncadd [#allocation14], 4294950784 }
  0xc1   :  { %6363 = dma.done.wait [#allocation17], 64  }
  0xc2   :  { %6364 = vsyncadd [#allocation17], 4294967232 }
  0xc3   :  { %6365 = dma.done.wait [#allocation20], 2064  }
  0xc4   :  { %6366 = vsyncadd [#allocation20], 4294965232  ;;  %s178_s24 = sld [smem:[#allocation0]]   ;;  %190 = sst [smem:[#allocation24]] %s6372_s13  ;;  %v6387_v0 = vmov 0   ;;  %vm403_vm0 = vcmask 261120  }
  0xc5   :  { %439 = vmatprep.mubr.bf16.mxu0 %v6387_v0  ;;  %644 = vmatprep.mubr.bf16.mxu1 %v6387_v0  ;;  %192 = sst [smem:[#allocation24 + $0x1]] %s6372_s13  ;;  %s6388_s11 = smov [#allocation2]  }
  0xc6   :  { %194 = sst [smem:[#allocation24 + $0x2]] %s6384_s17  ;;  %s186_s10 = sshll.u32 %s6388_s11, 4  ;;  %s187_s10 = int_to_ptr.vmem [resolvable:$true] %s186_s10 }
  0xc7   :  { %196 = sst [smem:[#allocation24 + $0x3]] %s6373_s14  ;;  %s6389_s28 = smov 2  }
  0xc8   :  { %198 = sst [smem:[#allocation24 + $0x4]] %s6383_s5  ;;  %s6390_s18 = smov 512  }
  0xc9   :  { %200 = sst [smem:[#allocation24 + $0x5]] %s6389_s28  ;;  %s6391_s13 = smov [#allocation3]  }
  0xca   :  { %s5475_s3 = sshll.u32 %s178_s24, 26  ;;  %202 = sst [smem:[#allocation24 + $0x6]] %s6390_s18 }
  0xcb   :  { %s5476_s2 = sadd.s32 134217728, %s5475_s3  ;;  %204 = sst [smem:[#allocation24 + $0x7]] %s6373_s14 }
  0xcc   :  { %206 = sst [smem:[#allocation24 + $0x8]] %s6378_s8  ;;  %s6392_s16 = smov [#allocation23]  }
  0xcd   :  { %208 = dma.general %s7295_s4, 131072, %s187_s10, %s6391_s13, %s6392_s16, [#allocation24], %s5476_s2, 0  }
  0xce   :  { %v211_v1 = vld [vmem:[#allocation7] sm:$0xff]  ;;  %v212_v8 = vld [vmem:[#allocation7 + $0x8] sm:$0xff]  ;;  %v209_v13 = vld [vmem:[#allocation4] sm:$0xff] }
  0xcf   :  { %v219_v2 = vld [vmem:[#allocation7 + $0x40] sm:$0xff]  ;;  %v220_v9 = vld [vmem:[#allocation7 + $0x48] sm:$0xff]  ;;  %v218_v22 = vld [vmem:[#allocation7 + $0x38] sm:$0xff]  ;;  %v6620_v24 = vpack.c.bf16 %v209_v13, %v209_v13 }
  0xd0   :  { %v227_v3 = vld [vmem:[#allocation7 + $0x80] sm:$0xff]  ;;  %v5478_v4 = vcombine.high %v211_v1, %v219_v2  ;;  %v5477_v5 = vcombine.low %v211_v1, %v219_v2  ;;  %v216_v10 = vld [vmem:[#allocation7 + $0x28] sm:$0xff]  ;;  %v5480_v18 = vcombine.high %v212_v8, %v220_v9  ;;  %v226_v23 = vld [vmem:[#allocation7 + $0x78] sm:$0xff]  ;;  %v5479_v26 = vcombine.low %v212_v8, %v220_v9 }
  0xd1   :  { %v235_v6 = vld [vmem:[#allocation7 + $0xc0] sm:$0xff]  ;;  %v224_v11 = vld [vmem:[#allocation7 + $0x68] sm:$0xff]  ;;  %v5492_v28 = vcombine.high %v218_v22, %v226_v23  ;;  %v234_v29 = vld [vmem:[#allocation7 + $0xb8] sm:$0xff]  ;;  %v5491_v33 = vcombine.low %v218_v22, %v226_v23  ;;  %v1050_v23 = vlaneseq }
  0xd2   :  { %v5494_v7 = vcombine.high %v227_v3, %v235_v6  ;;  %407 = vmatprep.subr.bf16.mxu0 %v5478_v4  ;;  %v5493_v12 = vcombine.low %v227_v3, %v235_v6  ;;  %v5488_v14 = vcombine.high %v216_v10, %v224_v11  ;;  %v5487_v15 = vcombine.low %v216_v10, %v224_v11  ;;  %v232_v16 = vld [vmem:[#allocation7 + $0xa8] sm:$0xff]  ;;  %v242_v30 = vld [vmem:[#allocation7 + $0xf8] sm:$0xff]  ;;  %v213_v31 = vld [vmem:[#allocation7 + $0x10] sm:$0xff] }
  0xd3   :  { %408 = vmatpush1.bf16.msra.mxu0 %v5477_v5  ;;  %v240_v17 = vld [vmem:[#allocation7 + $0xe8] sm:$0xff]  ;;  %v221_v32 = vld [vmem:[#allocation7 + $0x50] sm:$0xff]  ;;  %v5508_v35 = vcombine.high %v234_v29, %v242_v30  ;;  %v5507_v39 = vcombine.low %v234_v29, %v242_v30  ;;  %v214_v42 = vld [vmem:[#allocation7 + $0x18] sm:$0xff] }
  0xd4   :  { %409 = vmatprep.subr.bf16.mxu0 %v5494_v7  ;;  %v228_v19 = vld [vmem:[#allocation7 + $0x88] sm:$0xff]  ;;  %v5504_v20 = vcombine.high %v232_v16, %v240_v17  ;;  %612 = vmatprep.subr.bf16.mxu1 %v5488_v14  ;;  %v5503_v25 = vcombine.low %v232_v16, %v240_v17  ;;  %v5482_v36 = vcombine.high %v213_v31, %v221_v32  ;;  %v229_v37 = vld [vmem:[#allocation7 + $0x90] sm:$0xff]  ;;  %v222_v43 = vld [vmem:[#allocation7 + $0x58] sm:$0xff] }
  0xd5   :  { %v236_v21 = vld [vmem:[#allocation7 + $0xc8] sm:$0xff]  ;;  %613 = vmatpush1.bf16.msra.mxu1 %v5487_v15  ;;  %v237_v38 = vld [vmem:[#allocation7 + $0xd0] sm:$0xff]  ;;  %v5481_v40 = vcombine.low %v213_v31, %v221_v32  ;;  %v5484_v45 = vcombine.high %v214_v42, %v222_v43  ;;  %v230_v46 = vld [vmem:[#allocation7 + $0x98] sm:$0xff]  ;;  %v5483_v48 = vcombine.low %v214_v42, %v222_v43 }
  0xd6   :  { %614 = vmatprep.subr.bf16.mxu1 %v5504_v20  ;;  %v5496_v27 = vcombine.high %v228_v19, %v236_v21  ;;  %v5495_v34 = vcombine.low %v228_v19, %v236_v21  ;;  %v5498_v41 = vcombine.high %v229_v37, %v237_v38  ;;  %v5497_v44 = vcombine.low %v229_v37, %v237_v38  ;;  %v238_v47 = vld [vmem:[#allocation7 + $0xd8] sm:$0xff]  ;;  %v215_v50 = vld [vmem:[#allocation7 + $0x20] sm:$0xff]  ;;  %v217_v58 = vld [vmem:[#allocation7 + $0x30] sm:$0xff] }
  0xd7   :  { %410 = vmatpush1.bf16.msra.mxu0 %v5493_v12  ;;  %v5500_v49 = vcombine.high %v230_v46, %v238_v47  ;;  %v223_v51 = vld [vmem:[#allocation7 + $0x60] sm:$0xff]  ;;  %v5499_v52 = vcombine.low %v230_v46, %v238_v47  ;;  %v225_v59 = vld [vmem:[#allocation7 + $0x70] sm:$0xff]  ;;  %v6669_v38 = vshrl.u32 %v1050_v23, 7 }
  0xd8   :  { %448 = vmatprep.subr.bf16.mxu0 %v5480_v18  ;;  %v5486_v53 = vcombine.high %v215_v50, %v223_v51  ;;  %v231_v54 = vld [vmem:[#allocation7 + $0xa0] sm:$0xff]  ;;  %v5485_v56 = vcombine.low %v215_v50, %v223_v51  ;;  %v5490_v61 = vcombine.high %v217_v58, %v225_v59  ;;  %v233_v62 = vld [vmem:[#allocation7 + $0xb0] sm:$0xff]  ;;  %v5489_v1 = vcombine.low %v217_v58, %v225_v59 }
  0xd9   :  { %615 = vmatpush1.bf16.msra.mxu1 %v5503_v25  ;;  %v239_v55 = vld [vmem:[#allocation7 + $0xe0] sm:$0xff]  ;;  %v241_v63 = vld [vmem:[#allocation7 + $0xf0] sm:$0xff]  ;;  %v6393_v18 = vmov 1966171168  }
  0xda   :  { %5509 = vmatmul.mubr.msk.bf16.vlgmr.msra.gmra.mrb[0].mxu0 %vm403_vm0, %v6620_v24  ;;  %694 = vmatprep.subr.bf16.mxu1 %v5492_v28  ;;  %v5502_v57 = vcombine.high %v231_v54, %v239_v55  ;;  %v5501_v60 = vcombine.low %v231_v54, %v239_v55  ;;  %v5506_v2 = vcombine.high %v233_v62, %v241_v63  ;;  %v6658_v19 = vunpack.c.l.s4 %v6393_v18 }
  0xdb   :  { %449 = vmatpush1.bf16.msra.mxu0 %v5479_v26  ;;  %480 = vmatprep.mubr.bf16.mxu0 %v6387_v0  ;;  %v5505_v3 = vcombine.low %v233_v62, %v241_v63 }
  0xdc   :  { %450 = vmatprep.subr.bf16.mxu0 %v5496_v27  ;;  %5514 = vmatmul.mubr.msk.bf16.vlgmr.msra.gmra.mrb[0].mxu1 %vm403_vm0, %v6620_v24 }
  0xdd   :  { %695 = vmatpush1.bf16.msra.mxu1 %v5491_v33  ;;  %726 = vmatprep.mubr.bf16.mxu1 %v6387_v0  ;;  %v1049_v33 = vunpack.c.0.s8 %v6658_v19 }
  0xde   :  { %696 = vmatprep.subr.bf16.mxu1 %v5508_v35 }
  0xdf   :  { %451 = vmatpush1.bf16.msra.mxu0 %v5495_v34 }
  0xe0   :  { %489 = vmatprep.subr.bf16.mxu0 %v5482_v36 }
  0xe1   :  { %697 = vmatpush1.bf16.msra.mxu1 %v5507_v39 }
  0xe2   :  { %5510 = vmatmul.mubr.msk.bf16.vlgmr.msra.gmra.mrb[4].mxu0 %vm403_vm0, %v6620_v24 }
  0xe3   :  { %490 = vmatpush1.bf16.msra.mxu0 %v5481_v40  ;;  %521 = vmatprep.mubr.bf16.mxu0 %v6387_v0 }
  0xe4   :  { %491 = vmatprep.subr.bf16.mxu0 %v5498_v41  ;;  %5516 = vmatmul.mubr.msk.bf16.vlgmr.msra.gmra.mrb[4].mxu1 %vm403_vm0, %v6620_v24 }
  0xe7   :  { %492 = vmatpush1.bf16.msra.mxu0 %v5497_v44 }
  0xe8   :  { %530 = vmatprep.subr.bf16.mxu0 %v5484_v45 }
  0xea   :  { %5511 = vmatmul.mubr.msk.bf16.vlgmr.msra.gmra.mrb[8].mxu0 %vm403_vm0, %v6620_v24 }
  0xeb   :  { %531 = vmatpush1.bf16.msra.mxu0 %v5483_v48  ;;  %562 = vmatprep.mubr.bf16.mxu0 %v6387_v0 }
  0xec   :  { %532 = vmatprep.subr.bf16.mxu0 %v5500_v49 }
  0xef   :  { %533 = vmatpush1.bf16.msra.mxu0 %v5499_v52 }
  0xf0   :  { %571 = vmatprep.subr.bf16.mxu0 %v5486_v53 }
  0xf2   :  { %5512 = vmatmul.mubr.msk.bf16.vlgmr.msra.gmra.mrb[12].mxu0 %vm403_vm0, %v6620_v24 }
  0xf3   :  { %572 = vmatpush1.bf16.msra.mxu0 %v5485_v56  ;;  %603 = vmatprep.mubr.bf16.mxu0 %v6387_v0 }
  0xf4   :  { %573 = vmatprep.subr.bf16.mxu0 %v5502_v57 }
  0xf7   :  { %574 = vmatpush1.bf16.msra.mxu0 %v5501_v60 }
  0xf8   :  { %653 = vmatprep.subr.bf16.mxu0 %v5490_v61 }
  0xfa   :  { %5513 = vmatmul.mubr.msk.bf16.vlgmr.msra.gmra.mrb[16].mxu0 %vm403_vm0, %v6620_v24 }
  0xfb   :  { %654 = vmatpush1.bf16.msra.mxu0 %v5489_v1  ;;  %685 = vmatprep.mubr.bf16.mxu0 %v6387_v0 }
  0xfc   :  { %655 = vmatprep.subr.bf16.mxu0 %v5506_v2 }
  0xff   :  { %656 = vmatpush1.bf16.msra.mxu0 %v5505_v3 }
 0x102   :  { %5515 = vmatmul.mubr.msk.bf16.vlgmr.msra.gmra.mrb[20].mxu0 %vm403_vm0, %v6620_v24 }
 0x1ad   :  { %v6644_v4 = vpop.f32.mrb[0].mxu0 }
 0x1ae   :  { %v739_v5 = vrot.slane %v6644_v4, 4  ;;  %v6647_v6 = vpop.f32.mrb[1].mxu0 }
 0x1af   :  { %v745_v7 = vrot.slane %v6647_v6, 4  ;;  %v445_v8 = vpop.f32.mrb[2].mxu0  ;;  %v6651_v11 = vpop.f32.mrb[0].mxu1 }
 0x1b0   :  { %v740_v9 = vadd.f32 %v739_v5, %v6644_v4  ;;  %v446_v10 = vpop.f32.mrb[3].mxu0  ;;  %v799_v12 = vrot.slane %v6651_v11, 4  ;;  %v6655_v13 = vpop.f32.mrb[1].mxu1 }
 0x1b1   :  { %v746_v0 = vadd.f32 %v745_v7, %v6647_v6  ;;  %v805_v15 = vrot.slane %v6655_v13, 4  ;;  %v650_v16 = vpop.f32.mrb[2].mxu1 }
 0x1b2   :  { %v741_v14 = vrot.slane %v740_v9, 2  ;;  %v800_v20 = vadd.f32 %v799_v12, %v6651_v11  ;;  %v651_v21 = vpop.f32.mrb[3].mxu1 }
 0x1b3   :  { %v747_v17 = vrot.slane %v746_v0, 2  ;;  %v806_v24 = vadd.f32 %v805_v15, %v6655_v13 }
 0x1b4   :  { %v742_v22 = vadd.f32 %v741_v14, %v740_v9  ;;  %v801_v27 = vrot.slane %v800_v20, 2 }
 0x1b5   :  { %v748_v25 = vadd.f32 %v747_v17, %v746_v0  ;;  %v6662_v26 = vpop.f32.mrb[4].mxu0  ;;  %v807_v31 = vrot.slane %v806_v24, 2 }
 0x1b6   :  { %v743_v28 = vrot.slane %v742_v22, 1  ;;  %v751_v29 = vrot.slane %v6662_v26, 4  ;;  %v6665_v30 = vpop.f32.mrb[5].mxu0  ;;  %v802_v36 = vadd.f32 %v801_v27, %v800_v20 }
 0x1b7   :  { %v749_v32 = vrot.slane %v748_v25, 1  ;;  %v757_v34 = vrot.slane %v6665_v30, 4  ;;  %v486_v35 = vpop.f32.mrb[6].mxu0  ;;  %v808_v41 = vadd.f32 %v807_v31, %v806_v24  ;;  %v6672_v42 = vpop.f32.mrb[4].mxu1 }
 0x1b8   :  { %v744_v37 = vadd.f32 %v743_v28, %v742_v22  ;;  %v752_v39 = vadd.f32 %v751_v29, %v6662_v26  ;;  %v487_v40 = vpop.f32.mrb[7].mxu0  ;;  %7308 = vst [vmem:[#allocation33_spill] sm:$0xff] %v6672_v42  ;;  %v803_v45 = vrot.slane %v802_v36, 1  ;;  %v823_v46 = vrot.slane %v6672_v42, 4  ;;  %v6676_v47 = vpop.f32.mrb[5].mxu1 }
 0x1b9   :  { %v750_v43 = vadd.f32 %v749_v32, %v748_v25  ;;  %v758_v44 = vadd.f32 %v757_v34, %v6665_v30  ;;  %7309 = vst [vmem:[#allocation34_spill] sm:$0xff] %v6676_v47  ;;  %v809_v50 = vrot.slane %v808_v41, 1  ;;  %v829_v51 = vrot.slane %v6676_v47, 4  ;;  %v732_v52 = vpop.f32.mrb[6].mxu1 }
 0x1ba   :  { %v6678_v48 = vmul.f32 0.125, %v744_v37  ;;  %v753_v49 = vrot.slane %v752_v39, 2  ;;  %v804_v55 = vadd.f32 %v803_v45, %v802_v36  ;;  %v6684_v56 = vadd.f32 %v823_v46, %v6672_v42  ;;  %v733_v57 = vpop.f32.mrb[7].mxu1 }
 0x1bb   :  { %v6681_v53 = vmul.f32 0.125, %v750_v43  ;;  %v759_v54 = vrot.slane %v758_v44, 2  ;;  %v810_v60 = vadd.f32 %v809_v50, %v808_v41  ;;  %v6689_v61 = vadd.f32 %v829_v51, %v6676_v47 }
 0x1bc   :  { %v851_v58 = vsub.f32 %v6644_v4, %v6678_v48  ;;  %v754_v59 = vadd.f32 %v753_v49, %v752_v39  ;;  %v6693_v1 = vmul.f32 0.125, %v804_v55  ;;  %v825_v3 = vrot.slane %v6684_v56, 2 }
 0x1bd   :  { %v852_v62 = vsub.f32 %v6647_v6, %v6681_v53  ;;  %v760_v63 = vadd.f32 %v759_v54, %v758_v44  ;;  %v6695_v2 = vpop.f32.mrb[8].mxu0  ;;  %v6698_v8 = vmul.f32 0.125, %v810_v60 }
 0x1be   :  { %v867_v5 = vmul.f32 %v851_v58, %v851_v58  ;;  %v755_v7 = vrot.slane %v754_v59, 1  ;;  %v763_v9 = vrot.slane %v6695_v2, 4  ;;  %v6701_v10 = vpop.f32.mrb[9].mxu0  ;;  %v861_v14 = vsub.f32 %v6651_v11, %v6693_v1 }
 0x1bf   :  { %v868_v0 = vmul.f32 %v852_v62, %v852_v62  ;;  %v761_v12 = vrot.slane %v760_v63, 1  ;;  %v769_v15 = vrot.slane %v6701_v10, 4  ;;  %v527_v16 = vpop.f32.mrb[10].mxu0  ;;  %v862_v20 = vsub.f32 %v6655_v13, %v6698_v8 }
 0x1c0   :  { %v883_v17 = vrot.slane %v867_v5, 4  ;;  %v756_v18 = vadd.f32 %v755_v7, %v754_v59  ;;  %v764_v21 = vadd.f32 %v763_v9, %v6695_v2  ;;  %v528_v22 = vpop.f32.mrb[11].mxu0  ;;  %v877_v25 = vmul.f32 %v861_v14, %v861_v14 }
 0x1c1   :  { %v889_v23 = vrot.slane %v868_v0, 4  ;;  %v762_v24 = vadd.f32 %v761_v12, %v760_v63  ;;  %v770_v27 = vadd.f32 %v769_v15, %v6701_v10  ;;  %v878_v31 = vmul.f32 %v862_v20, %v862_v20 }
 0x1c2   :  { %v884_v28 = vadd.f32 %v883_v17, %v867_v5  ;;  %v6710_v29 = vmul.f32 0.125, %v756_v18  ;;  %v765_v32 = vrot.slane %v764_v21, 2  ;;  %v943_v36 = vrot.slane %v877_v25, 4 }
 0x1c3   :  { %v890_v34 = vadd.f32 %v889_v23, %v868_v0  ;;  %v6712_v35 = vmul.f32 0.125, %v762_v24  ;;  %v771_v37 = vrot.slane %v770_v27, 2  ;;  %v949_v41 = vrot.slane %v878_v31, 4 }
 0x1c4   :  { %v885_v39 = vrot.slane %v884_v28, 2  ;;  %v853_v40 = vsub.f32 %v6662_v26, %v6710_v29  ;;  %v766_v43 = vadd.f32 %v765_v32, %v764_v21  ;;  %v944_v46 = vadd.f32 %v943_v36, %v877_v25 }
 0x1c5   :  { %v891_v44 = vrot.slane %v890_v34, 2  ;;  %v854_v45 = vsub.f32 %v6665_v30, %v6712_v35  ;;  %v772_v49 = vadd.f32 %v771_v37, %v770_v27  ;;  %v6718_v50 = vpop.f32.mrb[12].mxu0  ;;  %v950_v54 = vadd.f32 %v949_v41, %v878_v31 }
 0x1c6   :  { %v886_v51 = vadd.f32 %v885_v39, %v884_v28  ;;  %v869_v52 = vmul.f32 %v853_v40, %v853_v40  ;;  %v767_v55 = vrot.slane %v766_v43, 1  ;;  %v6720_v57 = vpop.f32.mrb[13].mxu0  ;;  %v945_v60 = vrot.slane %v944_v46, 2 }
 0x1c7   :  { %v892_v58 = vadd.f32 %v891_v44, %v890_v34  ;;  %v870_v59 = vmul.f32 %v854_v45, %v854_v45  ;;  %v773_v62 = vrot.slane %v772_v49, 1  ;;  %v568_v63 = vpop.f32.mrb[14].mxu0  ;;  %v951_v9 = vrot.slane %v950_v54, 2 }
 0x1c8   :  { %v887_v5 = vrot.slane %v886_v51, 1  ;;  %v895_v7 = vrot.slane %v869_v52, 4  ;;  %v768_v0 = vadd.f32 %v767_v55, %v766_v43  ;;  %v569_v12 = vpop.f32.mrb[15].mxu0  ;;  %v946_v16 = vadd.f32 %v945_v60, %v944_v46 }
 0x1c9   :  { %v893_v14 = vrot.slane %v892_v58, 1  ;;  %v901_v15 = vrot.slane %v870_v59, 4  ;;  %v774_v17 = vadd.f32 %v773_v62, %v772_v49  ;;  %v952_v21 = vadd.f32 %v951_v9, %v950_v54 }
 0x1ca   :  { %v888_v18 = vadd.f32 %v887_v5, %v886_v51  ;;  %v896_v20 = vadd.f32 %v895_v7, %v869_v52  ;;  %v6722_v22 = vmul.f32 0.125, %v768_v0  ;;  %v947_v25 = vrot.slane %v946_v16, 1 }
 0x1cb   :  { %v894_v23 = vadd.f32 %v893_v14, %v892_v58  ;;  %v902_v24 = vadd.f32 %v901_v15, %v870_v59  ;;  %v6724_v27 = vmul.f32 0.125, %v774_v17  ;;  %v953_v32 = vrot.slane %v952_v21, 1 }
 0x1cc   :  { %v979_v28 = vmul.f32 0.125, %v888_v18  ;;  %v897_v31 = vrot.slane %v896_v20, 2  ;;  %v855_v34 = vsub.f32 %v6695_v2, %v6722_v22  ;;  %v948_v39 = vadd.f32 %v947_v25, %v946_v16 }
 0x1cd   :  { %v980_v36 = vmul.f32 0.125, %v894_v23  ;;  %v903_v37 = vrot.slane %v902_v24, 2  ;;  %v856_v40 = vsub.f32 %v6701_v10, %v6724_v27  ;;  %v6730_v41 = vpop.f32.mrb[16].mxu0  ;;  %v954_v45 = vadd.f32 %v953_v32, %v952_v21 }
 0x1ce   :  { %v995_v43 = vadd.f32 1e-05, %v979_v28  ;;  %v898_v44 = vadd.f32 %v897_v31, %v896_v20  ;;  %v871_v46 = vmul.f32 %v855_v34, %v855_v34  ;;  %v6732_v49 = vpop.f32.mrb[17].mxu0  ;;  %v989_v54 = vmul.f32 0.125, %v948_v39 }
 0x1cf   :  { %v996_v51 = vadd.f32 1e-05, %v980_v36  ;;  %v904_v52 = vadd.f32 %v903_v37, %v902_v24  ;;  %v872_v55 = vmul.f32 %v856_v40, %v856_v40  ;;  %v609_v58 = vpop.f32.mrb[18].mxu0  ;;  %v990_v60 = vmul.f32 0.125, %v954_v45 }
 0x1d0   :  { %5831 = vrsqrt.f32 %v995_v43  ;;  %v899_v59 = vrot.slane %v898_v44, 1  ;;  %v907_v62 = vrot.slane %v871_v46, 4  ;;  %v610_v63 = vpop.f32.mrb[19].mxu0  ;;  %v1005_v7 = vadd.f32 1e-05, %v989_v54 }
 0x1d1   :  { %5833 = vrsqrt.f32 %v996_v51  ;;  %v905_v5 = vrot.slane %v904_v52, 1  ;;  %v913_v9 = vrot.slane %v872_v55, 4  ;;  %v1006_v12 = vadd.f32 1e-05, %v990_v60 }
 0x1d2   :  { %v900_v0 = vadd.f32 %v899_v59, %v898_v44  ;;  %v908_v14 = vadd.f32 %v907_v62, %v871_v46  ;;  %v826_v15 = vadd.f32 %v825_v3, %v6684_v56  ;;  %5835 = vrsqrt.f32 %v1005_v7 }
 0x1d3   :  { %v906_v16 = vadd.f32 %v905_v5, %v904_v52  ;;  %v914_v17 = vadd.f32 %v913_v9, %v872_v55  ;;  %v831_v18 = vrot.slane %v6689_v61, 2  ;;  %5837 = vrsqrt.f32 %v1006_v12 }
 0x1d4   :  { %v981_v20 = vmul.f32 0.125, %v900_v0  ;;  %v909_v21 = vrot.slane %v908_v14, 2  ;;  %v827_v23 = vrot.slane %v826_v15, 1  ;;  %v775_v31 = vrot.slane %v6718_v50, 4 }
 0x1d5   :  { %v982_v24 = vmul.f32 0.125, %v906_v16  ;;  %v915_v25 = vrot.slane %v914_v17, 2  ;;  %v832_v28 = vadd.f32 %v831_v18, %v6689_v61  ;;  %v6740_v32 = vpop.f32.mrb[20].mxu0  ;;  %v781_v3 = vrot.slane %v6720_v57, 4 }
 0x1d6   :  { %7310 = vst [vmem:[#allocation35_spill] sm:$0xff] %v6740_v32  ;;  %v997_v34 = vadd.f32 1e-05, %v981_v20  ;;  %v910_v36 = vadd.f32 %v909_v21, %v908_v14  ;;  %v828_v56 = vadd.f32 %v827_v23, %v826_v15  ;;  %v6743_v37 = vpop.f32.mrb[21].mxu0  ;;  %v776_v44 = vadd.f32 %v775_v31, %v6718_v50 }
 0x1d7   :  { %7311 = vst [vmem:[#allocation36_spill] sm:$0xff] %v6743_v37  ;;  %v998_v39 = vadd.f32 1e-05, %v982_v24  ;;  %v916_v40 = vadd.f32 %v915_v25, %v914_v17  ;;  %v833_v43 = vrot.slane %v832_v28, 1  ;;  %v691_v45 = vpop.f32.mrb[22].mxu0  ;;  %v782_v51 = vadd.f32 %v781_v3, %v6720_v57 }
 0x1d8   :  { %5839 = vrsqrt.f32 %v997_v34  ;;  %v911_v46 = vrot.slane %v910_v36, 1  ;;  %v6746_v61 = vmul.f32 0.125, %v828_v56  ;;  %v692_v52 = vpop.f32.mrb[23].mxu0  ;;  %v777_v58 = vrot.slane %v776_v44, 2 }
 0x1d9   :  { %5841 = vrsqrt.f32 %v998_v39  ;;  %v917_v54 = vrot.slane %v916_v40, 1  ;;  %v834_v55 = vadd.f32 %v833_v43, %v832_v28  ;;  %v783_v63 = vrot.slane %v782_v51, 2 }
 0x1da   :  { %v5832_v59 = vpop.eup %5831  ;;  %v912_v60 = vadd.f32 %v911_v46, %v910_v36  ;;  %v865_v62 = vsub.f32 %v6672_v42, %v6746_v61  ;;  %v787_v5 = vrot.slane %v6730_v41, 4  ;;  %v6755_v9 = vsub.s32 %v1049_v33, %v6669_v38 }
 0x1db   :  { %v5834_v7 = vpop.eup %5833  ;;  %v918_v0 = vadd.f32 %v917_v54, %v916_v40  ;;  %v6757_v12 = vmul.f32 0.125, %v834_v55  ;;  %v778_v14 = vadd.f32 %v777_v58, %v776_v44  ;;  %v784_v18 = vadd.f32 %v783_v63, %v782_v51 }
 0x1dc   :  { %v1043_v15 = vcombine.low %v5832_v59, %v5834_v7  ;;  %v983_v16 = vmul.f32 0.125, %v912_v60  ;;  %v881_v17 = vmul.f32 %v865_v62, %v865_v62  ;;  %v6759_v20 = vpop.eup %5835  ;;  %v788_v25 = vadd.f32 %v787_v5, %v6730_v41 }
 0x1dd   :  { %v984_v21 = vmul.f32 0.125, %v918_v0  ;;  %v866_v23 = vsub.f32 %v6676_v47, %v6757_v12  ;;  %v779_v24 = vrot.slane %v778_v14, 1  ;;  %v6764_v19 = vpop.eup %5837  ;;  %v785_v31 = vrot.slane %v784_v18, 1 }
 0x1de   :  { %v999_v33 = vadd.f32 1e-05, %v983_v16  ;;  %v967_v28 = vrot.slane %v881_v17, 4  ;;  %v793_v34 = vrot.slane %v6732_v49, 4  ;;  %v789_v44 = vrot.slane %v788_v25, 2 }
 0x1df   :  { %v1000_v56 = vadd.f32 1e-05, %v984_v21  ;;  %v882_v3 = vmul.f32 %v866_v23, %v866_v23  ;;  %v780_v39 = vadd.f32 %v779_v24, %v778_v14  ;;  %v786_v43 = vadd.f32 %v785_v31, %v784_v18 }
 0x1e0   :  { %5843 = vrsqrt.f32 %v999_v33  ;;  %v968_v40 = vadd.f32 %v967_v28, %v881_v17  ;;  %v790_v55 = vadd.f32 %v789_v44, %v788_v25  ;;  %v794_v58 = vadd.f32 %v793_v34, %v6732_v49 }
 0x1e1   :  { %5845 = vrsqrt.f32 %v1000_v56  ;;  %v973_v45 = vrot.slane %v882_v3, 4  ;;  %v6769_v46 = vmul.f32 0.125, %v780_v39  ;;  %v6771_v54 = vmul.f32 0.125, %v786_v43 }
 0x1e2   :  { %v5840_v51 = vpop.eup %5839  ;;  %v969_v52 = vrot.slane %v968_v40, 2  ;;  %v6775_v60 = vrot.slane %v1043_v15, %v6755_v9  ;;  %v811_v5 = vrot.slane %v6740_v32, 4  ;;  %v791_v16 = vrot.slane %v790_v55, 1 }
 0x1e3   :  { %v5842_v59 = vpop.eup %5841  ;;  %v974_v62 = vadd.f32 %v973_v45, %v882_v3  ;;  %v857_v63 = vsub.f32 %v6718_v50, %v6769_v46  ;;  %v858_v14 = vsub.f32 %v6720_v57, %v6771_v54  ;;  %v795_v21 = vrot.slane %v794_v58, 2 }
 0x1e4   :  { %v1044_v7 = vcombine.low %v5840_v51, %v5842_v59  ;;  %v970_v0 = vadd.f32 %v969_v52, %v968_v40  ;;  %v812_v23 = vadd.f32 %v811_v5, %v6740_v32  ;;  %v792_v33 = vadd.f32 %v791_v16, %v790_v55 }
 0x1e5   :  { %v975_v17 = vrot.slane %v974_v62, 2  ;;  %v873_v18 = vmul.f32 %v857_v63, %v857_v63  ;;  %v874_v25 = vmul.f32 %v858_v14, %v858_v14  ;;  %v796_v34 = vadd.f32 %v795_v21, %v794_v58 }
 0x1e6   :  { %v6784_v15 = vrot.slane %v1044_v7, %v6755_v9  ;;  %v971_v24 = vrot.slane %v970_v0, 1  ;;  %v813_v56 = vrot.slane %v812_v23, 2  ;;  %v6788_v43 = vmul.f32 0.125, %v792_v33 }
 0x1e7   :  { %v976_v28 = vadd.f32 %v975_v17, %v974_v62  ;;  %v919_v31 = vrot.slane %v873_v18, 4  ;;  %v925_v40 = vrot.slane %v874_v25, 4  ;;  %v797_v51 = vrot.slane %v796_v34, 1 }
 0x1e8   :  { %v972_v39 = vadd.f32 %v971_v24, %v970_v0  ;;  %v814_v52 = vadd.f32 %v813_v56, %v812_v23  ;;  %v859_v55 = vsub.f32 %v6730_v41, %v6788_v43  ;;  %v817_v58 = vrot.slane %v6743_v37, 4 }
 0x1e9   :  { %v977_v44 = vrot.slane %v976_v28, 1  ;;  %v920_v45 = vadd.f32 %v919_v31, %v873_v18  ;;  %v926_v5 = vadd.f32 %v925_v40, %v874_v25  ;;  %v798_v14 = vadd.f32 %v797_v51, %v796_v34 }
 0x1ea   :  { %v6790_v59 = vpop.eup %5843  ;;  %v993_v63 = vmul.f32 0.125, %v972_v39  ;;  %v815_v16 = vrot.slane %v814_v52, 1  ;;  %v875_v23 = vmul.f32 %v859_v55, %v859_v55 }
 0x1eb   :  { %v6795_v62 = vpop.eup %5845  ;;  %v978_v7 = vadd.f32 %v977_v44, %v976_v28  ;;  %v921_v0 = vrot.slane %v920_v45, 2  ;;  %v927_v21 = vrot.slane %v926_v5, 2  ;;  %v6799_v25 = vmul.f32 0.125, %v798_v14 }
 0x1ec   :  { %v1009_v18 = vadd.f32 1e-05, %v993_v63  ;;  %v816_v31 = vadd.f32 %v815_v16, %v814_v52  ;;  %v931_v39 = vrot.slane %v875_v23, 4  ;;  %v818_v63 = vadd.f32 %v817_v58, %v6743_v37 }
 0x1ed   :  { %v994_v24 = vmul.f32 0.125, %v978_v7  ;;  %v922_v33 = vadd.f32 %v921_v0, %v920_v45  ;;  %v928_v56 = vadd.f32 %v927_v21, %v926_v5  ;;  %v860_v28 = vsub.f32 %v6732_v49, %v6799_v25 }
 0x1ee   :  { %5847 = vrsqrt.f32 %v1009_v18  ;;  %v6803_v34 = vmul.f32 0.125, %v816_v31  ;;  %v932_v51 = vadd.f32 %v931_v39, %v875_v23  ;;  %v819_v0 = vrot.slane %v818_v63, 2 }
 0x1ef   :  { %v1010_v40 = vadd.f32 1e-05, %v994_v24  ;;  %v923_v36 = vrot.slane %v922_v33, 1  ;;  %v929_v44 = vrot.slane %v928_v56, 1  ;;  %v876_v45 = vmul.f32 %v860_v28, %v860_v28 }
 0x1f0   :  { %v863_v52 = vsub.f32 %v6740_v32, %v6803_v34  ;;  %v933_v5 = vrot.slane %v932_v51, 2  ;;  %v820_v31 = vadd.f32 %v819_v0, %v818_v63 }
 0x1f1   :  { %5849 = vrsqrt.f32 %v1010_v40  ;;  %v924_v55 = vadd.f32 %v923_v36, %v922_v33  ;;  %v930_v7 = vadd.f32 %v929_v44, %v928_v56  ;;  %v937_v16 = vrot.slane %v876_v45, 4 }
 0x1f2   :  { %v879_v18 = vmul.f32 %v863_v52, %v863_v52  ;;  %v934_v24 = vadd.f32 %v933_v5, %v932_v51  ;;  %v821_v40 = vrot.slane %v820_v31, 1 }
 0x1f3   :  { %v985_v14 = vmul.f32 0.125, %v924_v55  ;;  %v986_v21 = vmul.f32 0.125, %v930_v7  ;;  %v938_v17 = vadd.f32 %v937_v16, %v876_v45 }
 0x1f4   :  { %v955_v23 = vrot.slane %v879_v18, 4  ;;  %v935_v58 = vrot.slane %v934_v24, 1  ;;  %v822_v44 = vadd.f32 %v821_v40, %v820_v31 }
 0x1f5   :  { %v1001_v3 = vadd.f32 1e-05, %v985_v14  ;;  %v1002_v39 = vadd.f32 1e-05, %v986_v21  ;;  %v939_v36 = vrot.slane %v938_v17, 2 }
 0x1f6   :  { %v956_v33 = vadd.f32 %v955_v23, %v879_v18  ;;  %v936_v56 = vadd.f32 %v935_v58, %v934_v24  ;;  %v6810_v7 = vmul.f32 0.125, %v822_v44 }
 0x1f7   :  { %5851 = vrsqrt.f32 %v1001_v3  ;;  %v940_v55 = vadd.f32 %v939_v36, %v938_v17  ;;  %v7312_v36 = vcombine.low %v6790_v59, %v6795_v62  ;;  %v6832_v59 = vsub.s32 1, %v6669_v38 }
 0x1f8   :  { %v6808_v28 = vpop.eup %5847  ;;  %5853 = vrsqrt.f32 %v1002_v39  ;;  %v987_v47 = vmul.f32 0.125, %v936_v56  ;;  %v957_v52 = vrot.slane %v956_v33, 2  ;;  %v864_v3 = vsub.f32 %v6743_v37, %v6810_v7 }
 0x1f9   :  { %v941_v63 = vrot.slane %v940_v55, 1  ;;  %v1067_v56 = vrot.slane %v7312_v36, %v6755_v9 }
 0x1fa   :  { %v1003_v5 = vadd.f32 1e-05, %v987_v47  ;;  %v958_v14 = vadd.f32 %v957_v52, %v956_v33  ;;  %v880_v16 = vmul.f32 %v864_v3, %v864_v3 }
 0x1fb   :  { %v6812_v51 = vpop.eup %5849  ;;  %v942_v0 = vadd.f32 %v941_v63, %v940_v55  ;;  %v7313_v63 = vcombine.low %v6775_v60, %v6784_v15  ;;  %v6841_v60 = vsub.s32 4, %v6669_v38  ;;  %v6844_v15 = vsub.s32 5, %v6669_v38 }
 0x1fc   :  { %v961_v21 = vrot.slane %v880_v16, 4  ;;  %5855 = vrsqrt.f32 %v1003_v5  ;;  %v959_v23 = vrot.slane %v958_v14, 1 }
 0x1fd   :  { %v988_v18 = vmul.f32 0.125, %v942_v0  ;;  %v1083_v3 = vrot.slane %v7313_v63, %v6755_v9  ;;  %v735_v0 = vld [vmem:[#allocation9] sm:$0xff] }
 0x1fe   :  { %v962_v39 = vadd.f32 %v961_v21, %v880_v16  ;;  %v960_v33 = vadd.f32 %v959_v23, %v958_v14  ;;  %v6829_v16 = vsub.s32 0, %v6669_v38  ;;  %v6850_v23 = vsub.s32 7, %v6669_v38 }
 0x1ff   :  { %v1004_v24 = vadd.f32 1e-05, %v988_v18 }
 0x200   :  { %v963_v40 = vrot.slane %v962_v39, 2  ;;  %v991_v62 = vmul.f32 0.125, %v960_v33 }
 0x201   :  { %v5852_v17 = vpop.eup %5851  ;;  %5857 = vrsqrt.f32 %v1004_v24  ;;  %v6838_v24 = vsub.s32 3, %v6669_v38 }
 0x202   :  { %v5854_v31 = vpop.eup %5853  ;;  %v964_v44 = vadd.f32 %v963_v40, %v962_v39 }
 0x203   :  { %v1046_v58 = vcombine.low %v5852_v17, %v5854_v31  ;;  %v6835_v17 = vsub.s32 2, %v6669_v38  ;;  %v6847_v31 = vsub.s32 6, %v6669_v38 }
 0x204   :  { %v965_v52 = vrot.slane %v964_v44, 1 }
 0x205   :  { %v1074_v47 = vrot.slane %v1046_v58, %v6755_v9 }
 0x206   :  { %v966_v18 = vadd.f32 %v965_v52, %v964_v44  ;;  %v5856_v14 = vpop.eup %5855 }
 0x207   :  { %v1076_v55 = vcombine.low %v1067_v56, %v1074_v47  ;;  %v1007_v56 = vadd.f32 1e-05, %v991_v62 }
 0x208   :  { %v992_v39 = vmul.f32 0.125, %v966_v18 }
 0x209   :  { %v1090_v5 = vrot.slane %v1076_v55, %v6755_v9  ;;  %5859 = vrsqrt.f32 %v1007_v56 }
 0x20a   :  { %v1008_v47 = vadd.f32 1e-05, %v992_v39 }
 0x20b   :  { %v1091_v21 = vcombine.low %v1083_v3, %v1090_v5  ;;  %v5858_v58 = vpop.eup %5857 }
 0x20c   :  { %v1092_v36 = vcombine.low %v5856_v14, %v5858_v58  ;;  %5861 = vrsqrt.f32 %v1008_v47 }
 0x20d   :  { %v1143_v40 = vmul.f32 %v1091_v21, %v735_v0 }
 0x20f   :  { %v1150_v33 = vrot.slane %v1143_v40, %v6829_v16  ;;  %v1154_v44 = vrot.slane %v1143_v40, %v6832_v59  ;;  %v1158_v55 = vrot.slane %v1143_v40, %v6835_v17  ;;  %v1162_v52 = vrot.slane %v1143_v40, %v6838_v24 }
 0x210   :  { %v1166_v63 = vrot.slane %v1143_v40, %v6841_v60  ;;  %v1170_v3 = vrot.slane %v1143_v40, %v6844_v15  ;;  %v1174_v38 = vrot.slane %v1143_v40, %v6847_v31  ;;  %v1178_v5 = vrot.slane %v1143_v40, %v6850_v23 }
 0x211   :  { %v1227_v0 = vmul.f32 %v1150_v33, %v6678_v48  ;;  %v1228_v62 = vmul.f32 %v1154_v44, %v6681_v53  ;;  %v1229_v18 = vmul.f32 %v1158_v55, %v6710_v29  ;;  %v1230_v14 = vmul.f32 %v1162_v52, %v6712_v35 }
 0x212   :  { %v1231_v21 = vmul.f32 %v1166_v63, %v6722_v22  ;;  %v1232_v39 = vmul.f32 %v1170_v3, %v6724_v27  ;;  %v1233_v58 = vmul.f32 %v1174_v38, %v6769_v46  ;;  %v1234_v45 = vmul.f32 %v1178_v5, %v6771_v54 }
 0x213   :  { %v1259_v42 = vcombine.low %v1227_v0, %v1228_v62  ;;  %v1260_v37 = vcombine.low %v1229_v18, %v1230_v14  ;;  %v1361_v40 = vmul.f32 %v1150_v33, %v6644_v4  ;;  %v1362_v48 = vmul.f32 %v1154_v44, %v6647_v6  ;;  %v737_v44 = vld [vmem:[#allocation10] sm:$0xff] }
 0x214   :  { %v1261_v32 = vcombine.low %v1231_v21, %v1232_v39  ;;  %v1262_v53 = vcombine.low %v1233_v58, %v1234_v45  ;;  %v1363_v29 = vmul.f32 %v1158_v55, %v6662_v26  ;;  %v1364_v35 = vmul.f32 %v1162_v52, %v6665_v30 }
 0x215   :  { %v1269_v22 = vrot.slane %v1259_v42, %v6755_v9  ;;  %v1276_v27 = vrot.slane %v1260_v37, %v6755_v9  ;;  %v1365_v46 = vmul.f32 %v1166_v63, %v6695_v2  ;;  %v1366_v54 = vmul.f32 %v1170_v3, %v6701_v10  ;;  %v5860_v3 = vpop.eup %5859 }
 0x216   :  { %v1283_v0 = vrot.slane %v1261_v32, %v6755_v9  ;;  %v1290_v4 = vrot.slane %v1262_v53, %v6755_v9  ;;  %v1367_v6 = vmul.f32 %v1174_v38, %v6718_v50  ;;  %v1368_v45 = vmul.f32 %v1178_v5, %v6720_v57  ;;  %v5862_v14 = vpop.eup %5861 }
 0x217   :  { %v7314_v26 = vcombine.low %v6759_v20, %v6764_v19  ;;  %v1291_v42 = vcombine.low %v1269_v22, %v1276_v27  ;;  %v1102_v37 = vrot.slane %v1092_v36, %v6755_v9 }
 0x218   :  { %v1292_v33 = vcombine.low %v1283_v0, %v1290_v4  ;;  %v1094_v0 = vcombine.low %v5860_v3, %v5862_v14  ;;  %v7315_v4 = vcombine.low %v6808_v28, %v6812_v51 }
 0x219   :  { %v1109_v30 = vrot.slane %v7314_v26, %v6755_v9  ;;  %v1299_v2 = vrot.slane %v1291_v42, %v6755_v9 }
 0x21a   :  { %v1306_v32 = vrot.slane %v1292_v33, %v6755_v9 }
 0x21b   :  { %v1124_v10 = vcombine.low %v1102_v37, %v1109_v30  ;;  %v736_v37 = vld [vmem:[#allocation9 + $0x8] sm:$0xff] }
 0x21c   :  { %v1307_v50 = vcombine.low %v1299_v2, %v1306_v32 }
 0x21d   :  { %v1132_v30 = vrot.slane %v1124_v10, %v6755_v9 }
 0x21e   :  { %v1359_v55 = vsub.f32 %v737_v44, %v1307_v50 }
 0x220   :  { %v1382_v57 = vrot.slane %v1359_v55, %v6829_v16  ;;  %v1386_v52 = vrot.slane %v1359_v55, %v6832_v59  ;;  %v1390_v20 = vrot.slane %v1359_v55, %v6835_v17  ;;  %v1394_v19 = vrot.slane %v1359_v55, %v6838_v24 }
 0x221   :  { %v1398_v36 = vrot.slane %v1359_v55, %v6841_v60  ;;  %v1402_v56 = vrot.slane %v1359_v55, %v6844_v15  ;;  %v1406_v63 = vrot.slane %v1359_v55, %v6847_v31  ;;  %v1410_v47 = vrot.slane %v1359_v55, %v6850_v23 }
 0x222   :  { %v6895_v38 = vadd.f32 %v1382_v57, %v1361_v40  ;;  %v6897_v5 = vadd.f32 %v1386_v52, %v1362_v48  ;;  %v6899_v62 = vadd.f32 %v1390_v20, %v1363_v29  ;;  %v6901_v18 = vadd.f32 %v1394_v19, %v1364_v35 }
 0x223   :  { %v6903_v21 = vadd.f32 %v1398_v36, %v1365_v46  ;;  %v6905_v39 = vadd.f32 %v1402_v56, %v1366_v54  ;;  %v6907_v58 = vadd.f32 %v1406_v63, %v1367_v6  ;;  %v6909_v53 = vadd.f32 %v1410_v47, %v1368_v45 }
 0x224   :  { %v1475_v22 = vmax.f32 %v6895_v38, 0.0  ;;  %v1476_v40 = vmax.f32 %v6897_v5, 0.0  ;;  %v1477_v48 = vmax.f32 %v6899_v62, 0.0  ;;  %v1478_v29 = vmax.f32 %v6901_v18, 0.0 }
 0x225   :  { %v1479_v35 = vmax.f32 %v6903_v21, 0.0  ;;  %v1480_v27 = vmax.f32 %v6905_v39, 0.0  ;;  %v1481_v46 = vmax.f32 %v6907_v58, 0.0  ;;  %v1482_v54 = vmax.f32 %v6909_v53, 0.0 }
 0x226   :  { %v1123_v6 = vrot.slane %v7315_v4, %v6755_v9  ;;  %v1116_v45 = vrot.slane %v1094_v0, %v6755_v9 }
 0x228   :  { %v1125_v26 = vcombine.low %v1116_v45, %v1123_v6  ;;  %v7316_v45 = vld [vmem:[#allocation35_spill] sm:$0xff] }
 0x22a   :  { %v1139_v42 = vrot.slane %v1125_v26, %v6755_v9  ;;  %v7317_v26 = vld [vmem:[#allocation36_spill] sm:$0xff] }
 0x22c   :  { %v1140_v33 = vcombine.low %v1132_v30, %v1139_v42  ;;  %v7318_v42 = vld [vmem:[#allocation33_spill] sm:$0xff] }
 0x22e   :  { %v1144_v2 = vmul.f32 %v1140_v33, %v736_v37  ;;  %v7319_v37 = vld [vmem:[#allocation34_spill] sm:$0xff] }
 0x230   :  { %v1182_v32 = vrot.slane %v1144_v2, %v6829_v16  ;;  %v1186_v44 = vrot.slane %v1144_v2, %v6832_v59  ;;  %v1190_v50 = vrot.slane %v1144_v2, %v6835_v17  ;;  %v1194_v55 = vrot.slane %v1144_v2, %v6838_v24 }
 0x231   :  { %v1198_v28 = vrot.slane %v1144_v2, %v6841_v60  ;;  %v1202_v51 = vrot.slane %v1144_v2, %v6844_v15  ;;  %v1206_v57 = vrot.slane %v1144_v2, %v6847_v31  ;;  %v1210_v10 = vrot.slane %v1144_v2, %v6850_v23 }
 0x232   :  { %v1235_v52 = vmul.f32 %v1182_v32, %v6788_v43  ;;  %v1236_v20 = vmul.f32 %v1186_v44, %v6799_v25  ;;  %v1237_v19 = vmul.f32 %v1190_v50, %v6693_v1  ;;  %v1238_v36 = vmul.f32 %v1194_v55, %v6698_v8 }
 0x233   :  { %v1239_v56 = vmul.f32 %v1198_v28, %v6803_v34  ;;  %v1240_v63 = vmul.f32 %v1202_v51, %v6810_v7  ;;  %v1241_v47 = vmul.f32 %v1206_v57, %v6746_v61  ;;  %v1242_v3 = vmul.f32 %v1210_v10, %v6757_v12 }
 0x234   :  { %v1308_v14 = vcombine.low %v1235_v52, %v1236_v20  ;;  %v1309_v0 = vcombine.low %v1237_v19, %v1238_v36  ;;  %v1369_v4 = vmul.f32 %v1182_v32, %v6730_v41  ;;  %v1370_v43 = vmul.f32 %v1186_v44, %v6732_v49  ;;  %v738_v44 = vld [vmem:[#allocation10 + $0x8] sm:$0xff] }
 0x235   :  { %v1310_v6 = vcombine.low %v1239_v56, %v1240_v63  ;;  %v1311_v25 = vcombine.low %v1241_v47, %v1242_v3  ;;  %v1371_v1 = vmul.f32 %v1190_v50, %v6651_v11  ;;  %v1372_v8 = vmul.f32 %v1194_v55, %v6655_v13 }
 0x236   :  { %v1318_v34 = vrot.slane %v1308_v14, %v6755_v9  ;;  %v1325_v7 = vrot.slane %v1309_v0, %v6755_v9  ;;  %v1373_v61 = vmul.f32 %v1198_v28, %v7316_v45  ;;  %v1374_v12 = vmul.f32 %v1202_v51, %v7317_v26 }
 0x237   :  { %v1332_v30 = vrot.slane %v1310_v6, %v6755_v9  ;;  %v1339_v41 = vrot.slane %v1311_v25, %v6755_v9  ;;  %v1375_v49 = vmul.f32 %v1206_v57, %v7318_v42  ;;  %v1376_v33 = vmul.f32 %v1210_v10, %v7319_v37 }
 0x238   :  { %v1340_v2 = vcombine.low %v1318_v34, %v1325_v7 }
 0x239   :  { %v1341_v11 = vcombine.low %v1332_v30, %v1339_v41 }
 0x23a   :  { %v1348_v13 = vrot.slane %v1340_v2, %v6755_v9 }
 0x23b   :  { %v1355_v32 = vrot.slane %v1341_v11, %v6755_v9 }
 0x23d   :  { %v1356_v50 = vcombine.low %v1348_v13, %v1355_v32 }
 0x23f   :  { %v1360_v55 = vsub.f32 %v738_v44, %v1356_v50 }
 0x241   :  { %v1414_v28 = vrot.slane %v1360_v55, %v6829_v16  ;;  %v1418_v51 = vrot.slane %v1360_v55, %v6832_v59  ;;  %v1422_v52 = vrot.slane %v1360_v55, %v6835_v17  ;;  %v1426_v20 = vrot.slane %v1360_v55, %v6838_v24 }
 0x242   :  { %v1430_v57 = vrot.slane %v1360_v55, %v6841_v60  ;;  %v1434_v10 = vrot.slane %v1360_v55, %v6844_v15  ;;  %v1438_v19 = vrot.slane %v1360_v55, %v6847_v31  ;;  %v1442_v36 = vrot.slane %v1360_v55, %v6850_v23 }
 0x243   :  { %v6964_v56 = vadd.f32 %v1414_v28, %v1369_v4  ;;  %v6966_v63 = vadd.f32 %v1418_v51, %v1370_v43  ;;  %v6968_v47 = vadd.f32 %v1422_v52, %v1371_v1  ;;  %v6970_v3 = vadd.f32 %v1426_v20, %v1372_v8 }
 0x244   :  { %v6972_v14 = vadd.f32 %v1430_v57, %v1373_v61  ;;  %v6974_v0 = vadd.f32 %v1434_v10, %v1374_v12  ;;  %v6976_v6 = vadd.f32 %v1438_v19, %v1375_v49  ;;  %v6978_v25 = vadd.f32 %v1442_v36, %v1376_v33 }
 0x245   :  { %v1483_v34 = vmax.f32 %v6964_v56, 0.0  ;;  %v1484_v7 = vmax.f32 %v6966_v63, 0.0  ;;  %v1485_v4 = vmax.f32 %v6968_v47, 0.0  ;;  %v1486_v43 = vmax.f32 %v6970_v3, 0.0 }
 0x246   :  { %v1487_v1 = vmax.f32 %v6972_v14, 0.0  ;;  %v1488_v8 = vmax.f32 %v6974_v0, 0.0  ;;  %v1489_v45 = vmax.f32 %v6976_v6, 0.0  ;;  %v1490_v61 = vmax.f32 %v6978_v25, 0.0 }
 0x247   :  { %6367 = dma.done.wait [#allocation3], 131072 }
 0x248   :  { %6368 = vsyncadd [#allocation3], 4294836224  ;;  %v6991_v26 = vpack.c.bf16 %v1476_v40, %v1476_v40  ;;  %v6996_v12 = vpack.c.bf16 %v1480_v27, %v1480_v27  ;;  %v1512_v30 = vld [vmem:[#allocation2 + $0x8] sm:$0xff]  ;;  %v1511_v42 = vld [vmem:[#allocation2] sm:$0xff]  ;;  %v7013_v38 = vpack.c.bf16 %v1478_v29, %v1478_v29  ;;  %v7018_v21 = vpack.c.bf16 %v1482_v54, %v1482_v54  ;;  %s6394_s4 = smov [#allocation22]  }
 0x249   :  { %v1768_v41 = vld [vmem:[#allocation2 + $0x808] sm:$0xff]  ;;  %2535 = vmatprep.subr.bf16.mxu1 %v1512_v30  ;;  %v1767_v49 = vld [vmem:[#allocation2 + $0x800] sm:$0xff]  ;;  %v7037_v62 = vpack.c.bf16 %v1484_v7, %v1484_v7  ;;  %v1529_v7 = vld [vmem:[#allocation2 + $0x90] sm:$0xff]  ;;  %s5455_s14 = sshll.u32 %s6394_s4, 4  ;;  %s5456_s14 = int_to_ptr.vmem [resolvable:$true] %s5455_s14 }
 0x24a   :  { %2567 = vmatprep.mubr.bf16.mxu1 %v6991_v26  ;;  %2649 = vmatprep.mubr.bf16.mxu0 %v6996_v12  ;;  %v1520_v37 = vld [vmem:[#allocation2 + $0x48] sm:$0xff]  ;;  %v1519_v39 = vld [vmem:[#allocation2 + $0x40] sm:$0xff]  ;;  %v2033_v6 = vld [vmem:[#allocation2 + $0x1050] sm:$0xff]  ;;  %s6333_s8 = scalar_lea.vmem %s5456_s14, 128  ;;  %p6338_p5 = scmp.lt.s32.totalorder %s5456_s14, %s5456_s14 }
 0x24b   :  { %2617 = vmatprep.subr.bf16.mxu0 %v1768_v41  ;;  %v1776_v5 = vld [vmem:[#allocation2 + $0x848] sm:$0xff]  ;;  %2536 = vmatpush1.bf16.msra.mxu1 %v1511_v42  ;;  %v1775_v40 = vld [vmem:[#allocation2 + $0x840] sm:$0xff]  ;;  %p6334_p4 = scmp.ne.s32.totalorder %s5456_s14, %s6333_s8  ;;  %p6339_p6 = scmp.lt.s32.totalorder %s6333_s8, %s6333_s8 }
 0x24c   :  { %2618 = vmatpush1.bf16.msra.mxu0 %v1767_v49  ;;  %2537 = vmatprep.subr.bf16.mxu1 %v1520_v37  ;;  %v1528_v27 = vld [vmem:[#allocation2 + $0x88] sm:$0xff]  ;;  %v1527_v2 = vld [vmem:[#allocation2 + $0x80] sm:$0xff] }
 0x24d   :  { %2619 = vmatprep.subr.bf16.mxu0 %v1776_v5  ;;  %v1784_v33 = vld [vmem:[#allocation2 + $0x888] sm:$0xff]  ;;  %v1783_v11 = vld [vmem:[#allocation2 + $0x880] sm:$0xff]  ;;  %p6340_p7 = por %p6339_p6, %p6338_p5 }
 0x24e   :  { %v1536_v13 = vld [vmem:[#allocation2 + $0xc8] sm:$0xff]  ;;  %v1535_v44 = vld [vmem:[#allocation2 + $0xc0] sm:$0xff] }
 0x24f   :  { %2538 = vmatpush1.bf16.msra.mxu1 %v1519_v39  ;;  %v1792_v32 = vld [vmem:[#allocation2 + $0x8c8] sm:$0xff]  ;;  %v1791_v50 = vld [vmem:[#allocation2 + $0x8c0] sm:$0xff]  ;;  %p6341_p8 = pnand %p6340_p7, %p6334_p4 }
 0x250   :  { %2620 = vmatpush1.bf16.msra.mxu0 %v1775_v40  ;;  %2539 = vmatprep.subr.bf16.mxu1 %v1528_v27  ;;  %v1544_v55 = vld [vmem:[#allocation2 + $0x108] sm:$0xff]  ;;  %v1543_v51 = vld [vmem:[#allocation2 + $0x100] sm:$0xff] }
 0x251   :  { %2621 = vmatprep.subr.bf16.mxu0 %v1784_v33  ;;  %v1800_v28 = vld [vmem:[#allocation2 + $0x908] sm:$0xff]  ;;  %v1799_v52 = vld [vmem:[#allocation2 + $0x900] sm:$0xff] }
 0x252   :  { %v1552_v20 = vld [vmem:[#allocation2 + $0x148] sm:$0xff]  ;;  %v1551_v10 = vld [vmem:[#allocation2 + $0x140] sm:$0xff] }
 0x253   :  { %2540 = vmatpush1.bf16.msra.mxu1 %v1527_v2  ;;  %v1808_v57 = vld [vmem:[#allocation2 + $0x948] sm:$0xff]  ;;  %v1807_v19 = vld [vmem:[#allocation2 + $0x940] sm:$0xff] }
 0x254   :  { %2622 = vmatpush1.bf16.msra.mxu0 %v1783_v11  ;;  %2541 = vmatprep.subr.bf16.mxu1 %v1536_v13  ;;  %v1560_v36 = vld [vmem:[#allocation2 + $0x188] sm:$0xff]  ;;  %v1559_v41 = vld [vmem:[#allocation2 + $0x180] sm:$0xff] }
 0x255   :  { %2623 = vmatprep.subr.bf16.mxu0 %v1792_v32  ;;  %v1816_v30 = vld [vmem:[#allocation2 + $0x988] sm:$0xff]  ;;  %v1815_v42 = vld [vmem:[#allocation2 + $0x980] sm:$0xff] }
 0x256   :  { %v1568_v49 = vld [vmem:[#allocation2 + $0x1c8] sm:$0xff]  ;;  %v1567_v5 = vld [vmem:[#allocation2 + $0x1c0] sm:$0xff] }
 0x257   :  { %2542 = vmatpush1.bf16.msra.mxu1 %v1535_v44  ;;  %v1824_v37 = vld [vmem:[#allocation2 + $0x9c8] sm:$0xff]  ;;  %v1823_v39 = vld [vmem:[#allocation2 + $0x9c0] sm:$0xff] }
 0x258   :  { %2624 = vmatpush1.bf16.msra.mxu0 %v1791_v50  ;;  %2543 = vmatprep.subr.bf16.mxu1 %v1544_v55  ;;  %v1576_v40 = vld [vmem:[#allocation2 + $0x208] sm:$0xff]  ;;  %v1575_v33 = vld [vmem:[#allocation2 + $0x200] sm:$0xff] }
 0x259   :  { %2625 = vmatprep.subr.bf16.mxu0 %v1800_v28  ;;  %v1832_v27 = vld [vmem:[#allocation2 + $0xa08] sm:$0xff]  ;;  %v1831_v2 = vld [vmem:[#allocation2 + $0xa00] sm:$0xff] }
 0x25a   :  { %v1584_v11 = vld [vmem:[#allocation2 + $0x248] sm:$0xff]  ;;  %v1583_v32 = vld [vmem:[#allocation2 + $0x240] sm:$0xff] }
 0x25b   :  { %2544 = vmatpush1.bf16.msra.mxu1 %v1543_v51  ;;  %v1840_v13 = vld [vmem:[#allocation2 + $0xa48] sm:$0xff]  ;;  %v1839_v44 = vld [vmem:[#allocation2 + $0xa40] sm:$0xff] }
 0x25c   :  { %2626 = vmatpush1.bf16.msra.mxu0 %v1799_v52  ;;  %2545 = vmatprep.subr.bf16.mxu1 %v1552_v20  ;;  %v1592_v50 = vld [vmem:[#allocation2 + $0x288] sm:$0xff]  ;;  %v1591_v28 = vld [vmem:[#allocation2 + $0x280] sm:$0xff] }
 0x25d   :  { %2627 = vmatprep.subr.bf16.mxu0 %v1808_v57  ;;  %v1848_v55 = vld [vmem:[#allocation2 + $0xa88] sm:$0xff]  ;;  %v1847_v51 = vld [vmem:[#allocation2 + $0xa80] sm:$0xff] }
 0x25e   :  { %v1600_v52 = vld [vmem:[#allocation2 + $0x2c8] sm:$0xff]  ;;  %v1599_v57 = vld [vmem:[#allocation2 + $0x2c0] sm:$0xff] }
 0x25f   :  { %2546 = vmatpush1.bf16.msra.mxu1 %v1551_v10  ;;  %v1856_v20 = vld [vmem:[#allocation2 + $0xac8] sm:$0xff]  ;;  %v1855_v10 = vld [vmem:[#allocation2 + $0xac0] sm:$0xff] }
 0x260   :  { %2628 = vmatpush1.bf16.msra.mxu0 %v1807_v19  ;;  %2547 = vmatprep.subr.bf16.mxu1 %v1560_v36  ;;  %v1608_v19 = vld [vmem:[#allocation2 + $0x308] sm:$0xff]  ;;  %v1655_v53 = vld [vmem:[#allocation2 + $0x480] sm:$0xff] }
 0x261   :  { %2629 = vmatprep.subr.bf16.mxu0 %v1816_v30  ;;  %v1864_v36 = vld [vmem:[#allocation2 + $0xb08] sm:$0xff]  ;;  %v1607_v30 = vld [vmem:[#allocation2 + $0x300] sm:$0xff] }
 0x262   :  { %v1912_v18 = vld [vmem:[#allocation2 + $0xc88] sm:$0xff]  ;;  %v1911_v29 = vld [vmem:[#allocation2 + $0xc80] sm:$0xff] }
 0x263   :  { %2548 = vmatpush1.bf16.msra.mxu1 %v1559_v41  ;;  %v1863_v41 = vld [vmem:[#allocation2 + $0xb00] sm:$0xff]  ;;  %v1664_v54 = vld [vmem:[#allocation2 + $0x4c8] sm:$0xff] }
 0x264   :  { %2630 = vmatpush1.bf16.msra.mxu0 %v1815_v42  ;;  %2549 = vmatprep.subr.bf16.mxu1 %v1568_v49  ;;  %v1616_v42 = vld [vmem:[#allocation2 + $0x348] sm:$0xff]  ;;  %v2031_v58 = vld [vmem:[#allocation2 + $0x1040] sm:$0xff] }
 0x265   :  { %2631 = vmatprep.subr.bf16.mxu0 %v1824_v37  ;;  %v1872_v49 = vld [vmem:[#allocation2 + $0xb48] sm:$0xff]  ;;  %v1615_v37 = vld [vmem:[#allocation2 + $0x340] sm:$0xff] }
 0x266   :  { %v2039_v63 = vld [vmem:[#allocation2 + $0x1080] sm:$0xff] }
 0x267   :  { %2550 = vmatpush1.bf16.msra.mxu1 %v1567_v5  ;;  %v1871_v5 = vld [vmem:[#allocation2 + $0xb40] sm:$0xff] }
 0x268   :  { %2632 = vmatpush1.bf16.msra.mxu0 %v1823_v39  ;;  %2551 = vmatprep.subr.bf16.mxu1 %v1576_v40  ;;  %v1624_v39 = vld [vmem:[#allocation2 + $0x388] sm:$0xff]  ;;  %v2159_v56 = vld [vmem:[#allocation2 + $0x1440] sm:$0xff] }
 0x269   :  { %2633 = vmatprep.subr.bf16.mxu0 %v1832_v27  ;;  %v1880_v40 = vld [vmem:[#allocation2 + $0xb88] sm:$0xff]  ;;  %v1623_v27 = vld [vmem:[#allocation2 + $0x380] sm:$0xff] }
 0x26a   :  { %v2167_v3 = vld [vmem:[#allocation2 + $0x1480] sm:$0xff] }
 0x26b   :  { %2552 = vmatpush1.bf16.msra.mxu1 %v1575_v33  ;;  %v1879_v33 = vld [vmem:[#allocation2 + $0xb80] sm:$0xff] }
 0x26c   :  { %2634 = vmatpush1.bf16.msra.mxu0 %v1831_v2  ;;  %2553 = vmatprep.subr.bf16.mxu1 %v1584_v11  ;;  %v1632_v2 = vld [vmem:[#allocation2 + $0x3c8] sm:$0xff]  ;;  %v2287_v47 = vld [vmem:[#allocation2 + $0x1840] sm:$0xff] }
 0x26d   :  { %2635 = vmatprep.subr.bf16.mxu0 %v1840_v13  ;;  %v1888_v11 = vld [vmem:[#allocation2 + $0xbc8] sm:$0xff]  ;;  %v1631_v13 = vld [vmem:[#allocation2 + $0x3c0] sm:$0xff] }
 0x26e   :  { %v2295_v0 = vld [vmem:[#allocation2 + $0x1880] sm:$0xff] }
 0x26f   :  { %2554 = vmatpush1.bf16.msra.mxu1 %v1583_v32  ;;  %v1887_v32 = vld [vmem:[#allocation2 + $0xbc0] sm:$0xff] }
 0x270   :  { %2636 = vmatpush1.bf16.msra.mxu0 %v1839_v44  ;;  %2555 = vmatprep.subr.bf16.mxu1 %v1592_v50  ;;  %v1640_v44 = vld [vmem:[#allocation2 + $0x408] sm:$0xff]  ;;  %v2415_v14 = vld [vmem:[#allocation2 + $0x1c40] sm:$0xff] }
 0x271   :  { %2637 = vmatprep.subr.bf16.mxu0 %v1848_v55  ;;  %v1896_v50 = vld [vmem:[#allocation2 + $0xc08] sm:$0xff]  ;;  %v7003_v55 = vpack.c.bf16 %v1475_v22, %v1475_v22  ;;  %v1647_v22 = vld [vmem:[#allocation2 + $0x440] sm:$0xff] }
 0x272   :  { %v2423_v25 = vld [vmem:[#allocation2 + $0x1c80] sm:$0xff] }
 0x273   :  { %2556 = vmatpush1.bf16.msra.mxu1 %v1591_v28  ;;  %v7008_v28 = vpack.c.bf16 %v1479_v35, %v1479_v35  ;;  %v1903_v35 = vld [vmem:[#allocation2 + $0xc40] sm:$0xff] }
 0x274   :  { %2638 = vmatpush1.bf16.msra.mxu0 %v1847_v51  ;;  %2557 = vmatprep.subr.bf16.mxu1 %v1600_v52  ;;  %v1639_v51 = vld [vmem:[#allocation2 + $0x400] sm:$0xff] }
 0x275   :  { %2639 = vmatprep.subr.bf16.mxu0 %v1856_v20  ;;  %v1895_v52 = vld [vmem:[#allocation2 + $0xc00] sm:$0xff]  ;;  %v1648_v20 = vld [vmem:[#allocation2 + $0x448] sm:$0xff] }
 0x277   :  { %2558 = vmatpush1.bf16.msra.mxu1 %v1599_v57  ;;  %v1904_v57 = vld [vmem:[#allocation2 + $0xc48] sm:$0xff] }
 0x278   :  { %2640 = vmatpush1.bf16.msra.mxu0 %v1855_v10  ;;  %2559 = vmatprep.subr.bf16.mxu1 %v1608_v19  ;;  %v1656_v10 = vld [vmem:[#allocation2 + $0x488] sm:$0xff] }
 0x279   :  { %2641 = vmatprep.subr.bf16.mxu0 %v1864_v36  ;;  %v1920_v19 = vld [vmem:[#allocation2 + $0xcc8] sm:$0xff]  ;;  %v1663_v36 = vld [vmem:[#allocation2 + $0x4c0] sm:$0xff] }
 0x27b   :  { %2560 = vmatpush1.bf16.msra.mxu1 %v1607_v30  ;;  %v1919_v30 = vld [vmem:[#allocation2 + $0xcc0] sm:$0xff] }
 0x27c   :  { %2642 = vmatpush1.bf16.msra.mxu0 %v1863_v41  ;;  %2561 = vmatprep.subr.bf16.mxu1 %v1616_v42  ;;  %v1672_v41 = vld [vmem:[#allocation2 + $0x508] sm:$0xff] }
 0x27d   :  { %2643 = vmatprep.subr.bf16.mxu0 %v1872_v49  ;;  %v1928_v42 = vld [vmem:[#allocation2 + $0xd08] sm:$0xff]  ;;  %v1671_v49 = vld [vmem:[#allocation2 + $0x500] sm:$0xff] }
 0x27f   :  { %2562 = vmatpush1.bf16.msra.mxu1 %v1615_v37  ;;  %v1927_v37 = vld [vmem:[#allocation2 + $0xd00] sm:$0xff] }
 0x280   :  { %2644 = vmatpush1.bf16.msra.mxu0 %v1871_v5  ;;  %2563 = vmatprep.subr.bf16.mxu1 %v1624_v39  ;;  %v1680_v5 = vld [vmem:[#allocation2 + $0x548] sm:$0xff] }
 0x281   :  { %2645 = vmatprep.subr.bf16.mxu0 %v1880_v40  ;;  %v1936_v39 = vld [vmem:[#allocation2 + $0xd48] sm:$0xff]  ;;  %v1679_v40 = vld [vmem:[#allocation2 + $0x540] sm:$0xff] }
 0x283   :  { %2564 = vmatpush1.bf16.msra.mxu1 %v1623_v27  ;;  %v1935_v27 = vld [vmem:[#allocation2 + $0xd40] sm:$0xff] }
 0x284   :  { %2646 = vmatpush1.bf16.msra.mxu0 %v1879_v33  ;;  %2565 = vmatprep.subr.bf16.mxu1 %v1632_v2  ;;  %v1688_v33 = vld [vmem:[#allocation2 + $0x588] sm:$0xff] }
 0x285   :  { %2647 = vmatprep.subr.bf16.mxu0 %v1888_v11  ;;  %v1944_v2 = vld [vmem:[#allocation2 + $0xd88] sm:$0xff]  ;;  %v1687_v11 = vld [vmem:[#allocation2 + $0x580] sm:$0xff] }
 0x287   :  { %2566 = vmatpush1.bf16.msra.mxu1 %v1631_v13  ;;  %v1943_v13 = vld [vmem:[#allocation2 + $0xd80] sm:$0xff] }
 0x288   :  { %2648 = vmatpush1.bf16.msra.mxu0 %v1887_v32  ;;  %2576 = vmatprep.subr.bf16.mxu1 %v1640_v44  ;;  %v1696_v32 = vld [vmem:[#allocation2 + $0x5c8] sm:$0xff] }
 0x289   :  { %2658 = vmatprep.subr.bf16.mxu0 %v1896_v50  ;;  %v1952_v44 = vld [vmem:[#allocation2 + $0xdc8] sm:$0xff]  ;;  %v1695_v50 = vld [vmem:[#allocation2 + $0x5c0] sm:$0xff] }
 0x28a   :  { %2568 = vmatmul.mubr.bf16.vlgmr.msra.gmra.mrb[8].mxu1 %v7003_v55 }
 0x28b   :  { %2650 = vmatmul.mubr.bf16.vlgmr.msra.gmra.mrb[24].mxu0 %v7008_v28  ;;  %2577 = vmatpush1.bf16.msra.mxu1 %v1639_v51  ;;  %v1951_v51 = vld [vmem:[#allocation2 + $0xdc0] sm:$0xff] }
 0x28c   :  { %2659 = vmatpush1.bf16.msra.mxu0 %v1895_v52  ;;  %2578 = vmatprep.subr.bf16.mxu1 %v1648_v20  ;;  %v1704_v52 = vld [vmem:[#allocation2 + $0x608] sm:$0xff] }
 0x28d   :  { %2660 = vmatprep.subr.bf16.mxu0 %v1904_v57  ;;  %2608 = vmatprep.mubr.bf16.mxu1 %v7013_v38  ;;  %v1960_v20 = vld [vmem:[#allocation2 + $0xe08] sm:$0xff]  ;;  %v1703_v57 = vld [vmem:[#allocation2 + $0x600] sm:$0xff] }
 0x28e   :  { %2690 = vmatprep.mubr.bf16.mxu0 %v7018_v21 }
 0x28f   :  { %2579 = vmatpush1.bf16.msra.mxu1 %v1647_v22  ;;  %v1959_v22 = vld [vmem:[#allocation2 + $0xe00] sm:$0xff] }
 0x290   :  { %2661 = vmatpush1.bf16.msra.mxu0 %v1903_v35  ;;  %2580 = vmatprep.subr.bf16.mxu1 %v1656_v10  ;;  %v1712_v35 = vld [vmem:[#allocation2 + $0x648] sm:$0xff] }
 0x291   :  { %2662 = vmatprep.subr.bf16.mxu0 %v1912_v18  ;;  %v1968_v10 = vld [vmem:[#allocation2 + $0xe48] sm:$0xff]  ;;  %v1711_v18 = vld [vmem:[#allocation2 + $0x640] sm:$0xff] }
 0x293   :  { %2581 = vmatpush1.bf16.msra.mxu1 %v1655_v53  ;;  %v1967_v53 = vld [vmem:[#allocation2 + $0xe40] sm:$0xff] }
 0x294   :  { %2663 = vmatpush1.bf16.msra.mxu0 %v1911_v29  ;;  %2582 = vmatprep.subr.bf16.mxu1 %v1664_v54  ;;  %v1720_v29 = vld [vmem:[#allocation2 + $0x688] sm:$0xff] }
 0x295   :  { %2664 = vmatprep.subr.bf16.mxu0 %v1920_v19  ;;  %v1976_v54 = vld [vmem:[#allocation2 + $0xe88] sm:$0xff]  ;;  %v1719_v19 = vld [vmem:[#allocation2 + $0x680] sm:$0xff] }
 0x297   :  { %2583 = vmatpush1.bf16.msra.mxu1 %v1663_v36  ;;  %v1975_v36 = vld [vmem:[#allocation2 + $0xe80] sm:$0xff] }
 0x298   :  { %2665 = vmatpush1.bf16.msra.mxu0 %v1919_v30  ;;  %2584 = vmatprep.subr.bf16.mxu1 %v1672_v41  ;;  %v1728_v30 = vld [vmem:[#allocation2 + $0x6c8] sm:$0xff] }
 0x299   :  { %2666 = vmatprep.subr.bf16.mxu0 %v1928_v42  ;;  %v1984_v41 = vld [vmem:[#allocation2 + $0xec8] sm:$0xff]  ;;  %v1727_v42 = vld [vmem:[#allocation2 + $0x6c0] sm:$0xff] }
 0x29b   :  { %2585 = vmatpush1.bf16.msra.mxu1 %v1671_v49  ;;  %v1983_v49 = vld [vmem:[#allocation2 + $0xec0] sm:$0xff] }
 0x29c   :  { %2667 = vmatpush1.bf16.msra.mxu0 %v1927_v37  ;;  %2586 = vmatprep.subr.bf16.mxu1 %v1680_v5  ;;  %v1736_v37 = vld [vmem:[#allocation2 + $0x708] sm:$0xff] }
 0x29d   :  { %2668 = vmatprep.subr.bf16.mxu0 %v1936_v39  ;;  %v1992_v5 = vld [vmem:[#allocation2 + $0xf08] sm:$0xff]  ;;  %v1735_v39 = vld [vmem:[#allocation2 + $0x700] sm:$0xff] }
 0x29f   :  { %2587 = vmatpush1.bf16.msra.mxu1 %v1679_v40  ;;  %v1991_v40 = vld [vmem:[#allocation2 + $0xf00] sm:$0xff] }
 0x2a0   :  { %2669 = vmatpush1.bf16.msra.mxu0 %v1935_v27  ;;  %2588 = vmatprep.subr.bf16.mxu1 %v1688_v33  ;;  %v1744_v27 = vld [vmem:[#allocation2 + $0x748] sm:$0xff] }
 0x2a1   :  { %2670 = vmatprep.subr.bf16.mxu0 %v1944_v2  ;;  %v2000_v33 = vld [vmem:[#allocation2 + $0xf48] sm:$0xff]  ;;  %v1743_v2 = vld [vmem:[#allocation2 + $0x740] sm:$0xff] }
 0x2a3   :  { %2589 = vmatpush1.bf16.msra.mxu1 %v1687_v11  ;;  %v1999_v11 = vld [vmem:[#allocation2 + $0xf40] sm:$0xff] }
 0x2a4   :  { %2671 = vmatpush1.bf16.msra.mxu0 %v1943_v13  ;;  %2590 = vmatprep.subr.bf16.mxu1 %v1696_v32  ;;  %v1752_v13 = vld [vmem:[#allocation2 + $0x788] sm:$0xff] }
 0x2a5   :  { %2672 = vmatprep.subr.bf16.mxu0 %v1952_v44  ;;  %v2008_v32 = vld [vmem:[#allocation2 + $0xf88] sm:$0xff]  ;;  %v1751_v44 = vld [vmem:[#allocation2 + $0x780] sm:$0xff] }
 0x2a7   :  { %2591 = vmatpush1.bf16.msra.mxu1 %v1695_v50  ;;  %v2007_v50 = vld [vmem:[#allocation2 + $0xf80] sm:$0xff] }
 0x2a8   :  { %2673 = vmatpush1.bf16.msra.mxu0 %v1951_v51  ;;  %2592 = vmatprep.subr.bf16.mxu1 %v1704_v52  ;;  %v1760_v51 = vld [vmem:[#allocation2 + $0x7c8] sm:$0xff] }
 0x2a9   :  { %2674 = vmatprep.subr.bf16.mxu0 %v1960_v20  ;;  %v2016_v52 = vld [vmem:[#allocation2 + $0xfc8] sm:$0xff]  ;;  %v1759_v20 = vld [vmem:[#allocation2 + $0x7c0] sm:$0xff] }
 0x2ab   :  { %2593 = vmatpush1.bf16.msra.mxu1 %v1703_v57  ;;  %v2015_v57 = vld [vmem:[#allocation2 + $0xfc0] sm:$0xff] }
 0x2ac   :  { %2675 = vmatpush1.bf16.msra.mxu0 %v1959_v22  ;;  %2594 = vmatprep.subr.bf16.mxu1 %v1712_v35  ;;  %v2024_v22 = vld [vmem:[#allocation2 + $0x1008] sm:$0xff]  ;;  %v1514_v35 = vld [vmem:[#allocation2 + $0x18] sm:$0xff] }
 0x2ad   :  { %2676 = vmatprep.subr.bf16.mxu0 %v1968_v10  ;;  %v7027_v10 = vpack.c.bf16 %v1477_v48, %v1477_v48  ;;  %v1521_v48 = vld [vmem:[#allocation2 + $0x50] sm:$0xff] }
 0x2af   :  { %2595 = vmatpush1.bf16.msra.mxu1 %v1711_v18  ;;  %v7032_v18 = vpack.c.bf16 %v1481_v46, %v1481_v46  ;;  %v2040_v46 = vld [vmem:[#allocation2 + $0x1088] sm:$0xff] }
 0x2b0   :  { %2677 = vmatpush1.bf16.msra.mxu0 %v1967_v53  ;;  %2596 = vmatprep.subr.bf16.mxu1 %v1720_v29  ;;  %v2023_v53 = vld [vmem:[#allocation2 + $0x1000] sm:$0xff]  ;;  %v1513_v29 = vld [vmem:[#allocation2 + $0x10] sm:$0xff] }
 0x2b1   :  { %2678 = vmatprep.subr.bf16.mxu0 %v1976_v54  ;;  %v2032_v54 = vld [vmem:[#allocation2 + $0x1048] sm:$0xff] }
 0x2b3   :  { %2597 = vmatpush1.bf16.msra.mxu1 %v1719_v19  ;;  %v1522_v19 = vld [vmem:[#allocation2 + $0x58] sm:$0xff] }
 0x2b4   :  { %2679 = vmatpush1.bf16.msra.mxu0 %v1975_v36  ;;  %2598 = vmatprep.subr.bf16.mxu1 %v1728_v30  ;;  %v1530_v36 = vld [vmem:[#allocation2 + $0x98] sm:$0xff]  ;;  %v2048_v30 = vld [vmem:[#allocation2 + $0x10c8] sm:$0xff] }
 0x2b5   :  { %2680 = vmatprep.subr.bf16.mxu0 %v1984_v41  ;;  %v1538_v41 = vld [vmem:[#allocation2 + $0xd8] sm:$0xff] }
 0x2b7   :  { %2599 = vmatpush1.bf16.msra.mxu1 %v1727_v42  ;;  %v2047_v42 = vld [vmem:[#allocation2 + $0x10c0] sm:$0xff] }
 0x2b8   :  { %2681 = vmatpush1.bf16.msra.mxu0 %v1983_v49  ;;  %2600 = vmatprep.subr.bf16.mxu1 %v1736_v37  ;;  %v1537_v49 = vld [vmem:[#allocation2 + $0xd0] sm:$0xff]  ;;  %v2056_v37 = vld [vmem:[#allocation2 + $0x1108] sm:$0xff] }
 0x2b9   :  { %2682 = vmatprep.subr.bf16.mxu0 %v1992_v5  ;;  %v1546_v5 = vld [vmem:[#allocation2 + $0x118] sm:$0xff] }
 0x2bb   :  { %2601 = vmatpush1.bf16.msra.mxu1 %v1735_v39  ;;  %v2055_v39 = vld [vmem:[#allocation2 + $0x1100] sm:$0xff] }
 0x2bc   :  { %2683 = vmatpush1.bf16.msra.mxu0 %v1991_v40  ;;  %2602 = vmatprep.subr.bf16.mxu1 %v1744_v27  ;;  %v1545_v40 = vld [vmem:[#allocation2 + $0x110] sm:$0xff]  ;;  %v2064_v27 = vld [vmem:[#allocation2 + $0x1148] sm:$0xff] }
 0x2bd   :  { %2684 = vmatprep.subr.bf16.mxu0 %v2000_v33  ;;  %v1554_v33 = vld [vmem:[#allocation2 + $0x158] sm:$0xff] }
 0x2bf   :  { %2603 = vmatpush1.bf16.msra.mxu1 %v1743_v2  ;;  %v2063_v2 = vld [vmem:[#allocation2 + $0x1140] sm:$0xff] }
 0x2c0   :  { %2685 = vmatpush1.bf16.msra.mxu0 %v1999_v11  ;;  %2604 = vmatprep.subr.bf16.mxu1 %v1752_v13  ;;  %v1553_v11 = vld [vmem:[#allocation2 + $0x150] sm:$0xff]  ;;  %v2072_v13 = vld [vmem:[#allocation2 + $0x1188] sm:$0xff] }
 0x2c1   :  { %2686 = vmatprep.subr.bf16.mxu0 %v2008_v32  ;;  %v1562_v32 = vld [vmem:[#allocation2 + $0x198] sm:$0xff] }
 0x2c3   :  { %2605 = vmatpush1.bf16.msra.mxu1 %v1751_v44  ;;  %v2071_v44 = vld [vmem:[#allocation2 + $0x1180] sm:$0xff] }
 0x2c4   :  { %2687 = vmatpush1.bf16.msra.mxu0 %v2007_v50  ;;  %2606 = vmatprep.subr.bf16.mxu1 %v1760_v51  ;;  %v1561_v50 = vld [vmem:[#allocation2 + $0x190] sm:$0xff]  ;;  %v2080_v51 = vld [vmem:[#allocation2 + $0x11c8] sm:$0xff] }
 0x2c5   :  { %2688 = vmatprep.subr.bf16.mxu0 %v2016_v52  ;;  %v1570_v52 = vld [vmem:[#allocation2 + $0x1d8] sm:$0xff] }
 0x2c7   :  { %2607 = vmatpush1.bf16.msra.mxu1 %v1759_v20  ;;  %v2079_v20 = vld [vmem:[#allocation2 + $0x11c0] sm:$0xff] }
 0x2c8   :  { %2689 = vmatpush1.bf16.msra.mxu0 %v2015_v57  ;;  %2863 = vmatprep.subr.bf16.mxu1 %v1514_v35  ;;  %v1569_v57 = vld [vmem:[#allocation2 + $0x1d0] sm:$0xff]  ;;  %v1578_v35 = vld [vmem:[#allocation2 + $0x218] sm:$0xff] }
 0x2c9   :  { %2699 = vmatprep.subr.bf16.mxu0 %v2024_v22  ;;  %v2088_v22 = vld [vmem:[#allocation2 + $0x1208] sm:$0xff] }
 0x2ca   :  { %2609 = vmatmul.mubr.bf16.vlgmr.msra.gmra.mrb[8].mxu1 %v7027_v10 }
 0x2cb   :  { %2691 = vmatmul.mubr.bf16.vlgmr.msra.gmra.mrb[24].mxu0 %v7032_v18  ;;  %2864 = vmatpush1.bf16.msra.mxu1 %v1513_v29  ;;  %v1577_v29 = vld [vmem:[#allocation2 + $0x210] sm:$0xff] }
 0x2cc   :  { %2700 = vmatpush1.bf16.msra.mxu0 %v2023_v53  ;;  %2865 = vmatprep.subr.bf16.mxu1 %v1522_v19  ;;  %v2087_v53 = vld [vmem:[#allocation2 + $0x1200] sm:$0xff]  ;;  %v1586_v19 = vld [vmem:[#allocation2 + $0x258] sm:$0xff] }
 0x2cd   :  { %2701 = vmatprep.subr.bf16.mxu0 %v2032_v54  ;;  %2731 = vmatprep.mubr.bf16.mxu0 %v7037_v62  ;;  %v2096_v54 = vld [vmem:[#allocation2 + $0x1248] sm:$0xff] }
 0x2ce   :  { %2895 = vmatprep.mubr.bf16.mxu1 %v6991_v26 }
 0x2cf   :  { %2866 = vmatpush1.bf16.msra.mxu1 %v1521_v48  ;;  %v1585_v48 = vld [vmem:[#allocation2 + $0x250] sm:$0xff] }
 0x2d0   :  { %2702 = vmatpush1.bf16.msra.mxu0 %v2031_v58  ;;  %2867 = vmatprep.subr.bf16.mxu1 %v1530_v36  ;;  %v2095_v58 = vld [vmem:[#allocation2 + $0x1240] sm:$0xff]  ;;  %v1594_v36 = vld [vmem:[#allocation2 + $0x298] sm:$0xff] }
 0x2d1   :  { %2703 = vmatprep.subr.bf16.mxu0 %v2040_v46  ;;  %v2104_v46 = vld [vmem:[#allocation2 + $0x1288] sm:$0xff] }
 0x2d3   :  { %2868 = vmatpush1.bf16.msra.mxu1 %v1529_v7  ;;  %v1593_v7 = vld [vmem:[#allocation2 + $0x290] sm:$0xff] }
 0x2d4   :  { %2704 = vmatpush1.bf16.msra.mxu0 %v2039_v63  ;;  %2869 = vmatprep.subr.bf16.mxu1 %v1538_v41  ;;  %v2103_v63 = vld [vmem:[#allocation2 + $0x1280] sm:$0xff]  ;;  %v1602_v41 = vld [vmem:[#allocation2 + $0x2d8] sm:$0xff] }
 0x2d5   :  { %2705 = vmatprep.subr.bf16.mxu0 %v2048_v30  ;;  %v2112_v30 = vld [vmem:[#allocation2 + $0x12c8] sm:$0xff] }
 0x2d7   :  { %2870 = vmatpush1.bf16.msra.mxu1 %v1537_v49  ;;  %v1601_v49 = vld [vmem:[#allocation2 + $0x2d0] sm:$0xff] }
 0x2d8   :  { %2706 = vmatpush1.bf16.msra.mxu0 %v2047_v42  ;;  %2871 = vmatprep.subr.bf16.mxu1 %v1546_v5  ;;  %v2111_v42 = vld [vmem:[#allocation2 + $0x12c0] sm:$0xff]  ;;  %v1610_v5 = vld [vmem:[#allocation2 + $0x318] sm:$0xff] }
 0x2d9   :  { %2707 = vmatprep.subr.bf16.mxu0 %v2056_v37  ;;  %v2120_v37 = vld [vmem:[#allocation2 + $0x1308] sm:$0xff] }
 0x2db   :  { %2872 = vmatpush1.bf16.msra.mxu1 %v1545_v40  ;;  %v1609_v40 = vld [vmem:[#allocation2 + $0x310] sm:$0xff] }
 0x2dc   :  { %2708 = vmatpush1.bf16.msra.mxu0 %v2055_v39  ;;  %2873 = vmatprep.subr.bf16.mxu1 %v1554_v33  ;;  %v2119_v39 = vld [vmem:[#allocation2 + $0x1300] sm:$0xff]  ;;  %v1618_v33 = vld [vmem:[#allocation2 + $0x358] sm:$0xff] }
 0x2dd   :  { %2709 = vmatprep.subr.bf16.mxu0 %v2064_v27  ;;  %v2128_v27 = vld [vmem:[#allocation2 + $0x1348] sm:$0xff] }
 0x2df   :  { %2874 = vmatpush1.bf16.msra.mxu1 %v1553_v11  ;;  %v1617_v11 = vld [vmem:[#allocation2 + $0x350] sm:$0xff] }
 0x2e0   :  { %2710 = vmatpush1.bf16.msra.mxu0 %v2063_v2  ;;  %2875 = vmatprep.subr.bf16.mxu1 %v1562_v32  ;;  %v2127_v2 = vld [vmem:[#allocation2 + $0x1340] sm:$0xff]  ;;  %v1626_v32 = vld [vmem:[#allocation2 + $0x398] sm:$0xff] }
 0x2e1   :  { %2711 = vmatprep.subr.bf16.mxu0 %v2072_v13  ;;  %v2136_v13 = vld [vmem:[#allocation2 + $0x1388] sm:$0xff] }
 0x2e3   :  { %2876 = vmatpush1.bf16.msra.mxu1 %v1561_v50  ;;  %v1625_v50 = vld [vmem:[#allocation2 + $0x390] sm:$0xff] }
 0x2e4   :  { %2712 = vmatpush1.bf16.msra.mxu0 %v2071_v44  ;;  %2877 = vmatprep.subr.bf16.mxu1 %v1570_v52  ;;  %v2135_v44 = vld [vmem:[#allocation2 + $0x1380] sm:$0xff]  ;;  %v1634_v52 = vld [vmem:[#allocation2 + $0x3d8] sm:$0xff] }
 0x2e5   :  { %2713 = vmatprep.subr.bf16.mxu0 %v2080_v51  ;;  %v2144_v51 = vld [vmem:[#allocation2 + $0x13c8] sm:$0xff] }
 0x2e7   :  { %2878 = vmatpush1.bf16.msra.mxu1 %v1569_v57  ;;  %v1633_v57 = vld [vmem:[#allocation2 + $0x3d0] sm:$0xff] }
 0x2e8   :  { %2714 = vmatpush1.bf16.msra.mxu0 %v2079_v20  ;;  %2879 = vmatprep.subr.bf16.mxu1 %v1578_v35  ;;  %v2143_v20 = vld [vmem:[#allocation2 + $0x13c0] sm:$0xff]  ;;  %v1642_v35 = vld [vmem:[#allocation2 + $0x418] sm:$0xff] }
 0x2e9   :  { %2715 = vmatprep.subr.bf16.mxu0 %v2088_v22  ;;  %v2152_v22 = vld [vmem:[#allocation2 + $0x1408] sm:$0xff] }
 0x2eb   :  { %2880 = vmatpush1.bf16.msra.mxu1 %v1577_v29  ;;  %v2151_v29 = vld [vmem:[#allocation2 + $0x1400] sm:$0xff] }
 0x2ec   :  { %2716 = vmatpush1.bf16.msra.mxu0 %v2087_v53  ;;  %2881 = vmatprep.subr.bf16.mxu1 %v1586_v19  ;;  %v7046_v53 = vpack.c.bf16 %v1483_v34, %v1483_v34  ;;  %v2160_v19 = vld [vmem:[#allocation2 + $0x1448] sm:$0xff]  ;;  %v1649_v34 = vld [vmem:[#allocation2 + $0x450] sm:$0xff] }
 0x2ed   :  { %2717 = vmatprep.subr.bf16.mxu0 %v2096_v54  ;;  %v1641_v54 = vld [vmem:[#allocation2 + $0x410] sm:$0xff] }
 0x2ef   :  { %2882 = vmatpush1.bf16.msra.mxu1 %v1585_v48  ;;  %v7051_v48 = vpack.c.bf16 %v1486_v43, %v1486_v43  ;;  %v1657_v43 = vld [vmem:[#allocation2 + $0x490] sm:$0xff] }
 0x2f0   :  { %2718 = vmatpush1.bf16.msra.mxu0 %v2095_v58  ;;  %2883 = vmatprep.subr.bf16.mxu1 %v1594_v36  ;;  %v1650_v58 = vld [vmem:[#allocation2 + $0x458] sm:$0xff] }
 0x2f1   :  { %2719 = vmatprep.subr.bf16.mxu0 %v2104_v46  ;;  %v2168_v46 = vld [vmem:[#allocation2 + $0x1488] sm:$0xff]  ;;  %v1658_v36 = vld [vmem:[#allocation2 + $0x498] sm:$0xff] }
 0x2f3   :  { %2884 = vmatpush1.bf16.msra.mxu1 %v1593_v7  ;;  %v1666_v7 = vld [vmem:[#allocation2 + $0x4d8] sm:$0xff] }
 0x2f4   :  { %2720 = vmatpush1.bf16.msra.mxu0 %v2103_v63  ;;  %2885 = vmatprep.subr.bf16.mxu1 %v1602_v41  ;;  %v2176_v63 = vld [vmem:[#allocation2 + $0x14c8] sm:$0xff]  ;;  %v1665_v41 = vld [vmem:[#allocation2 + $0x4d0] sm:$0xff] }
 0x2f5   :  { %2721 = vmatprep.subr.bf16.mxu0 %v2112_v30  ;;  %v2175_v30 = vld [vmem:[#allocation2 + $0x14c0] sm:$0xff] }
 0x2f7   :  { %2886 = vmatpush1.bf16.msra.mxu1 %v1601_v49  ;;  %v1674_v49 = vld [vmem:[#allocation2 + $0x518] sm:$0xff] }
 0x2f8   :  { %2722 = vmatpush1.bf16.msra.mxu0 %v2111_v42  ;;  %2887 = vmatprep.subr.bf16.mxu1 %v1610_v5  ;;  %v2184_v42 = vld [vmem:[#allocation2 + $0x1508] sm:$0xff]  ;;  %v1673_v5 = vld [vmem:[#allocation2 + $0x510] sm:$0xff] }
 0x2f9   :  { %2723 = vmatprep.subr.bf16.mxu0 %v2120_v37  ;;  %v2183_v37 = vld [vmem:[#allocation2 + $0x1500] sm:$0xff] }
 0x2fb   :  { %2888 = vmatpush1.bf16.msra.mxu1 %v1609_v40  ;;  %v1682_v40 = vld [vmem:[#allocation2 + $0x558] sm:$0xff] }
 0x2fc   :  { %2724 = vmatpush1.bf16.msra.mxu0 %v2119_v39  ;;  %2889 = vmatprep.subr.bf16.mxu1 %v1618_v33  ;;  %v2192_v39 = vld [vmem:[#allocation2 + $0x1548] sm:$0xff]  ;;  %v1681_v33 = vld [vmem:[#allocation2 + $0x550] sm:$0xff] }
 0x2fd   :  { %2725 = vmatprep.subr.bf16.mxu0 %v2128_v27  ;;  %v2191_v27 = vld [vmem:[#allocation2 + $0x1540] sm:$0xff] }
 0x2ff   :  { %2890 = vmatpush1.bf16.msra.mxu1 %v1617_v11  ;;  %v1690_v11 = vld [vmem:[#allocation2 + $0x598] sm:$0xff] }
 0x300   :  { %2726 = vmatpush1.bf16.msra.mxu0 %v2127_v2  ;;  %2891 = vmatprep.subr.bf16.mxu1 %v1626_v32  ;;  %v2200_v2 = vld [vmem:[#allocation2 + $0x1588] sm:$0xff]  ;;  %v1689_v32 = vld [vmem:[#allocation2 + $0x590] sm:$0xff] }
 0x301   :  { %2727 = vmatprep.subr.bf16.mxu0 %v2136_v13  ;;  %v2199_v13 = vld [vmem:[#allocation2 + $0x1580] sm:$0xff] }
 0x303   :  { %2892 = vmatpush1.bf16.msra.mxu1 %v1625_v50  ;;  %v1698_v50 = vld [vmem:[#allocation2 + $0x5d8] sm:$0xff] }
 0x304   :  { %2728 = vmatpush1.bf16.msra.mxu0 %v2135_v44  ;;  %2893 = vmatprep.subr.bf16.mxu1 %v1634_v52  ;;  %v2208_v44 = vld [vmem:[#allocation2 + $0x15c8] sm:$0xff]  ;;  %v1697_v52 = vld [vmem:[#allocation2 + $0x5d0] sm:$0xff] }
 0x305   :  { %2729 = vmatprep.subr.bf16.mxu0 %v2144_v51  ;;  %v2207_v51 = vld [vmem:[#allocation2 + $0x15c0] sm:$0xff] }
 0x307   :  { %2894 = vmatpush1.bf16.msra.mxu1 %v1633_v57  ;;  %v1706_v57 = vld [vmem:[#allocation2 + $0x618] sm:$0xff] }
 0x308   :  { %2730 = vmatpush1.bf16.msra.mxu0 %v2143_v20  ;;  %2904 = vmatprep.subr.bf16.mxu1 %v1642_v35  ;;  %v2216_v20 = vld [vmem:[#allocation2 + $0x1608] sm:$0xff]  ;;  %v1705_v35 = vld [vmem:[#allocation2 + $0x610] sm:$0xff] }
 0x309   :  { %2740 = vmatprep.subr.bf16.mxu0 %v2152_v22  ;;  %v2215_v22 = vld [vmem:[#allocation2 + $0x1600] sm:$0xff] }
 0x30a   :  { %2896 = vmatmul.mubr.bf16.vlgmr.msra.gmra.mrb[12].mxu1 %v7003_v55 }
 0x30b   :  { %2732 = vmatmul.mubr.bf16.vlgmr.msra.gmra.mrb[24].mxu0 %v7046_v53  ;;  %2905 = vmatpush1.bf16.msra.mxu1 %v1641_v54  ;;  %v1714_v54 = vld [vmem:[#allocation2 + $0x658] sm:$0xff] }
 0x30c   :  { %2741 = vmatpush1.bf16.msra.mxu0 %v2151_v29  ;;  %2906 = vmatprep.subr.bf16.mxu1 %v1650_v58  ;;  %v2224_v29 = vld [vmem:[#allocation2 + $0x1648] sm:$0xff]  ;;  %v1713_v58 = vld [vmem:[#allocation2 + $0x650] sm:$0xff] }
 0x30d   :  { %2742 = vmatprep.subr.bf16.mxu0 %v2160_v19  ;;  %2772 = vmatprep.mubr.bf16.mxu0 %v7051_v48  ;;  %v2223_v19 = vld [vmem:[#allocation2 + $0x1640] sm:$0xff] }
 0x30e   :  { %2936 = vmatprep.mubr.bf16.mxu1 %v7013_v38 }
 0x30f   :  { %2907 = vmatpush1.bf16.msra.mxu1 %v1649_v34  ;;  %v1722_v34 = vld [vmem:[#allocation2 + $0x698] sm:$0xff] }
 0x310   :  { %2743 = vmatpush1.bf16.msra.mxu0 %v2159_v56  ;;  %2908 = vmatprep.subr.bf16.mxu1 %v1658_v36  ;;  %v2232_v56 = vld [vmem:[#allocation2 + $0x1688] sm:$0xff]  ;;  %v1721_v36 = vld [vmem:[#allocation2 + $0x690] sm:$0xff] }
 0x311   :  { %2744 = vmatprep.subr.bf16.mxu0 %v2168_v46  ;;  %v2231_v46 = vld [vmem:[#allocation2 + $0x1680] sm:$0xff] }
 0x313   :  { %2909 = vmatpush1.bf16.msra.mxu1 %v1657_v43  ;;  %v1730_v43 = vld [vmem:[#allocation2 + $0x6d8] sm:$0xff] }
 0x314   :  { %2745 = vmatpush1.bf16.msra.mxu0 %v2167_v3  ;;  %2910 = vmatprep.subr.bf16.mxu1 %v1666_v7  ;;  %v2240_v3 = vld [vmem:[#allocation2 + $0x16c8] sm:$0xff]  ;;  %v1729_v7 = vld [vmem:[#allocation2 + $0x6d0] sm:$0xff] }
 0x315   :  { %2746 = vmatprep.subr.bf16.mxu0 %v2176_v63  ;;  %v2239_v63 = vld [vmem:[#allocation2 + $0x16c0] sm:$0xff] }
 0x317   :  { %2911 = vmatpush1.bf16.msra.mxu1 %v1665_v41  ;;  %v1738_v41 = vld [vmem:[#allocation2 + $0x718] sm:$0xff] }
 0x318   :  { %2747 = vmatpush1.bf16.msra.mxu0 %v2175_v30  ;;  %2912 = vmatprep.subr.bf16.mxu1 %v1674_v49  ;;  %v2248_v30 = vld [vmem:[#allocation2 + $0x1708] sm:$0xff]  ;;  %v1737_v49 = vld [vmem:[#allocation2 + $0x710] sm:$0xff] }
 0x319   :  { %2748 = vmatprep.subr.bf16.mxu0 %v2184_v42  ;;  %v2247_v42 = vld [vmem:[#allocation2 + $0x1700] sm:$0xff] }
 0x31b   :  { %2913 = vmatpush1.bf16.msra.mxu1 %v1673_v5  ;;  %v1746_v5 = vld [vmem:[#allocation2 + $0x758] sm:$0xff] }
 0x31c   :  { %2749 = vmatpush1.bf16.msra.mxu0 %v2183_v37  ;;  %2914 = vmatprep.subr.bf16.mxu1 %v1682_v40  ;;  %v2256_v37 = vld [vmem:[#allocation2 + $0x1748] sm:$0xff]  ;;  %v1745_v40 = vld [vmem:[#allocation2 + $0x750] sm:$0xff] }
 0x31d   :  { %2750 = vmatprep.subr.bf16.mxu0 %v2192_v39  ;;  %v2255_v39 = vld [vmem:[#allocation2 + $0x1740] sm:$0xff] }
 0x31f   :  { %2915 = vmatpush1.bf16.msra.mxu1 %v1681_v33  ;;  %v1754_v33 = vld [vmem:[#allocation2 + $0x798] sm:$0xff] }
 0x320   :  { %2751 = vmatpush1.bf16.msra.mxu0 %v2191_v27  ;;  %2916 = vmatprep.subr.bf16.mxu1 %v1690_v11  ;;  %v2264_v27 = vld [vmem:[#allocation2 + $0x1788] sm:$0xff]  ;;  %v1753_v11 = vld [vmem:[#allocation2 + $0x790] sm:$0xff] }
 0x321   :  { %2752 = vmatprep.subr.bf16.mxu0 %v2200_v2  ;;  %v2263_v2 = vld [vmem:[#allocation2 + $0x1780] sm:$0xff] }
 0x323   :  { %2917 = vmatpush1.bf16.msra.mxu1 %v1689_v32  ;;  %v1762_v32 = vld [vmem:[#allocation2 + $0x7d8] sm:$0xff] }
 0x324   :  { %2753 = vmatpush1.bf16.msra.mxu0 %v2199_v13  ;;  %2918 = vmatprep.subr.bf16.mxu1 %v1698_v50  ;;  %v2272_v13 = vld [vmem:[#allocation2 + $0x17c8] sm:$0xff]  ;;  %v1761_v50 = vld [vmem:[#allocation2 + $0x7d0] sm:$0xff] }
 0x325   :  { %2754 = vmatprep.subr.bf16.mxu0 %v2208_v44  ;;  %v2271_v44 = vld [vmem:[#allocation2 + $0x17c0] sm:$0xff] }
 0x327   :  { %2919 = vmatpush1.bf16.msra.mxu1 %v1697_v52  ;;  %v1770_v52 = vld [vmem:[#allocation2 + $0x818] sm:$0xff] }
 0x328   :  { %2755 = vmatpush1.bf16.msra.mxu0 %v2207_v51  ;;  %2920 = vmatprep.subr.bf16.mxu1 %v1706_v57  ;;  %v2280_v51 = vld [vmem:[#allocation2 + $0x1808] sm:$0xff]  ;;  %v2279_v57 = vld [vmem:[#allocation2 + $0x1800] sm:$0xff] }
 0x329   :  { %2756 = vmatprep.subr.bf16.mxu0 %v2216_v20  ;;  %v7060_v20 = vpack.c.bf16 %v1485_v4, %v1485_v4  ;;  %v1777_v4 = vld [vmem:[#allocation2 + $0x850] sm:$0xff] }
 0x32b   :  { %2921 = vmatpush1.bf16.msra.mxu1 %v1705_v35  ;;  %v2288_v35 = vld [vmem:[#allocation2 + $0x1848] sm:$0xff] }
 0x32c   :  { %2757 = vmatpush1.bf16.msra.mxu0 %v2215_v22  ;;  %2922 = vmatprep.subr.bf16.mxu1 %v1714_v54  ;;  %v1769_v22 = vld [vmem:[#allocation2 + $0x810] sm:$0xff]  ;;  %v7065_v54 = vpack.c.bf16 %v1488_v8, %v1488_v8 }
 0x32d   :  { %2758 = vmatprep.subr.bf16.mxu0 %v2224_v29  ;;  %v1778_v29 = vld [vmem:[#allocation2 + $0x858] sm:$0xff]  ;;  %v1785_v8 = vld [vmem:[#allocation2 + $0x890] sm:$0xff] }
 0x32f   :  { %2923 = vmatpush1.bf16.msra.mxu1 %v1713_v58  ;;  %v1786_v58 = vld [vmem:[#allocation2 + $0x898] sm:$0xff] }
 0x330   :  { %2759 = vmatpush1.bf16.msra.mxu0 %v2223_v19  ;;  %2924 = vmatprep.subr.bf16.mxu1 %v1722_v34  ;;  %v2296_v19 = vld [vmem:[#allocation2 + $0x1888] sm:$0xff]  ;;  %v1794_v34 = vld [vmem:[#allocation2 + $0x8d8] sm:$0xff] }
 0x331   :  { %2760 = vmatprep.subr.bf16.mxu0 %v2232_v56  ;;  %v2304_v56 = vld [vmem:[#allocation2 + $0x18c8] sm:$0xff] }
 0x333   :  { %2925 = vmatpush1.bf16.msra.mxu1 %v1721_v36  ;;  %v1793_v36 = vld [vmem:[#allocation2 + $0x8d0] sm:$0xff] }
 0x334   :  { %2761 = vmatpush1.bf16.msra.mxu0 %v2231_v46  ;;  %2926 = vmatprep.subr.bf16.mxu1 %v1730_v43  ;;  %v2303_v46 = vld [vmem:[#allocation2 + $0x18c0] sm:$0xff]  ;;  %v1802_v43 = vld [vmem:[#allocation2 + $0x918] sm:$0xff] }
 0x335   :  { %2762 = vmatprep.subr.bf16.mxu0 %v2240_v3  ;;  %v2312_v3 = vld [vmem:[#allocation2 + $0x1908] sm:$0xff] }
 0x337   :  { %2927 = vmatpush1.bf16.msra.mxu1 %v1729_v7  ;;  %v1801_v7 = vld [vmem:[#allocation2 + $0x910] sm:$0xff] }
 0x338   :  { %2763 = vmatpush1.bf16.msra.mxu0 %v2239_v63  ;;  %2928 = vmatprep.subr.bf16.mxu1 %v1738_v41  ;;  %v2311_v63 = vld [vmem:[#allocation2 + $0x1900] sm:$0xff]  ;;  %v1810_v41 = vld [vmem:[#allocation2 + $0x958] sm:$0xff] }
 0x339   :  { %2764 = vmatprep.subr.bf16.mxu0 %v2248_v30  ;;  %v2320_v30 = vld [vmem:[#allocation2 + $0x1948] sm:$0xff] }
 0x33b   :  { %2929 = vmatpush1.bf16.msra.mxu1 %v1737_v49  ;;  %v1809_v49 = vld [vmem:[#allocation2 + $0x950] sm:$0xff] }
 0x33c   :  { %2765 = vmatpush1.bf16.msra.mxu0 %v2247_v42  ;;  %2930 = vmatprep.subr.bf16.mxu1 %v1746_v5  ;;  %v2319_v42 = vld [vmem:[#allocation2 + $0x1940] sm:$0xff]  ;;  %v1818_v5 = vld [vmem:[#allocation2 + $0x998] sm:$0xff] }
 0x33d   :  { %2766 = vmatprep.subr.bf16.mxu0 %v2256_v37  ;;  %v2328_v37 = vld [vmem:[#allocation2 + $0x1988] sm:$0xff] }
 0x33f   :  { %2931 = vmatpush1.bf16.msra.mxu1 %v1745_v40  ;;  %v1817_v40 = vld [vmem:[#allocation2 + $0x990] sm:$0xff] }
 0x340   :  { %2767 = vmatpush1.bf16.msra.mxu0 %v2255_v39  ;;  %2932 = vmatprep.subr.bf16.mxu1 %v1754_v33  ;;  %v2327_v39 = vld [vmem:[#allocation2 + $0x1980] sm:$0xff]  ;;  %v1826_v33 = vld [vmem:[#allocation2 + $0x9d8] sm:$0xff] }
 0x341   :  { %2768 = vmatprep.subr.bf16.mxu0 %v2264_v27  ;;  %v2336_v27 = vld [vmem:[#allocation2 + $0x19c8] sm:$0xff] }
 0x343   :  { %2933 = vmatpush1.bf16.msra.mxu1 %v1753_v11  ;;  %v1825_v11 = vld [vmem:[#allocation2 + $0x9d0] sm:$0xff] }
 0x344   :  { %2769 = vmatpush1.bf16.msra.mxu0 %v2263_v2  ;;  %2934 = vmatprep.subr.bf16.mxu1 %v1762_v32  ;;  %v2335_v2 = vld [vmem:[#allocation2 + $0x19c0] sm:$0xff]  ;;  %v1834_v32 = vld [vmem:[#allocation2 + $0xa18] sm:$0xff] }
 0x345   :  { %2770 = vmatprep.subr.bf16.mxu0 %v2272_v13  ;;  %v2344_v13 = vld [vmem:[#allocation2 + $0x1a08] sm:$0xff] }
 0x347   :  { %2935 = vmatpush1.bf16.msra.mxu1 %v1761_v50  ;;  %v1833_v50 = vld [vmem:[#allocation2 + $0xa10] sm:$0xff] }
 0x348   :  { %2771 = vmatpush1.bf16.msra.mxu0 %v2271_v44  ;;  %2945 = vmatprep.subr.bf16.mxu1 %v1770_v52  ;;  %v2343_v44 = vld [vmem:[#allocation2 + $0x1a00] sm:$0xff]  ;;  %v1842_v52 = vld [vmem:[#allocation2 + $0xa58] sm:$0xff] }
 0x349   :  { %2781 = vmatprep.subr.bf16.mxu0 %v2280_v51  ;;  %v2352_v51 = vld [vmem:[#allocation2 + $0x1a48] sm:$0xff] }
 0x34a   :  { %2937 = vmatmul.mubr.bf16.vlgmr.msra.gmra.mrb[12].mxu1 %v7027_v10 }
 0x34b   :  { %2773 = vmatmul.mubr.bf16.vlgmr.msra.gmra.mrb[24].mxu0 %v7060_v20  ;;  %2946 = vmatpush1.bf16.msra.mxu1 %v1769_v22  ;;  %v1841_v22 = vld [vmem:[#allocation2 + $0xa50] sm:$0xff] }
 0x34c   :  { %2782 = vmatpush1.bf16.msra.mxu0 %v2279_v57  ;;  %2947 = vmatprep.subr.bf16.mxu1 %v1778_v29  ;;  %v2351_v57 = vld [vmem:[#allocation2 + $0x1a40] sm:$0xff]  ;;  %v1850_v29 = vld [vmem:[#allocation2 + $0xa98] sm:$0xff] }
 0x34d   :  { %2783 = vmatprep.subr.bf16.mxu0 %v2288_v35  ;;  %2813 = vmatprep.mubr.bf16.mxu0 %v7065_v54  ;;  %v2360_v35 = vld [vmem:[#allocation2 + $0x1a88] sm:$0xff] }
 0x34e   :  { %2977 = vmatprep.mubr.bf16.mxu1 %v6996_v12 }
 0x34f   :  { %2948 = vmatpush1.bf16.msra.mxu1 %v1777_v4  ;;  %v1849_v4 = vld [vmem:[#allocation2 + $0xa90] sm:$0xff] }
 0x350   :  { %2784 = vmatpush1.bf16.msra.mxu0 %v2287_v47  ;;  %2949 = vmatprep.subr.bf16.mxu1 %v1786_v58  ;;  %v2359_v47 = vld [vmem:[#allocation2 + $0x1a80] sm:$0xff]  ;;  %v1858_v58 = vld [vmem:[#allocation2 + $0xad8] sm:$0xff] }
 0x351   :  { %2785 = vmatprep.subr.bf16.mxu0 %v2296_v19  ;;  %v2368_v19 = vld [vmem:[#allocation2 + $0x1ac8] sm:$0xff] }
 0x353   :  { %2950 = vmatpush1.bf16.msra.mxu1 %v1785_v8  ;;  %v1857_v8 = vld [vmem:[#allocation2 + $0xad0] sm:$0xff] }
 0x354   :  { %2786 = vmatpush1.bf16.msra.mxu0 %v2295_v0  ;;  %2951 = vmatprep.subr.bf16.mxu1 %v1794_v34  ;;  %v2367_v0 = vld [vmem:[#allocation2 + $0x1ac0] sm:$0xff]  ;;  %v1866_v34 = vld [vmem:[#allocation2 + $0xb18] sm:$0xff] }
 0x355   :  { %2787 = vmatprep.subr.bf16.mxu0 %v2304_v56  ;;  %v2376_v56 = vld [vmem:[#allocation2 + $0x1b08] sm:$0xff] }
 0x357   :  { %2952 = vmatpush1.bf16.msra.mxu1 %v1793_v36  ;;  %v1865_v36 = vld [vmem:[#allocation2 + $0xb10] sm:$0xff] }
 0x358   :  { %2788 = vmatpush1.bf16.msra.mxu0 %v2303_v46  ;;  %2953 = vmatprep.subr.bf16.mxu1 %v1802_v43  ;;  %v2375_v46 = vld [vmem:[#allocation2 + $0x1b00] sm:$0xff]  ;;  %v1874_v43 = vld [vmem:[#allocation2 + $0xb58] sm:$0xff] }
 0x359   :  { %2789 = vmatprep.subr.bf16.mxu0 %v2312_v3  ;;  %v2384_v3 = vld [vmem:[#allocation2 + $0x1b48] sm:$0xff] }
 0x35b   :  { %2954 = vmatpush1.bf16.msra.mxu1 %v1801_v7  ;;  %v1873_v7 = vld [vmem:[#allocation2 + $0xb50] sm:$0xff] }
 0x35c   :  { %2790 = vmatpush1.bf16.msra.mxu0 %v2311_v63  ;;  %2955 = vmatprep.subr.bf16.mxu1 %v1810_v41  ;;  %v2383_v63 = vld [vmem:[#allocation2 + $0x1b40] sm:$0xff]  ;;  %v1882_v41 = vld [vmem:[#allocation2 + $0xb98] sm:$0xff] }
 0x35d   :  { %2791 = vmatprep.subr.bf16.mxu0 %v2320_v30  ;;  %v2392_v30 = vld [vmem:[#allocation2 + $0x1b88] sm:$0xff] }
 0x35f   :  { %2956 = vmatpush1.bf16.msra.mxu1 %v1809_v49  ;;  %v1881_v49 = vld [vmem:[#allocation2 + $0xb90] sm:$0xff] }
 0x360   :  { %2792 = vmatpush1.bf16.msra.mxu0 %v2319_v42  ;;  %2957 = vmatprep.subr.bf16.mxu1 %v1818_v5  ;;  %v2391_v42 = vld [vmem:[#allocation2 + $0x1b80] sm:$0xff]  ;;  %v1890_v5 = vld [vmem:[#allocation2 + $0xbd8] sm:$0xff] }
 0x361   :  { %2793 = vmatprep.subr.bf16.mxu0 %v2328_v37  ;;  %v2400_v37 = vld [vmem:[#allocation2 + $0x1bc8] sm:$0xff] }
 0x363   :  { %2958 = vmatpush1.bf16.msra.mxu1 %v1817_v40  ;;  %v1889_v40 = vld [vmem:[#allocation2 + $0xbd0] sm:$0xff] }
 0x364   :  { %2794 = vmatpush1.bf16.msra.mxu0 %v2327_v39  ;;  %2959 = vmatprep.subr.bf16.mxu1 %v1826_v33  ;;  %v2399_v39 = vld [vmem:[#allocation2 + $0x1bc0] sm:$0xff]  ;;  %v1898_v33 = vld [vmem:[#allocation2 + $0xc18] sm:$0xff] }
 0x365   :  { %2795 = vmatprep.subr.bf16.mxu0 %v2336_v27  ;;  %v2408_v27 = vld [vmem:[#allocation2 + $0x1c08] sm:$0xff] }
 0x367   :  { %2960 = vmatpush1.bf16.msra.mxu1 %v1825_v11  ;;  %v2407_v11 = vld [vmem:[#allocation2 + $0x1c00] sm:$0xff] }
 0x368   :  { %2796 = vmatpush1.bf16.msra.mxu0 %v2335_v2  ;;  %2961 = vmatprep.subr.bf16.mxu1 %v1834_v32  ;;  %v7074_v2 = vpack.c.bf16 %v1487_v1, %v1487_v1  ;;  %v2416_v32 = vld [vmem:[#allocation2 + $0x1c48] sm:$0xff]  ;;  %v1905_v1 = vld [vmem:[#allocation2 + $0xc50] sm:$0xff] }
 0x369   :  { %2797 = vmatprep.subr.bf16.mxu0 %v2344_v13  ;;  %v1897_v13 = vld [vmem:[#allocation2 + $0xc10] sm:$0xff] }
 0x36b   :  { %2962 = vmatpush1.bf16.msra.mxu1 %v1833_v50  ;;  %v7079_v50 = vpack.c.bf16 %v1490_v61, %v1490_v61  ;;  %v1913_v61 = vld [vmem:[#allocation2 + $0xc90] sm:$0xff] }
 0x36c   :  { %2798 = vmatpush1.bf16.msra.mxu0 %v2343_v44  ;;  %2963 = vmatprep.subr.bf16.mxu1 %v1842_v52  ;;  %v1906_v44 = vld [vmem:[#allocation2 + $0xc58] sm:$0xff] }
 0x36d   :  { %2799 = vmatprep.subr.bf16.mxu0 %v2352_v51  ;;  %v2424_v51 = vld [vmem:[#allocation2 + $0x1c88] sm:$0xff]  ;;  %v1914_v52 = vld [vmem:[#allocation2 + $0xc98] sm:$0xff] }
 0x36f   :  { %2964 = vmatpush1.bf16.msra.mxu1 %v1841_v22  ;;  %v1922_v22 = vld [vmem:[#allocation2 + $0xcd8] sm:$0xff] }
 0x370   :  { %2800 = vmatpush1.bf16.msra.mxu0 %v2351_v57  ;;  %2965 = vmatprep.subr.bf16.mxu1 %v1850_v29  ;;  %v2432_v57 = vld [vmem:[#allocation2 + $0x1cc8] sm:$0xff]  ;;  %v1921_v29 = vld [vmem:[#allocation2 + $0xcd0] sm:$0xff] }
 0x371   :  { %2801 = vmatprep.subr.bf16.mxu0 %v2360_v35  ;;  %v2431_v35 = vld [vmem:[#allocation2 + $0x1cc0] sm:$0xff] }
 0x373   :  { %2966 = vmatpush1.bf16.msra.mxu1 %v1849_v4  ;;  %v1930_v4 = vld [vmem:[#allocation2 + $0xd18] sm:$0xff] }
 0x374   :  { %2802 = vmatpush1.bf16.msra.mxu0 %v2359_v47  ;;  %2967 = vmatprep.subr.bf16.mxu1 %v1858_v58  ;;  %v2440_v47 = vld [vmem:[#allocation2 + $0x1d08] sm:$0xff]  ;;  %v1929_v58 = vld [vmem:[#allocation2 + $0xd10] sm:$0xff] }
 0x375   :  { %2803 = vmatprep.subr.bf16.mxu0 %v2368_v19  ;;  %v2439_v19 = vld [vmem:[#allocation2 + $0x1d00] sm:$0xff] }
 0x377   :  { %2968 = vmatpush1.bf16.msra.mxu1 %v1857_v8  ;;  %v1938_v8 = vld [vmem:[#allocation2 + $0xd58] sm:$0xff] }
 0x378   :  { %2804 = vmatpush1.bf16.msra.mxu0 %v2367_v0  ;;  %2969 = vmatprep.subr.bf16.mxu1 %v1866_v34  ;;  %v2448_v0 = vld [vmem:[#allocation2 + $0x1d48] sm:$0xff]  ;;  %v1937_v34 = vld [vmem:[#allocation2 + $0xd50] sm:$0xff] }
 0x379   :  { %2805 = vmatprep.subr.bf16.mxu0 %v2376_v56  ;;  %v2447_v56 = vld [vmem:[#allocation2 + $0x1d40] sm:$0xff] }
 0x37b   :  { %2970 = vmatpush1.bf16.msra.mxu1 %v1865_v36  ;;  %v2456_v36 = vld [vmem:[#allocation2 + $0x1d88] sm:$0xff] }
 0x37c   :  { %2806 = vmatpush1.bf16.msra.mxu0 %v2375_v46  ;;  %2971 = vmatprep.subr.bf16.mxu1 %v1874_v43 }
 0x37d   :  { %2807 = vmatprep.subr.bf16.mxu0 %v2384_v3  ;;  %v1946_v3 = vld [vmem:[#allocation2 + $0xd98] sm:$0xff] }
 0x37f   :  { %2972 = vmatpush1.bf16.msra.mxu1 %v1873_v7 }
 0x380   :  { %2808 = vmatpush1.bf16.msra.mxu0 %v2383_v63  ;;  %2973 = vmatprep.subr.bf16.mxu1 %v1882_v41  ;;  %v1945_v41 = vld [vmem:[#allocation2 + $0xd90] sm:$0xff] }
 0x381   :  { %2809 = vmatprep.subr.bf16.mxu0 %v2392_v30  ;;  %v2455_v30 = vld [vmem:[#allocation2 + $0x1d80] sm:$0xff] }
 0x383   :  { %2974 = vmatpush1.bf16.msra.mxu1 %v1881_v49  ;;  %v1954_v49 = vld [vmem:[#allocation2 + $0xdd8] sm:$0xff] }
 0x384   :  { %2810 = vmatpush1.bf16.msra.mxu0 %v2391_v42  ;;  %2975 = vmatprep.subr.bf16.mxu1 %v1890_v5  ;;  %v2464_v42 = vld [vmem:[#allocation2 + $0x1dc8] sm:$0xff]  ;;  %v1953_v5 = vld [vmem:[#allocation2 + $0xdd0] sm:$0xff] }
 0x385   :  { %2811 = vmatprep.subr.bf16.mxu0 %v2400_v37  ;;  %v2463_v37 = vld [vmem:[#allocation2 + $0x1dc0] sm:$0xff] }
 0x387   :  { %2976 = vmatpush1.bf16.msra.mxu1 %v1889_v40  ;;  %v1962_v40 = vld [vmem:[#allocation2 + $0xe18] sm:$0xff] }
 0x388   :  { %2812 = vmatpush1.bf16.msra.mxu0 %v2399_v39  ;;  %2986 = vmatprep.subr.bf16.mxu1 %v1898_v33  ;;  %v2472_v39 = vld [vmem:[#allocation2 + $0x1e08] sm:$0xff]  ;;  %v1961_v33 = vld [vmem:[#allocation2 + $0xe10] sm:$0xff] }
 0x389   :  { %2822 = vmatprep.subr.bf16.mxu0 %v2408_v27  ;;  %v2471_v27 = vld [vmem:[#allocation2 + $0x1e00] sm:$0xff] }
 0x38a   :  { %2978 = vmatmul.mubr.bf16.vlgmr.msra.gmra.mrb[12].mxu1 %v7008_v28 }
 0x38b   :  { %2814 = vmatmul.mubr.bf16.vlgmr.msra.gmra.mrb[24].mxu0 %v7074_v2  ;;  %2987 = vmatpush1.bf16.msra.mxu1 %v1897_v13  ;;  %v1970_v13 = vld [vmem:[#allocation2 + $0xe58] sm:$0xff] }
 0x38c   :  { %2823 = vmatpush1.bf16.msra.mxu0 %v2407_v11  ;;  %2988 = vmatprep.subr.bf16.mxu1 %v1906_v44  ;;  %v2480_v11 = vld [vmem:[#allocation2 + $0x1e48] sm:$0xff]  ;;  %v1969_v44 = vld [vmem:[#allocation2 + $0xe50] sm:$0xff] }
 0x38d   :  { %2824 = vmatprep.subr.bf16.mxu0 %v2416_v32  ;;  %2854 = vmatprep.mubr.bf16.mxu0 %v7079_v50  ;;  %v2479_v32 = vld [vmem:[#allocation2 + $0x1e40] sm:$0xff] }
 0x38e   :  { %3018 = vmatprep.mubr.bf16.mxu1 %v7018_v21 }
 0x38f   :  { %2989 = vmatpush1.bf16.msra.mxu1 %v1905_v1  ;;  %v1978_v1 = vld [vmem:[#allocation2 + $0xe98] sm:$0xff] }
 0x390   :  { %2825 = vmatpush1.bf16.msra.mxu0 %v2415_v14  ;;  %2990 = vmatprep.subr.bf16.mxu1 %v1914_v52  ;;  %v2488_v14 = vld [vmem:[#allocation2 + $0x1e88] sm:$0xff]  ;;  %v1977_v52 = vld [vmem:[#allocation2 + $0xe90] sm:$0xff] }
 0x391   :  { %2826 = vmatprep.subr.bf16.mxu0 %v2424_v51  ;;  %v2487_v51 = vld [vmem:[#allocation2 + $0x1e80] sm:$0xff] }
 0x393   :  { %2991 = vmatpush1.bf16.msra.mxu1 %v1913_v61  ;;  %v1986_v61 = vld [vmem:[#allocation2 + $0xed8] sm:$0xff] }
 0x394   :  { %2827 = vmatpush1.bf16.msra.mxu0 %v2423_v25  ;;  %2992 = vmatprep.subr.bf16.mxu1 %v1922_v22  ;;  %v2496_v25 = vld [vmem:[#allocation2 + $0x1ec8] sm:$0xff]  ;;  %v1985_v22 = vld [vmem:[#allocation2 + $0xed0] sm:$0xff] }
 0x395   :  { %2828 = vmatprep.subr.bf16.mxu0 %v2432_v57  ;;  %v2495_v57 = vld [vmem:[#allocation2 + $0x1ec0] sm:$0xff] }
 0x397   :  { %2993 = vmatpush1.bf16.msra.mxu1 %v1921_v29  ;;  %v1994_v29 = vld [vmem:[#allocation2 + $0xf18] sm:$0xff] }
 0x398   :  { %2829 = vmatpush1.bf16.msra.mxu0 %v2431_v35  ;;  %2994 = vmatprep.subr.bf16.mxu1 %v1930_v4  ;;  %v2504_v35 = vld [vmem:[#allocation2 + $0x1f08] sm:$0xff]  ;;  %v1993_v4 = vld [vmem:[#allocation2 + $0xf10] sm:$0xff] }
 0x399   :  { %2830 = vmatprep.subr.bf16.mxu0 %v2440_v47  ;;  %v2503_v47 = vld [vmem:[#allocation2 + $0x1f00] sm:$0xff] }
 0x39b   :  { %2995 = vmatpush1.bf16.msra.mxu1 %v1929_v58  ;;  %v2002_v58 = vld [vmem:[#allocation2 + $0xf58] sm:$0xff] }
 0x39c   :  { %2831 = vmatpush1.bf16.msra.mxu0 %v2439_v19  ;;  %2996 = vmatprep.subr.bf16.mxu1 %v1938_v8  ;;  %v2512_v19 = vld [vmem:[#allocation2 + $0x1f48] sm:$0xff]  ;;  %v2001_v8 = vld [vmem:[#allocation2 + $0xf50] sm:$0xff] }
 0x39d   :  { %2832 = vmatprep.subr.bf16.mxu0 %v2448_v0  ;;  %v7085_v46 = vpop.f32.mrb[8].mxu1  ;;  %v2511_v0 = vld [vmem:[#allocation2 + $0x1f40] sm:$0xff] }
 0x39e   :  { %v7087_v43 = vpop.f32.mrb[9].mxu1 }
 0x39f   :  { %v2614_v63 = vpop.f32.mrb[10].mxu1  ;;  %2997 = vmatpush1.bf16.msra.mxu1 %v1937_v34  ;;  %v2010_v34 = vld [vmem:[#allocation2 + $0xf98] sm:$0xff] }
 0x3a0   :  { %2833 = vmatpush1.bf16.msra.mxu0 %v2447_v56  ;;  %v2615_v7 = vpop.f32.mrb[11].mxu1  ;;  %2998 = vmatprep.subr.bf16.mxu1 %v1946_v3  ;;  %v2520_v56 = vld [vmem:[#allocation2 + $0x1f88] sm:$0xff]  ;;  %v2009_v3 = vld [vmem:[#allocation2 + $0xf90] sm:$0xff] }
 0x3a1   :  { %2834 = vmatprep.subr.bf16.mxu0 %v2456_v36  ;;  %v2519_v36 = vld [vmem:[#allocation2 + $0x1f80] sm:$0xff]  ;;  %v2528_v63 = vld [vmem:[#allocation2 + $0x1fc8] sm:$0xff]  ;;  %v2018_v7 = vld [vmem:[#allocation2 + $0xfd8] sm:$0xff] }
 0x3a3   :  { %2999 = vmatpush1.bf16.msra.mxu1 %v1945_v41  ;;  %v2017_v41 = vld [vmem:[#allocation2 + $0xfd0] sm:$0xff] }
 0x3a4   :  { %2835 = vmatpush1.bf16.msra.mxu0 %v2455_v30  ;;  %3000 = vmatprep.subr.bf16.mxu1 %v1954_v49  ;;  %v2527_v30 = vld [vmem:[#allocation2 + $0x1fc0] sm:$0xff]  ;;  %v1516_v49 = vld [vmem:[#allocation2 + $0x28] sm:$0xff] }
 0x3a5   :  { %2836 = vmatprep.subr.bf16.mxu0 %v2464_v42  ;;  %v2026_v42 = vld [vmem:[#allocation2 + $0x1018] sm:$0xff] }
 0x3a7   :  { %3001 = vmatpush1.bf16.msra.mxu1 %v1953_v5  ;;  %v2025_v5 = vld [vmem:[#allocation2 + $0x1010] sm:$0xff] }
 0x3a8   :  { %2837 = vmatpush1.bf16.msra.mxu0 %v2463_v37  ;;  %3002 = vmatprep.subr.bf16.mxu1 %v1962_v40  ;;  %v7092_v37 = vpack.c.bf16 %v1489_v45, %v1489_v45  ;;  %v2034_v40 = vld [vmem:[#allocation2 + $0x1058] sm:$0xff] }
 0x3a9   :  { %2838 = vmatprep.subr.bf16.mxu0 %v2472_v39  ;;  %v1515_v39 = vld [vmem:[#allocation2 + $0x20] sm:$0xff]  ;;  %v2042_v45 = vld [vmem:[#allocation2 + $0x1098] sm:$0xff] }
 0x3ab   :  { %3003 = vmatpush1.bf16.msra.mxu1 %v1961_v33  ;;  %v1523_v33 = vld [vmem:[#allocation2 + $0x60] sm:$0xff] }
 0x3ac   :  { %2839 = vmatpush1.bf16.msra.mxu0 %v2471_v27  ;;  %3004 = vmatprep.subr.bf16.mxu1 %v1970_v13  ;;  %v1524_v27 = vld [vmem:[#allocation2 + $0x68] sm:$0xff]  ;;  %v2041_v13 = vld [vmem:[#allocation2 + $0x1090] sm:$0xff] }
 0x3ad   :  { %2840 = vmatprep.subr.bf16.mxu0 %v2480_v11  ;;  %v1532_v11 = vld [vmem:[#allocation2 + $0xa8] sm:$0xff] }
 0x3af   :  { %3005 = vmatpush1.bf16.msra.mxu1 %v1969_v44  ;;  %v2050_v44 = vld [vmem:[#allocation2 + $0x10d8] sm:$0xff] }
 0x3b0   :  { %2841 = vmatpush1.bf16.msra.mxu0 %v2479_v32  ;;  %3006 = vmatprep.subr.bf16.mxu1 %v1978_v1  ;;  %v1531_v32 = vld [vmem:[#allocation2 + $0xa0] sm:$0xff]  ;;  %v2049_v1 = vld [vmem:[#allocation2 + $0x10d0] sm:$0xff] }
 0x3b1   :  { %2842 = vmatprep.subr.bf16.mxu0 %v2488_v14  ;;  %v1540_v14 = vld [vmem:[#allocation2 + $0xe8] sm:$0xff] }
 0x3b3   :  { %3007 = vmatpush1.bf16.msra.mxu1 %v1977_v52  ;;  %v2058_v52 = vld [vmem:[#allocation2 + $0x1118] sm:$0xff] }
 0x3b4   :  { %2843 = vmatpush1.bf16.msra.mxu0 %v2487_v51  ;;  %3008 = vmatprep.subr.bf16.mxu1 %v1986_v61  ;;  %v1539_v51 = vld [vmem:[#allocation2 + $0xe0] sm:$0xff]  ;;  %v2057_v61 = vld [vmem:[#allocation2 + $0x1110] sm:$0xff] }
 0x3b5   :  { %2844 = vmatprep.subr.bf16.mxu0 %v2496_v25  ;;  %v1548_v25 = vld [vmem:[#allocation2 + $0x128] sm:$0xff] }
 0x3b7   :  { %3009 = vmatpush1.bf16.msra.mxu1 %v1985_v22  ;;  %v2066_v22 = vld [vmem:[#allocation2 + $0x1158] sm:$0xff] }
 0x3b8   :  { %2845 = vmatpush1.bf16.msra.mxu0 %v2495_v57  ;;  %3010 = vmatprep.subr.bf16.mxu1 %v1994_v29  ;;  %v1547_v57 = vld [vmem:[#allocation2 + $0x120] sm:$0xff]  ;;  %v2065_v29 = vld [vmem:[#allocation2 + $0x1150] sm:$0xff] }
 0x3b9   :  { %2846 = vmatprep.subr.bf16.mxu0 %v2504_v35  ;;  %v1556_v35 = vld [vmem:[#allocation2 + $0x168] sm:$0xff] }
 0x3bb   :  { %3011 = vmatpush1.bf16.msra.mxu1 %v1993_v4  ;;  %v2074_v4 = vld [vmem:[#allocation2 + $0x1198] sm:$0xff] }
 0x3bc   :  { %2847 = vmatpush1.bf16.msra.mxu0 %v2503_v47  ;;  %3012 = vmatprep.subr.bf16.mxu1 %v2002_v58  ;;  %v1555_v47 = vld [vmem:[#allocation2 + $0x160] sm:$0xff]  ;;  %v2073_v58 = vld [vmem:[#allocation2 + $0x1190] sm:$0xff] }
 0x3bd   :  { %2848 = vmatprep.subr.bf16.mxu0 %v2512_v19  ;;  %v1564_v19 = vld [vmem:[#allocation2 + $0x1a8] sm:$0xff] }
 0x3bf   :  { %3013 = vmatpush1.bf16.msra.mxu1 %v2001_v8  ;;  %v2082_v8 = vld [vmem:[#allocation2 + $0x11d8] sm:$0xff] }
 0x3c0   :  { %2849 = vmatpush1.bf16.msra.mxu0 %v2511_v0  ;;  %3014 = vmatprep.subr.bf16.mxu1 %v2010_v34  ;;  %v1563_v0 = vld [vmem:[#allocation2 + $0x1a0] sm:$0xff]  ;;  %v2081_v34 = vld [vmem:[#allocation2 + $0x11d0] sm:$0xff] }
 0x3c1   :  { %2850 = vmatprep.subr.bf16.mxu0 %v2520_v56  ;;  %v1572_v56 = vld [vmem:[#allocation2 + $0x1e8] sm:$0xff] }
 0x3c3   :  { %3015 = vmatpush1.bf16.msra.mxu1 %v2009_v3  ;;  %v2090_v3 = vld [vmem:[#allocation2 + $0x1218] sm:$0xff] }
 0x3c4   :  { %2851 = vmatpush1.bf16.msra.mxu0 %v2519_v36  ;;  %3016 = vmatprep.subr.bf16.mxu1 %v2018_v7  ;;  %v1571_v36 = vld [vmem:[#allocation2 + $0x1e0] sm:$0xff]  ;;  %v2089_v7 = vld [vmem:[#allocation2 + $0x1210] sm:$0xff] }
 0x3c5   :  { %2852 = vmatprep.subr.bf16.mxu0 %v2528_v63  ;;  %v1580_v63 = vld [vmem:[#allocation2 + $0x228] sm:$0xff] }
 0x3c7   :  { %3017 = vmatpush1.bf16.msra.mxu1 %v2017_v41  ;;  %v2098_v41 = vld [vmem:[#allocation2 + $0x1258] sm:$0xff] }
 0x3c8   :  { %2853 = vmatpush1.bf16.msra.mxu0 %v2527_v30  ;;  %3027 = vmatprep.subr.bf16.mxu1 %v2026_v42  ;;  %v1579_v30 = vld [vmem:[#allocation2 + $0x220] sm:$0xff]  ;;  %v1588_v42 = vld [vmem:[#allocation2 + $0x268] sm:$0xff] }
 0x3c9   :  { %3191 = vmatprep.subr.bf16.mxu0 %v1516_v49  ;;  %v2097_v49 = vld [vmem:[#allocation2 + $0x1250] sm:$0xff] }
 0x3ca   :  { %3019 = vmatmul.mubr.bf16.vlgmr.msra.gmra.mrb[12].mxu1 %v7032_v18 }
 0x3cb   :  { %2855 = vmatmul.mubr.bf16.vlgmr.msra.gmra.mrb[24].mxu0 %v7092_v37  ;;  %3028 = vmatpush1.bf16.msra.mxu1 %v2025_v5  ;;  %v1587_v5 = vld [vmem:[#allocation2 + $0x260] sm:$0xff] }
 0x3cc   :  { %3192 = vmatpush1.bf16.msra.mxu0 %v1515_v39  ;;  %3029 = vmatprep.subr.bf16.mxu1 %v2034_v40  ;;  %v2106_v39 = vld [vmem:[#allocation2 + $0x1298] sm:$0xff]  ;;  %v1596_v40 = vld [vmem:[#allocation2 + $0x2a8] sm:$0xff] }
 0x3cd   :  { %3193 = vmatprep.subr.bf16.mxu0 %v1524_v27  ;;  %3059 = vmatprep.mubr.bf16.mxu1 %v7037_v62  ;;  %v2105_v27 = vld [vmem:[#allocation2 + $0x1290] sm:$0xff] }
 0x3ce   :  { %3223 = vmatprep.mubr.bf16.mxu0 %v6991_v26 }
 0x3cf   :  { %3030 = vmatpush1.bf16.msra.mxu1 %v2033_v6  ;;  %v1595_v6 = vld [vmem:[#allocation2 + $0x2a0] sm:$0xff] }
 0x3d0   :  { %3194 = vmatpush1.bf16.msra.mxu0 %v1523_v33  ;;  %3031 = vmatprep.subr.bf16.mxu1 %v2042_v45  ;;  %v2114_v33 = vld [vmem:[#allocation2 + $0x12d8] sm:$0xff]  ;;  %v1604_v45 = vld [vmem:[#allocation2 + $0x2e8] sm:$0xff] }
 0x3d1   :  { %3195 = vmatprep.subr.bf16.mxu0 %v1532_v11  ;;  %v2113_v11 = vld [vmem:[#allocation2 + $0x12d0] sm:$0xff] }
 0x3d3   :  { %3032 = vmatpush1.bf16.msra.mxu1 %v2041_v13  ;;  %v1603_v13 = vld [vmem:[#allocation2 + $0x2e0] sm:$0xff] }
 0x3d4   :  { %3196 = vmatpush1.bf16.msra.mxu0 %v1531_v32  ;;  %3033 = vmatprep.subr.bf16.mxu1 %v2050_v44  ;;  %v2122_v32 = vld [vmem:[#allocation2 + $0x1318] sm:$0xff]  ;;  %v1612_v44 = vld [vmem:[#allocation2 + $0x328] sm:$0xff] }
 0x3d5   :  { %3197 = vmatprep.subr.bf16.mxu0 %v1540_v14  ;;  %v2121_v14 = vld [vmem:[#allocation2 + $0x1310] sm:$0xff] }
 0x3d7   :  { %3034 = vmatpush1.bf16.msra.mxu1 %v2049_v1  ;;  %v1611_v1 = vld [vmem:[#allocation2 + $0x320] sm:$0xff] }
 0x3d8   :  { %3198 = vmatpush1.bf16.msra.mxu0 %v1539_v51  ;;  %3035 = vmatprep.subr.bf16.mxu1 %v2058_v52  ;;  %v2130_v51 = vld [vmem:[#allocation2 + $0x1358] sm:$0xff]  ;;  %v1620_v52 = vld [vmem:[#allocation2 + $0x368] sm:$0xff] }
 0x3d9   :  { %3199 = vmatprep.subr.bf16.mxu0 %v1548_v25  ;;  %v2129_v25 = vld [vmem:[#allocation2 + $0x1350] sm:$0xff] }
 0x3db   :  { %3036 = vmatpush1.bf16.msra.mxu1 %v2057_v61  ;;  %v1619_v61 = vld [vmem:[#allocation2 + $0x360] sm:$0xff] }
 0x3dc   :  { %3200 = vmatpush1.bf16.msra.mxu0 %v1547_v57  ;;  %3037 = vmatprep.subr.bf16.mxu1 %v2066_v22  ;;  %v2138_v57 = vld [vmem:[#allocation2 + $0x1398] sm:$0xff]  ;;  %v1628_v22 = vld [vmem:[#allocation2 + $0x3a8] sm:$0xff] }
 0x3dd   :  { %3201 = vmatprep.subr.bf16.mxu0 %v1556_v35  ;;  %v2137_v35 = vld [vmem:[#allocation2 + $0x1390] sm:$0xff] }
 0x3df   :  { %3038 = vmatpush1.bf16.msra.mxu1 %v2065_v29  ;;  %v1627_v29 = vld [vmem:[#allocation2 + $0x3a0] sm:$0xff] }
 0x3e0   :  { %3202 = vmatpush1.bf16.msra.mxu0 %v1555_v47  ;;  %3039 = vmatprep.subr.bf16.mxu1 %v2074_v4  ;;  %v2146_v47 = vld [vmem:[#allocation2 + $0x13d8] sm:$0xff]  ;;  %v1636_v4 = vld [vmem:[#allocation2 + $0x3e8] sm:$0xff] }
 0x3e1   :  { %3203 = vmatprep.subr.bf16.mxu0 %v1564_v19  ;;  %v2145_v19 = vld [vmem:[#allocation2 + $0x13d0] sm:$0xff] }
 0x3e3   :  { %3040 = vmatpush1.bf16.msra.mxu1 %v2073_v58  ;;  %v1635_v58 = vld [vmem:[#allocation2 + $0x3e0] sm:$0xff] }
 0x3e4   :  { %3204 = vmatpush1.bf16.msra.mxu0 %v1563_v0  ;;  %3041 = vmatprep.subr.bf16.mxu1 %v2082_v8  ;;  %v2154_v0 = vld [vmem:[#allocation2 + $0x1418] sm:$0xff]  ;;  %v1644_v8 = vld [vmem:[#allocation2 + $0x428] sm:$0xff] }
 0x3e5   :  { %3205 = vmatprep.subr.bf16.mxu0 %v1572_v56  ;;  %v2153_v56 = vld [vmem:[#allocation2 + $0x1410] sm:$0xff] }
 0x3e7   :  { %3042 = vmatpush1.bf16.msra.mxu1 %v2081_v34  ;;  %v1643_v34 = vld [vmem:[#allocation2 + $0x420] sm:$0xff] }
 0x3e8   :  { %3206 = vmatpush1.bf16.msra.mxu0 %v1571_v36  ;;  %3043 = vmatprep.subr.bf16.mxu1 %v2090_v3  ;;  %v2162_v36 = vld [vmem:[#allocation2 + $0x1458] sm:$0xff]  ;;  %v1652_v3 = vld [vmem:[#allocation2 + $0x468] sm:$0xff] }
 0x3e9   :  { %3207 = vmatprep.subr.bf16.mxu0 %v1580_v63  ;;  %v2161_v63 = vld [vmem:[#allocation2 + $0x1450] sm:$0xff] }
 0x3eb   :  { %3044 = vmatpush1.bf16.msra.mxu1 %v2089_v7  ;;  %v1651_v7 = vld [vmem:[#allocation2 + $0x460] sm:$0xff] }
 0x3ec   :  { %3208 = vmatpush1.bf16.msra.mxu0 %v1579_v30  ;;  %3045 = vmatprep.subr.bf16.mxu1 %v2098_v41  ;;  %v2170_v30 = vld [vmem:[#allocation2 + $0x1498] sm:$0xff]  ;;  %v1660_v41 = vld [vmem:[#allocation2 + $0x4a8] sm:$0xff] }
 0x3ed   :  { %3209 = vmatprep.subr.bf16.mxu0 %v1588_v42  ;;  %v2169_v42 = vld [vmem:[#allocation2 + $0x1490] sm:$0xff] }
 0x3ef   :  { %3046 = vmatpush1.bf16.msra.mxu1 %v2097_v49  ;;  %v1659_v49 = vld [vmem:[#allocation2 + $0x4a0] sm:$0xff] }
 0x3f0   :  { %3210 = vmatpush1.bf16.msra.mxu0 %v1587_v5  ;;  %3047 = vmatprep.subr.bf16.mxu1 %v2106_v39  ;;  %v2178_v5 = vld [vmem:[#allocation2 + $0x14d8] sm:$0xff]  ;;  %v1668_v39 = vld [vmem:[#allocation2 + $0x4e8] sm:$0xff] }
 0x3f1   :  { %3211 = vmatprep.subr.bf16.mxu0 %v1596_v40  ;;  %v2177_v40 = vld [vmem:[#allocation2 + $0x14d0] sm:$0xff] }
 0x3f3   :  { %3048 = vmatpush1.bf16.msra.mxu1 %v2105_v27  ;;  %v1667_v27 = vld [vmem:[#allocation2 + $0x4e0] sm:$0xff] }
 0x3f4   :  { %3212 = vmatpush1.bf16.msra.mxu0 %v1595_v6  ;;  %3049 = vmatprep.subr.bf16.mxu1 %v2114_v33  ;;  %v2186_v6 = vld [vmem:[#allocation2 + $0x1518] sm:$0xff]  ;;  %v1676_v33 = vld [vmem:[#allocation2 + $0x528] sm:$0xff] }
 0x3f5   :  { %3213 = vmatprep.subr.bf16.mxu0 %v1604_v45  ;;  %v2185_v45 = vld [vmem:[#allocation2 + $0x1510] sm:$0xff] }
 0x3f7   :  { %3050 = vmatpush1.bf16.msra.mxu1 %v2113_v11  ;;  %v1675_v11 = vld [vmem:[#allocation2 + $0x520] sm:$0xff] }
 0x3f8   :  { %3214 = vmatpush1.bf16.msra.mxu0 %v1603_v13  ;;  %3051 = vmatprep.subr.bf16.mxu1 %v2122_v32  ;;  %v2194_v13 = vld [vmem:[#allocation2 + $0x1558] sm:$0xff]  ;;  %v1684_v32 = vld [vmem:[#allocation2 + $0x568] sm:$0xff] }
 0x3f9   :  { %3215 = vmatprep.subr.bf16.mxu0 %v1612_v44  ;;  %v2193_v44 = vld [vmem:[#allocation2 + $0x1550] sm:$0xff] }
 0x3fb   :  { %3052 = vmatpush1.bf16.msra.mxu1 %v2121_v14  ;;  %v1683_v14 = vld [vmem:[#allocation2 + $0x560] sm:$0xff] }
 0x3fc   :  { %3216 = vmatpush1.bf16.msra.mxu0 %v1611_v1  ;;  %3053 = vmatprep.subr.bf16.mxu1 %v2130_v51  ;;  %v2202_v1 = vld [vmem:[#allocation2 + $0x1598] sm:$0xff]  ;;  %v1692_v51 = vld [vmem:[#allocation2 + $0x5a8] sm:$0xff] }
 0x3fd   :  { %3217 = vmatprep.subr.bf16.mxu0 %v1620_v52  ;;  %v2201_v52 = vld [vmem:[#allocation2 + $0x1590] sm:$0xff] }
 0x3ff   :  { %3054 = vmatpush1.bf16.msra.mxu1 %v2129_v25  ;;  %v1691_v25 = vld [vmem:[#allocation2 + $0x5a0] sm:$0xff] }
 0x400   :  { %3218 = vmatpush1.bf16.msra.mxu0 %v1619_v61  ;;  %3055 = vmatprep.subr.bf16.mxu1 %v2138_v57  ;;  %v2210_v61 = vld [vmem:[#allocation2 + $0x15d8] sm:$0xff]  ;;  %v1700_v57 = vld [vmem:[#allocation2 + $0x5e8] sm:$0xff] }
 0x401   :  { %3219 = vmatprep.subr.bf16.mxu0 %v1628_v22  ;;  %v2209_v22 = vld [vmem:[#allocation2 + $0x15d0] sm:$0xff] }
 0x403   :  { %3056 = vmatpush1.bf16.msra.mxu1 %v2137_v35  ;;  %v1699_v35 = vld [vmem:[#allocation2 + $0x5e0] sm:$0xff] }
 0x404   :  { %3220 = vmatpush1.bf16.msra.mxu0 %v1627_v29  ;;  %3057 = vmatprep.subr.bf16.mxu1 %v2146_v47  ;;  %v2218_v29 = vld [vmem:[#allocation2 + $0x1618] sm:$0xff]  ;;  %v1708_v47 = vld [vmem:[#allocation2 + $0x628] sm:$0xff] }
 0x405   :  { %3221 = vmatprep.subr.bf16.mxu0 %v1636_v4  ;;  %v2217_v4 = vld [vmem:[#allocation2 + $0x1610] sm:$0xff] }
 0x407   :  { %3058 = vmatpush1.bf16.msra.mxu1 %v2145_v19  ;;  %v1707_v19 = vld [vmem:[#allocation2 + $0x620] sm:$0xff] }
 0x408   :  { %3222 = vmatpush1.bf16.msra.mxu0 %v1635_v58  ;;  %3068 = vmatprep.subr.bf16.mxu1 %v2154_v0  ;;  %v2226_v58 = vld [vmem:[#allocation2 + $0x1658] sm:$0xff]  ;;  %v1716_v0 = vld [vmem:[#allocation2 + $0x668] sm:$0xff] }
 0x409   :  { %3232 = vmatprep.subr.bf16.mxu0 %v1644_v8  ;;  %v2225_v8 = vld [vmem:[#allocation2 + $0x1650] sm:$0xff] }
 0x40a   :  { %3060 = vmatmul.mubr.bf16.vlgmr.msra.gmra.mrb[12].mxu1 %v7046_v53 }
 0x40b   :  { %3224 = vmatmul.mubr.bf16.vlgmr.msra.gmra.mrb[28].mxu0 %v7003_v55  ;;  %3069 = vmatpush1.bf16.msra.mxu1 %v2153_v56  ;;  %v1715_v56 = vld [vmem:[#allocation2 + $0x660] sm:$0xff] }
 0x40c   :  { %3233 = vmatpush1.bf16.msra.mxu0 %v1643_v34  ;;  %3070 = vmatprep.subr.bf16.mxu1 %v2162_v36  ;;  %v2234_v34 = vld [vmem:[#allocation2 + $0x1698] sm:$0xff]  ;;  %v1724_v36 = vld [vmem:[#allocation2 + $0x6a8] sm:$0xff] }
 0x40d   :  { %3234 = vmatprep.subr.bf16.mxu0 %v1652_v3  ;;  %3100 = vmatprep.mubr.bf16.mxu1 %v7051_v48  ;;  %v2233_v3 = vld [vmem:[#allocation2 + $0x1690] sm:$0xff] }
 0x40e   :  { %3264 = vmatprep.mubr.bf16.mxu0 %v7013_v38 }
 0x40f   :  { %3071 = vmatpush1.bf16.msra.mxu1 %v2161_v63  ;;  %v1723_v63 = vld [vmem:[#allocation2 + $0x6a0] sm:$0xff] }
 0x410   :  { %3235 = vmatpush1.bf16.msra.mxu0 %v1651_v7  ;;  %3072 = vmatprep.subr.bf16.mxu1 %v2170_v30  ;;  %v2242_v7 = vld [vmem:[#allocation2 + $0x16d8] sm:$0xff]  ;;  %v1732_v30 = vld [vmem:[#allocation2 + $0x6e8] sm:$0xff] }
 0x411   :  { %3236 = vmatprep.subr.bf16.mxu0 %v1660_v41  ;;  %v2241_v41 = vld [vmem:[#allocation2 + $0x16d0] sm:$0xff] }
 0x413   :  { %3073 = vmatpush1.bf16.msra.mxu1 %v2169_v42  ;;  %v1731_v42 = vld [vmem:[#allocation2 + $0x6e0] sm:$0xff] }
 0x414   :  { %3237 = vmatpush1.bf16.msra.mxu0 %v1659_v49  ;;  %3074 = vmatprep.subr.bf16.mxu1 %v2178_v5  ;;  %v2250_v49 = vld [vmem:[#allocation2 + $0x1718] sm:$0xff]  ;;  %v1740_v5 = vld [vmem:[#allocation2 + $0x728] sm:$0xff] }
 0x415   :  { %3238 = vmatprep.subr.bf16.mxu0 %v1668_v39  ;;  %v2249_v39 = vld [vmem:[#allocation2 + $0x1710] sm:$0xff] }
 0x417   :  { %3075 = vmatpush1.bf16.msra.mxu1 %v2177_v40  ;;  %v1739_v40 = vld [vmem:[#allocation2 + $0x720] sm:$0xff] }
 0x418   :  { %3239 = vmatpush1.bf16.msra.mxu0 %v1667_v27  ;;  %3076 = vmatprep.subr.bf16.mxu1 %v2186_v6  ;;  %v2258_v27 = vld [vmem:[#allocation2 + $0x1758] sm:$0xff]  ;;  %v1748_v6 = vld [vmem:[#allocation2 + $0x768] sm:$0xff] }
 0x419   :  { %3240 = vmatprep.subr.bf16.mxu0 %v1676_v33  ;;  %v2257_v33 = vld [vmem:[#allocation2 + $0x1750] sm:$0xff] }
 0x41b   :  { %3077 = vmatpush1.bf16.msra.mxu1 %v2185_v45  ;;  %v1747_v45 = vld [vmem:[#allocation2 + $0x760] sm:$0xff] }
 0x41c   :  { %3241 = vmatpush1.bf16.msra.mxu0 %v1675_v11  ;;  %3078 = vmatprep.subr.bf16.mxu1 %v2194_v13  ;;  %v2266_v11 = vld [vmem:[#allocation2 + $0x1798] sm:$0xff]  ;;  %v1756_v13 = vld [vmem:[#allocation2 + $0x7a8] sm:$0xff] }
 0x41d   :  { %3242 = vmatprep.subr.bf16.mxu0 %v1684_v32  ;;  %v2265_v32 = vld [vmem:[#allocation2 + $0x1790] sm:$0xff] }
 0x41f   :  { %3079 = vmatpush1.bf16.msra.mxu1 %v2193_v44  ;;  %v1755_v44 = vld [vmem:[#allocation2 + $0x7a0] sm:$0xff] }
 0x420   :  { %3243 = vmatpush1.bf16.msra.mxu0 %v1683_v14  ;;  %3080 = vmatprep.subr.bf16.mxu1 %v2202_v1  ;;  %v2274_v14 = vld [vmem:[#allocation2 + $0x17d8] sm:$0xff]  ;;  %v1764_v1 = vld [vmem:[#allocation2 + $0x7e8] sm:$0xff] }
 0x421   :  { %3244 = vmatprep.subr.bf16.mxu0 %v1692_v51  ;;  %v2273_v51 = vld [vmem:[#allocation2 + $0x17d0] sm:$0xff] }
 0x423   :  { %3081 = vmatpush1.bf16.msra.mxu1 %v2201_v52  ;;  %v1763_v52 = vld [vmem:[#allocation2 + $0x7e0] sm:$0xff] }
 0x424   :  { %3245 = vmatpush1.bf16.msra.mxu0 %v1691_v25  ;;  %3082 = vmatprep.subr.bf16.mxu1 %v2210_v61  ;;  %v2282_v25 = vld [vmem:[#allocation2 + $0x1818] sm:$0xff]  ;;  %v1772_v61 = vld [vmem:[#allocation2 + $0x828] sm:$0xff] }
 0x425   :  { %3246 = vmatprep.subr.bf16.mxu0 %v1700_v57  ;;  %v2281_v57 = vld [vmem:[#allocation2 + $0x1810] sm:$0xff] }
 0x427   :  { %3083 = vmatpush1.bf16.msra.mxu1 %v2209_v22  ;;  %v1771_v22 = vld [vmem:[#allocation2 + $0x820] sm:$0xff] }
 0x428   :  { %3247 = vmatpush1.bf16.msra.mxu0 %v1699_v35  ;;  %3084 = vmatprep.subr.bf16.mxu1 %v2218_v29  ;;  %v2290_v35 = vld [vmem:[#allocation2 + $0x1858] sm:$0xff]  ;;  %v1780_v29 = vld [vmem:[#allocation2 + $0x868] sm:$0xff] }
 0x429   :  { %3248 = vmatprep.subr.bf16.mxu0 %v1708_v47  ;;  %v2289_v47 = vld [vmem:[#allocation2 + $0x1850] sm:$0xff] }
 0x42b   :  { %3085 = vmatpush1.bf16.msra.mxu1 %v2217_v4  ;;  %v1779_v4 = vld [vmem:[#allocation2 + $0x860] sm:$0xff] }
 0x42c   :  { %3249 = vmatpush1.bf16.msra.mxu0 %v1707_v19  ;;  %3086 = vmatprep.subr.bf16.mxu1 %v2226_v58  ;;  %v2298_v19 = vld [vmem:[#allocation2 + $0x1898] sm:$0xff]  ;;  %v1788_v58 = vld [vmem:[#allocation2 + $0x8a8] sm:$0xff] }
 0x42d   :  { %3250 = vmatprep.subr.bf16.mxu0 %v1716_v0  ;;  %v2297_v0 = vld [vmem:[#allocation2 + $0x1890] sm:$0xff] }
 0x42f   :  { %3087 = vmatpush1.bf16.msra.mxu1 %v2225_v8  ;;  %v1787_v8 = vld [vmem:[#allocation2 + $0x8a0] sm:$0xff] }
 0x430   :  { %3251 = vmatpush1.bf16.msra.mxu0 %v1715_v56  ;;  %3088 = vmatprep.subr.bf16.mxu1 %v2234_v34  ;;  %v2306_v56 = vld [vmem:[#allocation2 + $0x18d8] sm:$0xff]  ;;  %v1796_v34 = vld [vmem:[#allocation2 + $0x8e8] sm:$0xff] }
 0x431   :  { %3252 = vmatprep.subr.bf16.mxu0 %v1724_v36  ;;  %v2305_v36 = vld [vmem:[#allocation2 + $0x18d0] sm:$0xff] }
 0x433   :  { %3089 = vmatpush1.bf16.msra.mxu1 %v2233_v3  ;;  %v1795_v3 = vld [vmem:[#allocation2 + $0x8e0] sm:$0xff] }
 0x434   :  { %3253 = vmatpush1.bf16.msra.mxu0 %v1723_v63  ;;  %3090 = vmatprep.subr.bf16.mxu1 %v2242_v7  ;;  %v2314_v63 = vld [vmem:[#allocation2 + $0x1918] sm:$0xff]  ;;  %v1804_v7 = vld [vmem:[#allocation2 + $0x928] sm:$0xff] }
 0x435   :  { %3254 = vmatprep.subr.bf16.mxu0 %v1732_v30  ;;  %v2313_v30 = vld [vmem:[#allocation2 + $0x1910] sm:$0xff] }
 0x437   :  { %3091 = vmatpush1.bf16.msra.mxu1 %v2241_v41  ;;  %v1803_v41 = vld [vmem:[#allocation2 + $0x920] sm:$0xff] }
 0x438   :  { %3255 = vmatpush1.bf16.msra.mxu0 %v1731_v42  ;;  %3092 = vmatprep.subr.bf16.mxu1 %v2250_v49  ;;  %v2322_v42 = vld [vmem:[#allocation2 + $0x1958] sm:$0xff]  ;;  %v1812_v49 = vld [vmem:[#allocation2 + $0x968] sm:$0xff] }
 0x439   :  { %3256 = vmatprep.subr.bf16.mxu0 %v1740_v5  ;;  %v2321_v5 = vld [vmem:[#allocation2 + $0x1950] sm:$0xff] }
 0x43b   :  { %3093 = vmatpush1.bf16.msra.mxu1 %v2249_v39  ;;  %v1811_v39 = vld [vmem:[#allocation2 + $0x960] sm:$0xff] }
 0x43c   :  { %3257 = vmatpush1.bf16.msra.mxu0 %v1739_v40  ;;  %3094 = vmatprep.subr.bf16.mxu1 %v2258_v27  ;;  %v2330_v40 = vld [vmem:[#allocation2 + $0x1998] sm:$0xff]  ;;  %v1820_v27 = vld [vmem:[#allocation2 + $0x9a8] sm:$0xff] }
 0x43d   :  { %3258 = vmatprep.subr.bf16.mxu0 %v1748_v6  ;;  %v2329_v6 = vld [vmem:[#allocation2 + $0x1990] sm:$0xff] }
 0x43f   :  { %3095 = vmatpush1.bf16.msra.mxu1 %v2257_v33  ;;  %v1819_v33 = vld [vmem:[#allocation2 + $0x9a0] sm:$0xff] }
 0x440   :  { %3259 = vmatpush1.bf16.msra.mxu0 %v1747_v45  ;;  %3096 = vmatprep.subr.bf16.mxu1 %v2266_v11  ;;  %v2338_v45 = vld [vmem:[#allocation2 + $0x19d8] sm:$0xff]  ;;  %v1828_v11 = vld [vmem:[#allocation2 + $0x9e8] sm:$0xff] }
 0x441   :  { %3260 = vmatprep.subr.bf16.mxu0 %v1756_v13  ;;  %v2337_v13 = vld [vmem:[#allocation2 + $0x19d0] sm:$0xff] }
 0x443   :  { %3097 = vmatpush1.bf16.msra.mxu1 %v2265_v32  ;;  %v1827_v32 = vld [vmem:[#allocation2 + $0x9e0] sm:$0xff] }
 0x444   :  { %3261 = vmatpush1.bf16.msra.mxu0 %v1755_v44  ;;  %3098 = vmatprep.subr.bf16.mxu1 %v2274_v14  ;;  %v2346_v44 = vld [vmem:[#allocation2 + $0x1a18] sm:$0xff]  ;;  %v1836_v14 = vld [vmem:[#allocation2 + $0xa28] sm:$0xff] }
 0x445   :  { %3262 = vmatprep.subr.bf16.mxu0 %v1764_v1  ;;  %v2345_v1 = vld [vmem:[#allocation2 + $0x1a10] sm:$0xff] }
 0x447   :  { %3099 = vmatpush1.bf16.msra.mxu1 %v2273_v51  ;;  %v1835_v51 = vld [vmem:[#allocation2 + $0xa20] sm:$0xff] }
 0x448   :  { %3263 = vmatpush1.bf16.msra.mxu0 %v1763_v52  ;;  %3109 = vmatprep.subr.bf16.mxu1 %v2282_v25  ;;  %v2354_v52 = vld [vmem:[#allocation2 + $0x1a58] sm:$0xff]  ;;  %v1844_v25 = vld [vmem:[#allocation2 + $0xa68] sm:$0xff] }
 0x449   :  { %3273 = vmatprep.subr.bf16.mxu0 %v1772_v61  ;;  %v2353_v61 = vld [vmem:[#allocation2 + $0x1a50] sm:$0xff] }
 0x44a   :  { %3101 = vmatmul.mubr.bf16.vlgmr.msra.gmra.mrb[12].mxu1 %v7060_v20 }
 0x44b   :  { %3265 = vmatmul.mubr.bf16.vlgmr.msra.gmra.mrb[28].mxu0 %v7027_v10  ;;  %3110 = vmatpush1.bf16.msra.mxu1 %v2281_v57  ;;  %v1843_v57 = vld [vmem:[#allocation2 + $0xa60] sm:$0xff] }
 0x44c   :  { %3274 = vmatpush1.bf16.msra.mxu0 %v1771_v22  ;;  %3111 = vmatprep.subr.bf16.mxu1 %v2290_v35  ;;  %v2362_v22 = vld [vmem:[#allocation2 + $0x1a98] sm:$0xff]  ;;  %v1852_v35 = vld [vmem:[#allocation2 + $0xaa8] sm:$0xff] }
 0x44d   :  { %3275 = vmatprep.subr.bf16.mxu0 %v1780_v29  ;;  %3141 = vmatprep.mubr.bf16.mxu1 %v7065_v54  ;;  %v2361_v29 = vld [vmem:[#allocation2 + $0x1a90] sm:$0xff] }
 0x44e   :  { %3305 = vmatprep.mubr.bf16.mxu0 %v6996_v12 }
 0x44f   :  { %3112 = vmatpush1.bf16.msra.mxu1 %v2289_v47  ;;  %v1851_v47 = vld [vmem:[#allocation2 + $0xaa0] sm:$0xff] }
 0x450   :  { %3276 = vmatpush1.bf16.msra.mxu0 %v1779_v4  ;;  %3113 = vmatprep.subr.bf16.mxu1 %v2298_v19  ;;  %v2370_v4 = vld [vmem:[#allocation2 + $0x1ad8] sm:$0xff]  ;;  %v1860_v19 = vld [vmem:[#allocation2 + $0xae8] sm:$0xff] }
 0x451   :  { %3277 = vmatprep.subr.bf16.mxu0 %v1788_v58  ;;  %v2369_v58 = vld [vmem:[#allocation2 + $0x1ad0] sm:$0xff] }
 0x453   :  { %3114 = vmatpush1.bf16.msra.mxu1 %v2297_v0  ;;  %v1859_v0 = vld [vmem:[#allocation2 + $0xae0] sm:$0xff] }
 0x454   :  { %3278 = vmatpush1.bf16.msra.mxu0 %v1787_v8  ;;  %3115 = vmatprep.subr.bf16.mxu1 %v2306_v56  ;;  %v2378_v8 = vld [vmem:[#allocation2 + $0x1b18] sm:$0xff]  ;;  %v1868_v56 = vld [vmem:[#allocation2 + $0xb28] sm:$0xff] }
 0x455   :  { %3279 = vmatprep.subr.bf16.mxu0 %v1796_v34  ;;  %v2377_v34 = vld [vmem:[#allocation2 + $0x1b10] sm:$0xff] }
 0x457   :  { %3116 = vmatpush1.bf16.msra.mxu1 %v2305_v36  ;;  %v1867_v36 = vld [vmem:[#allocation2 + $0xb20] sm:$0xff] }
 0x458   :  { %3280 = vmatpush1.bf16.msra.mxu0 %v1795_v3  ;;  %3117 = vmatprep.subr.bf16.mxu1 %v2314_v63  ;;  %v2386_v3 = vld [vmem:[#allocation2 + $0x1b58] sm:$0xff]  ;;  %v1876_v63 = vld [vmem:[#allocation2 + $0xb68] sm:$0xff] }
 0x459   :  { %3281 = vmatprep.subr.bf16.mxu0 %v1804_v7  ;;  %v2385_v7 = vld [vmem:[#allocation2 + $0x1b50] sm:$0xff] }
 0x45b   :  { %3118 = vmatpush1.bf16.msra.mxu1 %v2313_v30  ;;  %v1875_v30 = vld [vmem:[#allocation2 + $0xb60] sm:$0xff] }
 0x45c   :  { %3282 = vmatpush1.bf16.msra.mxu0 %v1803_v41  ;;  %3119 = vmatprep.subr.bf16.mxu1 %v2322_v42  ;;  %v2394_v41 = vld [vmem:[#allocation2 + $0x1b98] sm:$0xff]  ;;  %v1884_v42 = vld [vmem:[#allocation2 + $0xba8] sm:$0xff] }
 0x45d   :  { %3283 = vmatprep.subr.bf16.mxu0 %v1812_v49  ;;  %v2393_v49 = vld [vmem:[#allocation2 + $0x1b90] sm:$0xff] }
 0x45f   :  { %3120 = vmatpush1.bf16.msra.mxu1 %v2321_v5  ;;  %v1883_v5 = vld [vmem:[#allocation2 + $0xba0] sm:$0xff] }
 0x460   :  { %3284 = vmatpush1.bf16.msra.mxu0 %v1811_v39  ;;  %3121 = vmatprep.subr.bf16.mxu1 %v2330_v40  ;;  %v2402_v39 = vld [vmem:[#allocation2 + $0x1bd8] sm:$0xff]  ;;  %v1892_v40 = vld [vmem:[#allocation2 + $0xbe8] sm:$0xff] }
 0x461   :  { %3285 = vmatprep.subr.bf16.mxu0 %v1820_v27  ;;  %v2401_v27 = vld [vmem:[#allocation2 + $0x1bd0] sm:$0xff] }
 0x463   :  { %3122 = vmatpush1.bf16.msra.mxu1 %v2329_v6  ;;  %v1891_v6 = vld [vmem:[#allocation2 + $0xbe0] sm:$0xff] }
 0x464   :  { %3286 = vmatpush1.bf16.msra.mxu0 %v1819_v33  ;;  %3123 = vmatprep.subr.bf16.mxu1 %v2338_v45  ;;  %v2410_v33 = vld [vmem:[#allocation2 + $0x1c18] sm:$0xff]  ;;  %v1900_v45 = vld [vmem:[#allocation2 + $0xc28] sm:$0xff] }
 0x465   :  { %3287 = vmatprep.subr.bf16.mxu0 %v1828_v11  ;;  %v2409_v11 = vld [vmem:[#allocation2 + $0x1c10] sm:$0xff] }
 0x467   :  { %3124 = vmatpush1.bf16.msra.mxu1 %v2337_v13  ;;  %v1899_v13 = vld [vmem:[#allocation2 + $0xc20] sm:$0xff] }
 0x468   :  { %3288 = vmatpush1.bf16.msra.mxu0 %v1827_v32  ;;  %3125 = vmatprep.subr.bf16.mxu1 %v2346_v44  ;;  %v2418_v32 = vld [vmem:[#allocation2 + $0x1c58] sm:$0xff]  ;;  %v1908_v44 = vld [vmem:[#allocation2 + $0xc68] sm:$0xff] }
 0x469   :  { %3289 = vmatprep.subr.bf16.mxu0 %v1836_v14  ;;  %v2417_v14 = vld [vmem:[#allocation2 + $0x1c50] sm:$0xff] }
 0x46b   :  { %3126 = vmatpush1.bf16.msra.mxu1 %v2345_v1  ;;  %v1907_v1 = vld [vmem:[#allocation2 + $0xc60] sm:$0xff] }
 0x46c   :  { %3290 = vmatpush1.bf16.msra.mxu0 %v1835_v51  ;;  %3127 = vmatprep.subr.bf16.mxu1 %v2354_v52  ;;  %v2426_v51 = vld [vmem:[#allocation2 + $0x1c98] sm:$0xff]  ;;  %v1916_v52 = vld [vmem:[#allocation2 + $0xca8] sm:$0xff] }
 0x46d   :  { %3291 = vmatprep.subr.bf16.mxu0 %v1844_v25  ;;  %v2425_v25 = vld [vmem:[#allocation2 + $0x1c90] sm:$0xff] }
 0x46f   :  { %3128 = vmatpush1.bf16.msra.mxu1 %v2353_v61  ;;  %v1915_v61 = vld [vmem:[#allocation2 + $0xca0] sm:$0xff] }
 0x470   :  { %3292 = vmatpush1.bf16.msra.mxu0 %v1843_v57  ;;  %3129 = vmatprep.subr.bf16.mxu1 %v2362_v22  ;;  %v2434_v57 = vld [vmem:[#allocation2 + $0x1cd8] sm:$0xff]  ;;  %v1924_v22 = vld [vmem:[#allocation2 + $0xce8] sm:$0xff] }
 0x471   :  { %3293 = vmatprep.subr.bf16.mxu0 %v1852_v35  ;;  %v2433_v35 = vld [vmem:[#allocation2 + $0x1cd0] sm:$0xff] }
 0x473   :  { %3130 = vmatpush1.bf16.msra.mxu1 %v2361_v29  ;;  %v1923_v29 = vld [vmem:[#allocation2 + $0xce0] sm:$0xff] }
 0x474   :  { %3294 = vmatpush1.bf16.msra.mxu0 %v1851_v47  ;;  %3131 = vmatprep.subr.bf16.mxu1 %v2370_v4  ;;  %v2442_v47 = vld [vmem:[#allocation2 + $0x1d18] sm:$0xff]  ;;  %v1932_v4 = vld [vmem:[#allocation2 + $0xd28] sm:$0xff] }
 0x475   :  { %3295 = vmatprep.subr.bf16.mxu0 %v1860_v19  ;;  %v2441_v19 = vld [vmem:[#allocation2 + $0x1d10] sm:$0xff] }
 0x477   :  { %3132 = vmatpush1.bf16.msra.mxu1 %v2369_v58  ;;  %v1931_v58 = vld [vmem:[#allocation2 + $0xd20] sm:$0xff] }
 0x478   :  { %3296 = vmatpush1.bf16.msra.mxu0 %v1859_v0  ;;  %3133 = vmatprep.subr.bf16.mxu1 %v2378_v8  ;;  %v2450_v0 = vld [vmem:[#allocation2 + $0x1d58] sm:$0xff]  ;;  %v1940_v8 = vld [vmem:[#allocation2 + $0xd68] sm:$0xff] }
 0x479   :  { %3297 = vmatprep.subr.bf16.mxu0 %v1868_v56  ;;  %v2449_v56 = vld [vmem:[#allocation2 + $0x1d50] sm:$0xff] }
 0x47b   :  { %3134 = vmatpush1.bf16.msra.mxu1 %v2377_v34  ;;  %v1939_v34 = vld [vmem:[#allocation2 + $0xd60] sm:$0xff] }
 0x47c   :  { %3298 = vmatpush1.bf16.msra.mxu0 %v1867_v36  ;;  %3135 = vmatprep.subr.bf16.mxu1 %v2386_v3  ;;  %v2458_v3 = vld [vmem:[#allocation2 + $0x1d98] sm:$0xff] }
 0x47d   :  { %3299 = vmatprep.subr.bf16.mxu0 %v1876_v63  ;;  %v1948_v63 = vld [vmem:[#allocation2 + $0xda8] sm:$0xff] }
 0x47f   :  { %3136 = vmatpush1.bf16.msra.mxu1 %v2385_v7 }
 0x480   :  { %3300 = vmatpush1.bf16.msra.mxu0 %v1875_v30  ;;  %3137 = vmatprep.subr.bf16.mxu1 %v2394_v41 }
 0x481   :  { %3301 = vmatprep.subr.bf16.mxu0 %v1884_v42 }
 0x483   :  { %3138 = vmatpush1.bf16.msra.mxu1 %v2393_v49 }
 0x484   :  { %3302 = vmatpush1.bf16.msra.mxu0 %v1883_v5  ;;  %3139 = vmatprep.subr.bf16.mxu1 %v2402_v39  ;;  %v2457_v5 = vld [vmem:[#allocation2 + $0x1d90] sm:$0xff]  ;;  %v1947_v39 = vld [vmem:[#allocation2 + $0xda0] sm:$0xff] }
 0x485   :  { %3303 = vmatprep.subr.bf16.mxu0 %v1892_v40  ;;  %v2466_v40 = vld [vmem:[#allocation2 + $0x1dd8] sm:$0xff] }
 0x487   :  { %3140 = vmatpush1.bf16.msra.mxu1 %v2401_v27  ;;  %v1956_v27 = vld [vmem:[#allocation2 + $0xde8] sm:$0xff] }
 0x488   :  { %3304 = vmatpush1.bf16.msra.mxu0 %v1891_v6  ;;  %3150 = vmatprep.subr.bf16.mxu1 %v2410_v33  ;;  %v1955_v6 = vld [vmem:[#allocation2 + $0xde0] sm:$0xff]  ;;  %v2474_v33 = vld [vmem:[#allocation2 + $0x1e18] sm:$0xff] }
 0x489   :  { %3314 = vmatprep.subr.bf16.mxu0 %v1900_v45  ;;  %v1964_v45 = vld [vmem:[#allocation2 + $0xe28] sm:$0xff] }
 0x48a   :  { %3142 = vmatmul.mubr.bf16.vlgmr.msra.gmra.mrb[12].mxu1 %v7074_v2 }
 0x48b   :  { %3306 = vmatmul.mubr.bf16.vlgmr.msra.gmra.mrb[28].mxu0 %v7008_v28  ;;  %3151 = vmatpush1.bf16.msra.mxu1 %v2409_v11  ;;  %v1963_v11 = vld [vmem:[#allocation2 + $0xe20] sm:$0xff] }
 0x48c   :  { %3315 = vmatpush1.bf16.msra.mxu0 %v1899_v13  ;;  %3152 = vmatprep.subr.bf16.mxu1 %v2418_v32  ;;  %v2482_v13 = vld [vmem:[#allocation2 + $0x1e58] sm:$0xff]  ;;  %v1972_v32 = vld [vmem:[#allocation2 + $0xe68] sm:$0xff] }
 0x48d   :  { %3316 = vmatprep.subr.bf16.mxu0 %v1908_v44  ;;  %3182 = vmatprep.mubr.bf16.mxu1 %v7079_v50  ;;  %v2481_v44 = vld [vmem:[#allocation2 + $0x1e50] sm:$0xff] }
 0x48e   :  { %3346 = vmatprep.mubr.bf16.mxu0 %v7018_v21 }
 0x48f   :  { %3153 = vmatpush1.bf16.msra.mxu1 %v2417_v14  ;;  %v1971_v14 = vld [vmem:[#allocation2 + $0xe60] sm:$0xff] }
 0x490   :  { %3317 = vmatpush1.bf16.msra.mxu0 %v1907_v1  ;;  %3154 = vmatprep.subr.bf16.mxu1 %v2426_v51  ;;  %v2490_v1 = vld [vmem:[#allocation2 + $0x1e98] sm:$0xff]  ;;  %v1980_v51 = vld [vmem:[#allocation2 + $0xea8] sm:$0xff] }
 0x491   :  { %3318 = vmatprep.subr.bf16.mxu0 %v1916_v52  ;;  %v2489_v52 = vld [vmem:[#allocation2 + $0x1e90] sm:$0xff] }
 0x493   :  { %3155 = vmatpush1.bf16.msra.mxu1 %v2425_v25  ;;  %v1979_v25 = vld [vmem:[#allocation2 + $0xea0] sm:$0xff] }
 0x494   :  { %3319 = vmatpush1.bf16.msra.mxu0 %v1915_v61  ;;  %3156 = vmatprep.subr.bf16.mxu1 %v2434_v57  ;;  %v2498_v61 = vld [vmem:[#allocation2 + $0x1ed8] sm:$0xff]  ;;  %v1988_v57 = vld [vmem:[#allocation2 + $0xee8] sm:$0xff] }
 0x495   :  { %3320 = vmatprep.subr.bf16.mxu0 %v1924_v22  ;;  %v2497_v22 = vld [vmem:[#allocation2 + $0x1ed0] sm:$0xff] }
 0x497   :  { %3157 = vmatpush1.bf16.msra.mxu1 %v2433_v35  ;;  %v1987_v35 = vld [vmem:[#allocation2 + $0xee0] sm:$0xff] }
 0x498   :  { %3321 = vmatpush1.bf16.msra.mxu0 %v1923_v29  ;;  %3158 = vmatprep.subr.bf16.mxu1 %v2442_v47  ;;  %v2506_v29 = vld [vmem:[#allocation2 + $0x1f18] sm:$0xff]  ;;  %v1996_v47 = vld [vmem:[#allocation2 + $0xf28] sm:$0xff] }
 0x499   :  { %3322 = vmatprep.subr.bf16.mxu0 %v1932_v4  ;;  %v2505_v4 = vld [vmem:[#allocation2 + $0x1f10] sm:$0xff] }
 0x49b   :  { %3159 = vmatpush1.bf16.msra.mxu1 %v2441_v19  ;;  %v1995_v19 = vld [vmem:[#allocation2 + $0xf20] sm:$0xff] }
 0x49c   :  { %3323 = vmatpush1.bf16.msra.mxu0 %v1931_v58  ;;  %3160 = vmatprep.subr.bf16.mxu1 %v2450_v0  ;;  %v2514_v58 = vld [vmem:[#allocation2 + $0x1f58] sm:$0xff]  ;;  %v2004_v0 = vld [vmem:[#allocation2 + $0xf68] sm:$0xff] }
 0x49d   :  { %3324 = vmatprep.subr.bf16.mxu0 %v1940_v8  ;;  %v2513_v8 = vld [vmem:[#allocation2 + $0x1f50] sm:$0xff] }
 0x49e   :  { %v2856_v36 = vpop.f32.mrb[24].mxu0 }
 0x49f   :  { %v7111_v7 = vadd.f32 %v2856_v36, %v7085_v46  ;;  %v2858_v30 = vpop.f32.mrb[25].mxu0  ;;  %3161 = vmatpush1.bf16.msra.mxu1 %v2449_v56  ;;  %v2465_v46 = vld [vmem:[#allocation2 + $0x1dd0] sm:$0xff]  ;;  %v2003_v56 = vld [vmem:[#allocation2 + $0xf60] sm:$0xff]  ;;  %v2012_v36 = vld [vmem:[#allocation2 + $0xfa8] sm:$0xff] }
 0x4a0   :  { %v7114_v41 = vadd.f32 %v2858_v30, %v7087_v43  ;;  %v2860_v42 = vpop.f32.mrb[26].mxu0  ;;  %3325 = vmatpush1.bf16.msra.mxu0 %v1939_v34  ;;  %3162 = vmatprep.subr.bf16.mxu1 %v2458_v3  ;;  %v2473_v43 = vld [vmem:[#allocation2 + $0x1e10] sm:$0xff]  ;;  %v2522_v34 = vld [vmem:[#allocation2 + $0x1f98] sm:$0xff] }
 0x4a1   :  { %v2861_v49 = vpop.f32.mrb[27].mxu0  ;;  %3326 = vmatprep.subr.bf16.mxu0 %v1948_v63  ;;  %v2521_v3 = vld [vmem:[#allocation2 + $0x1f90] sm:$0xff]  ;;  %v2011_v63 = vld [vmem:[#allocation2 + $0xfa0] sm:$0xff]  ;;  %v2530_v30 = vld [vmem:[#allocation2 + $0x1fd8] sm:$0xff] }
 0x4a2   :  { %v2020_v42 = vld [vmem:[#allocation2 + $0xfe8] sm:$0xff]  ;;  %v2529_v49 = vld [vmem:[#allocation2 + $0x1fd0] sm:$0xff] }
 0x4a3   :  { %3163 = vmatpush1.bf16.msra.mxu1 %v2457_v5  ;;  %v2019_v5 = vld [vmem:[#allocation2 + $0xfe0] sm:$0xff] }
 0x4a4   :  { %3327 = vmatpush1.bf16.msra.mxu0 %v1947_v39  ;;  %3164 = vmatprep.subr.bf16.mxu1 %v2466_v40  ;;  %v2028_v39 = vld [vmem:[#allocation2 + $0x1028] sm:$0xff]  ;;  %v1518_v40 = vld [vmem:[#allocation2 + $0x38] sm:$0xff] }
 0x4a5   :  { %3328 = vmatprep.subr.bf16.mxu0 %v1956_v27  ;;  %v2027_v27 = vld [vmem:[#allocation2 + $0x1020] sm:$0xff] }
 0x4a7   :  { %3165 = vmatpush1.bf16.msra.mxu1 %v2465_v46  ;;  %v1517_v46 = vld [vmem:[#allocation2 + $0x30] sm:$0xff] }
 0x4a8   :  { %3329 = vmatpush1.bf16.msra.mxu0 %v1955_v6  ;;  %3166 = vmatprep.subr.bf16.mxu1 %v2474_v33  ;;  %v2036_v6 = vld [vmem:[#allocation2 + $0x1068] sm:$0xff]  ;;  %v1526_v33 = vld [vmem:[#allocation2 + $0x78] sm:$0xff] }
 0x4a9   :  { %3330 = vmatprep.subr.bf16.mxu0 %v1964_v45  ;;  %v2035_v45 = vld [vmem:[#allocation2 + $0x1060] sm:$0xff] }
 0x4ab   :  { %3167 = vmatpush1.bf16.msra.mxu1 %v2473_v43  ;;  %v1525_v43 = vld [vmem:[#allocation2 + $0x70] sm:$0xff] }
 0x4ac   :  { %3331 = vmatpush1.bf16.msra.mxu0 %v1963_v11  ;;  %3168 = vmatprep.subr.bf16.mxu1 %v2482_v13  ;;  %v2044_v11 = vld [vmem:[#allocation2 + $0x10a8] sm:$0xff]  ;;  %v1534_v13 = vld [vmem:[#allocation2 + $0xb8] sm:$0xff] }
 0x4ad   :  { %3332 = vmatprep.subr.bf16.mxu0 %v1972_v32  ;;  %v2043_v32 = vld [vmem:[#allocation2 + $0x10a0] sm:$0xff] }
 0x4af   :  { %3169 = vmatpush1.bf16.msra.mxu1 %v2481_v44  ;;  %v1533_v44 = vld [vmem:[#allocation2 + $0xb0] sm:$0xff] }
 0x4b0   :  { %3333 = vmatpush1.bf16.msra.mxu0 %v1971_v14  ;;  %3170 = vmatprep.subr.bf16.mxu1 %v2490_v1  ;;  %v2052_v14 = vld [vmem:[#allocation2 + $0x10e8] sm:$0xff]  ;;  %v1542_v1 = vld [vmem:[#allocation2 + $0xf8] sm:$0xff] }
 0x4b1   :  { %3334 = vmatprep.subr.bf16.mxu0 %v1980_v51  ;;  %v2051_v51 = vld [vmem:[#allocation2 + $0x10e0] sm:$0xff] }
 0x4b3   :  { %3171 = vmatpush1.bf16.msra.mxu1 %v2489_v52  ;;  %v1541_v52 = vld [vmem:[#allocation2 + $0xf0] sm:$0xff] }
 0x4b4   :  { %3335 = vmatpush1.bf16.msra.mxu0 %v1979_v25  ;;  %3172 = vmatprep.subr.bf16.mxu1 %v2498_v61  ;;  %v2060_v25 = vld [vmem:[#allocation2 + $0x1128] sm:$0xff]  ;;  %v1550_v61 = vld [vmem:[#allocation2 + $0x138] sm:$0xff] }
 0x4b5   :  { %3336 = vmatprep.subr.bf16.mxu0 %v1988_v57  ;;  %v1549_v57 = vld [vmem:[#allocation2 + $0x130] sm:$0xff] }
 0x4b7   :  { %3173 = vmatpush1.bf16.msra.mxu1 %v2497_v22  ;;  %v2068_v22 = vld [vmem:[#allocation2 + $0x1168] sm:$0xff] }
 0x4b8   :  { %3337 = vmatpush1.bf16.msra.mxu0 %v1987_v35  ;;  %3174 = vmatprep.subr.bf16.mxu1 %v2506_v29  ;;  %v1558_v35 = vld [vmem:[#allocation2 + $0x178] sm:$0xff]  ;;  %v2067_v29 = vld [vmem:[#allocation2 + $0x1160] sm:$0xff] }
 0x4b9   :  { %3338 = vmatprep.subr.bf16.mxu0 %v1996_v47  ;;  %v1557_v47 = vld [vmem:[#allocation2 + $0x170] sm:$0xff] }
 0x4bb   :  { %3175 = vmatpush1.bf16.msra.mxu1 %v2505_v4  ;;  %v2076_v4 = vld [vmem:[#allocation2 + $0x11a8] sm:$0xff] }
 0x4bc   :  { %3339 = vmatpush1.bf16.msra.mxu0 %v1995_v19  ;;  %3176 = vmatprep.subr.bf16.mxu1 %v2514_v58  ;;  %v1566_v19 = vld [vmem:[#allocation2 + $0x1b8] sm:$0xff]  ;;  %v2075_v58 = vld [vmem:[#allocation2 + $0x11a0] sm:$0xff] }
 0x4bd   :  { %3340 = vmatprep.subr.bf16.mxu0 %v2004_v0  ;;  %v1565_v0 = vld [vmem:[#allocation2 + $0x1b0] sm:$0xff] }
 0x4bf   :  { %3177 = vmatpush1.bf16.msra.mxu1 %v2513_v8  ;;  %v2084_v8 = vld [vmem:[#allocation2 + $0x11e8] sm:$0xff] }
 0x4c0   :  { %3341 = vmatpush1.bf16.msra.mxu0 %v2003_v56  ;;  %3178 = vmatprep.subr.bf16.mxu1 %v2522_v34  ;;  %v1574_v56 = vld [vmem:[#allocation2 + $0x1f8] sm:$0xff]  ;;  %v2083_v34 = vld [vmem:[#allocation2 + $0x11e0] sm:$0xff] }
 0x4c1   :  { %3342 = vmatprep.subr.bf16.mxu0 %v2012_v36  ;;  %v1573_v36 = vld [vmem:[#allocation2 + $0x1f0] sm:$0xff] }
 0x4c3   :  { %3179 = vmatpush1.bf16.msra.mxu1 %v2521_v3  ;;  %v2092_v3 = vld [vmem:[#allocation2 + $0x1228] sm:$0xff] }
 0x4c4   :  { %3343 = vmatpush1.bf16.msra.mxu0 %v2011_v63  ;;  %3180 = vmatprep.subr.bf16.mxu1 %v2530_v30  ;;  %v1582_v63 = vld [vmem:[#allocation2 + $0x238] sm:$0xff]  ;;  %v2091_v30 = vld [vmem:[#allocation2 + $0x1220] sm:$0xff] }
 0x4c5   :  { %3344 = vmatprep.subr.bf16.mxu0 %v2020_v42  ;;  %v1581_v42 = vld [vmem:[#allocation2 + $0x230] sm:$0xff] }
 0x4c7   :  { %3181 = vmatpush1.bf16.msra.mxu1 %v2529_v49  ;;  %v2100_v49 = vld [vmem:[#allocation2 + $0x1268] sm:$0xff] }
 0x4c8   :  { %3345 = vmatpush1.bf16.msra.mxu0 %v2019_v5  ;;  %3519 = vmatprep.subr.bf16.mxu1 %v1518_v40  ;;  %v1590_v5 = vld [vmem:[#allocation2 + $0x278] sm:$0xff]  ;;  %v1589_v40 = vld [vmem:[#allocation2 + $0x270] sm:$0xff] }
 0x4c9   :  { %3355 = vmatprep.subr.bf16.mxu0 %v2028_v39  ;;  %v2099_v39 = vld [vmem:[#allocation2 + $0x1260] sm:$0xff] }
 0x4ca   :  { %3183 = vmatmul.mubr.bf16.vlgmr.msra.gmra.mrb[12].mxu1 %v7092_v37 }
 0x4cb   :  { %3347 = vmatmul.mubr.bf16.vlgmr.msra.gmra.mrb[28].mxu0 %v7032_v18  ;;  %3520 = vmatpush1.bf16.msra.mxu1 %v1517_v46  ;;  %v1598_v46 = vld [vmem:[#allocation2 + $0x2b8] sm:$0xff] }
 0x4cc   :  { %3356 = vmatpush1.bf16.msra.mxu0 %v2027_v27  ;;  %3521 = vmatprep.subr.bf16.mxu1 %v1526_v33  ;;  %v2108_v27 = vld [vmem:[#allocation2 + $0x12a8] sm:$0xff]  ;;  %v1597_v33 = vld [vmem:[#allocation2 + $0x2b0] sm:$0xff] }
 0x4cd   :  { %3357 = vmatprep.subr.bf16.mxu0 %v2036_v6  ;;  %3387 = vmatprep.mubr.bf16.mxu0 %v7037_v62  ;;  %v2107_v6 = vld [vmem:[#allocation2 + $0x12a0] sm:$0xff] }
 0x4ce   :  { %3551 = vmatprep.mubr.bf16.mxu1 %v6991_v26  ;;  %v2059_v26 = vld [vmem:[#allocation2 + $0x1120] sm:$0xff] }
 0x4cf   :  { %3522 = vmatpush1.bf16.msra.mxu1 %v1525_v43  ;;  %v1606_v43 = vld [vmem:[#allocation2 + $0x2f8] sm:$0xff] }
 0x4d0   :  { %3358 = vmatpush1.bf16.msra.mxu0 %v2035_v45  ;;  %3523 = vmatprep.subr.bf16.mxu1 %v1534_v13  ;;  %v2116_v45 = vld [vmem:[#allocation2 + $0x12e8] sm:$0xff]  ;;  %v1605_v13 = vld [vmem:[#allocation2 + $0x2f0] sm:$0xff] }
 0x4d1   :  { %3359 = vmatprep.subr.bf16.mxu0 %v2044_v11  ;;  %v2115_v11 = vld [vmem:[#allocation2 + $0x12e0] sm:$0xff] }
 0x4d3   :  { %3524 = vmatpush1.bf16.msra.mxu1 %v1533_v44  ;;  %v1614_v44 = vld [vmem:[#allocation2 + $0x338] sm:$0xff] }
 0x4d4   :  { %3360 = vmatpush1.bf16.msra.mxu0 %v2043_v32  ;;  %3525 = vmatprep.subr.bf16.mxu1 %v1542_v1  ;;  %v2124_v32 = vld [vmem:[#allocation2 + $0x1328] sm:$0xff]  ;;  %v1613_v1 = vld [vmem:[#allocation2 + $0x330] sm:$0xff] }
 0x4d5   :  { %3361 = vmatprep.subr.bf16.mxu0 %v2052_v14  ;;  %v2123_v14 = vld [vmem:[#allocation2 + $0x1320] sm:$0xff] }
 0x4d7   :  { %3526 = vmatpush1.bf16.msra.mxu1 %v1541_v52  ;;  %v1622_v52 = vld [vmem:[#allocation2 + $0x378] sm:$0xff] }
 0x4d8   :  { %3362 = vmatpush1.bf16.msra.mxu0 %v2051_v51  ;;  %3527 = vmatprep.subr.bf16.mxu1 %v1550_v61  ;;  %v2132_v51 = vld [vmem:[#allocation2 + $0x1368] sm:$0xff]  ;;  %v1621_v61 = vld [vmem:[#allocation2 + $0x370] sm:$0xff] }
 0x4d9   :  { %3363 = vmatprep.subr.bf16.mxu0 %v2060_v25  ;;  %v2131_v25 = vld [vmem:[#allocation2 + $0x1360] sm:$0xff] }
 0x4db   :  { %3528 = vmatpush1.bf16.msra.mxu1 %v1549_v57  ;;  %v1630_v57 = vld [vmem:[#allocation2 + $0x3b8] sm:$0xff] }
 0x4dc   :  { %3364 = vmatpush1.bf16.msra.mxu0 %v2059_v26  ;;  %3529 = vmatprep.subr.bf16.mxu1 %v1558_v35  ;;  %v2140_v26 = vld [vmem:[#allocation2 + $0x13a8] sm:$0xff]  ;;  %v1629_v35 = vld [vmem:[#allocation2 + $0x3b0] sm:$0xff] }
 0x4dd   :  { %3365 = vmatprep.subr.bf16.mxu0 %v2068_v22  ;;  %v2139_v22 = vld [vmem:[#allocation2 + $0x13a0] sm:$0xff] }
 0x4df   :  { %3530 = vmatpush1.bf16.msra.mxu1 %v1557_v47  ;;  %v1638_v47 = vld [vmem:[#allocation2 + $0x3f8] sm:$0xff] }
 0x4e0   :  { %3366 = vmatpush1.bf16.msra.mxu0 %v2067_v29  ;;  %3531 = vmatprep.subr.bf16.mxu1 %v1566_v19  ;;  %v2148_v29 = vld [vmem:[#allocation2 + $0x13e8] sm:$0xff]  ;;  %v1637_v19 = vld [vmem:[#allocation2 + $0x3f0] sm:$0xff] }
 0x4e1   :  { %3367 = vmatprep.subr.bf16.mxu0 %v2076_v4  ;;  %v2147_v4 = vld [vmem:[#allocation2 + $0x13e0] sm:$0xff] }
 0x4e3   :  { %3532 = vmatpush1.bf16.msra.mxu1 %v1565_v0  ;;  %v1646_v0 = vld [vmem:[#allocation2 + $0x438] sm:$0xff] }
 0x4e4   :  { %3368 = vmatpush1.bf16.msra.mxu0 %v2075_v58  ;;  %3533 = vmatprep.subr.bf16.mxu1 %v1574_v56  ;;  %v2156_v58 = vld [vmem:[#allocation2 + $0x1428] sm:$0xff]  ;;  %v1645_v56 = vld [vmem:[#allocation2 + $0x430] sm:$0xff] }
 0x4e5   :  { %3369 = vmatprep.subr.bf16.mxu0 %v2084_v8  ;;  %v2155_v8 = vld [vmem:[#allocation2 + $0x1420] sm:$0xff] }
 0x4e7   :  { %3534 = vmatpush1.bf16.msra.mxu1 %v1573_v36  ;;  %v1654_v36 = vld [vmem:[#allocation2 + $0x478] sm:$0xff] }
 0x4e8   :  { %3370 = vmatpush1.bf16.msra.mxu0 %v2083_v34  ;;  %3535 = vmatprep.subr.bf16.mxu1 %v1582_v63  ;;  %v2164_v34 = vld [vmem:[#allocation2 + $0x1468] sm:$0xff]  ;;  %v1653_v63 = vld [vmem:[#allocation2 + $0x470] sm:$0xff] }
 0x4e9   :  { %3371 = vmatprep.subr.bf16.mxu0 %v2092_v3  ;;  %v2163_v3 = vld [vmem:[#allocation2 + $0x1460] sm:$0xff] }
 0x4eb   :  { %3536 = vmatpush1.bf16.msra.mxu1 %v1581_v42  ;;  %v1662_v42 = vld [vmem:[#allocation2 + $0x4b8] sm:$0xff] }
 0x4ec   :  { %3372 = vmatpush1.bf16.msra.mxu0 %v2091_v30  ;;  %3537 = vmatprep.subr.bf16.mxu1 %v1590_v5  ;;  %v2172_v30 = vld [vmem:[#allocation2 + $0x14a8] sm:$0xff]  ;;  %v1661_v5 = vld [vmem:[#allocation2 + $0x4b0] sm:$0xff] }
 0x4ed   :  { %3373 = vmatprep.subr.bf16.mxu0 %v2100_v49  ;;  %v2171_v49 = vld [vmem:[#allocation2 + $0x14a0] sm:$0xff] }
 0x4ef   :  { %3538 = vmatpush1.bf16.msra.mxu1 %v1589_v40  ;;  %v2179_v40 = vld [vmem:[#allocation2 + $0x14e0] sm:$0xff] }
 0x4f0   :  { %3374 = vmatpush1.bf16.msra.mxu0 %v2099_v39  ;;  %3539 = vmatprep.subr.bf16.mxu1 %v1598_v46  ;;  %v2180_v39 = vld [vmem:[#allocation2 + $0x14e8] sm:$0xff] }
 0x4f1   :  { %3375 = vmatprep.subr.bf16.mxu0 %v2108_v27  ;;  %v1669_v27 = vld [vmem:[#allocation2 + $0x4f0] sm:$0xff]  ;;  %v2188_v46 = vld [vmem:[#allocation2 + $0x1528] sm:$0xff] }
 0x4f3   :  { %3540 = vmatpush1.bf16.msra.mxu1 %v1597_v33  ;;  %v1677_v33 = vld [vmem:[#allocation2 + $0x530] sm:$0xff] }
 0x4f4   :  { %3376 = vmatpush1.bf16.msra.mxu0 %v2107_v6  ;;  %3541 = vmatprep.subr.bf16.mxu1 %v1606_v43  ;;  %v1678_v6 = vld [vmem:[#allocation2 + $0x538] sm:$0xff] }
 0x4f5   :  { %3377 = vmatprep.subr.bf16.mxu0 %v2116_v45  ;;  %v2196_v45 = vld [vmem:[#allocation2 + $0x1568] sm:$0xff]  ;;  %v1686_v43 = vld [vmem:[#allocation2 + $0x578] sm:$0xff] }
 0x4f7   :  { %3542 = vmatpush1.bf16.msra.mxu1 %v1605_v13  ;;  %v1685_v13 = vld [vmem:[#allocation2 + $0x570] sm:$0xff] }
 0x4f8   :  { %3378 = vmatpush1.bf16.msra.mxu0 %v2115_v11  ;;  %3543 = vmatprep.subr.bf16.mxu1 %v1614_v44  ;;  %v2195_v11 = vld [vmem:[#allocation2 + $0x1560] sm:$0xff]  ;;  %v1694_v44 = vld [vmem:[#allocation2 + $0x5b8] sm:$0xff] }
 0x4f9   :  { %3379 = vmatprep.subr.bf16.mxu0 %v2124_v32  ;;  %v2204_v32 = vld [vmem:[#allocation2 + $0x15a8] sm:$0xff] }
 0x4fb   :  { %3544 = vmatpush1.bf16.msra.mxu1 %v1613_v1  ;;  %v1693_v1 = vld [vmem:[#allocation2 + $0x5b0] sm:$0xff] }
 0x4fc   :  { %3380 = vmatpush1.bf16.msra.mxu0 %v2123_v14  ;;  %3545 = vmatprep.subr.bf16.mxu1 %v1622_v52  ;;  %v2203_v14 = vld [vmem:[#allocation2 + $0x15a0] sm:$0xff]  ;;  %v1702_v52 = vld [vmem:[#allocation2 + $0x5f8] sm:$0xff] }
 0x4fd   :  { %3381 = vmatprep.subr.bf16.mxu0 %v2132_v51  ;;  %v2212_v51 = vld [vmem:[#allocation2 + $0x15e8] sm:$0xff] }
 0x4ff   :  { %3546 = vmatpush1.bf16.msra.mxu1 %v1621_v61  ;;  %v1701_v61 = vld [vmem:[#allocation2 + $0x5f0] sm:$0xff] }
 0x500   :  { %3382 = vmatpush1.bf16.msra.mxu0 %v2131_v25  ;;  %3547 = vmatprep.subr.bf16.mxu1 %v1630_v57  ;;  %v2211_v25 = vld [vmem:[#allocation2 + $0x15e0] sm:$0xff]  ;;  %v1710_v57 = vld [vmem:[#allocation2 + $0x638] sm:$0xff] }
 0x501   :  { %3383 = vmatprep.subr.bf16.mxu0 %v2140_v26  ;;  %v2220_v26 = vld [vmem:[#allocation2 + $0x1628] sm:$0xff] }
 0x503   :  { %3548 = vmatpush1.bf16.msra.mxu1 %v1629_v35  ;;  %v1709_v35 = vld [vmem:[#allocation2 + $0x630] sm:$0xff] }
 0x504   :  { %3384 = vmatpush1.bf16.msra.mxu0 %v2139_v22  ;;  %3549 = vmatprep.subr.bf16.mxu1 %v1638_v47  ;;  %v2219_v22 = vld [vmem:[#allocation2 + $0x1620] sm:$0xff]  ;;  %v1718_v47 = vld [vmem:[#allocation2 + $0x678] sm:$0xff] }
 0x505   :  { %3385 = vmatprep.subr.bf16.mxu0 %v2148_v29  ;;  %v2228_v29 = vld [vmem:[#allocation2 + $0x1668] sm:$0xff] }
 0x507   :  { %3550 = vmatpush1.bf16.msra.mxu1 %v1637_v19  ;;  %v1717_v19 = vld [vmem:[#allocation2 + $0x670] sm:$0xff] }
 0x508   :  { %3386 = vmatpush1.bf16.msra.mxu0 %v2147_v4  ;;  %3560 = vmatprep.subr.bf16.mxu1 %v1646_v0  ;;  %v2227_v4 = vld [vmem:[#allocation2 + $0x1660] sm:$0xff]  ;;  %v1726_v0 = vld [vmem:[#allocation2 + $0x6b8] sm:$0xff] }
 0x509   :  { %3396 = vmatprep.subr.bf16.mxu0 %v2156_v58  ;;  %v2236_v58 = vld [vmem:[#allocation2 + $0x16a8] sm:$0xff] }
 0x50a   :  { %3552 = vmatmul.mubr.bf16.vlgmr.msra.gmra.mrb[16].mxu1 %v7003_v55  ;;  %v1670_v55 = vld [vmem:[#allocation2 + $0x4f8] sm:$0xff] }
 0x50b   :  { %3388 = vmatmul.mubr.bf16.vlgmr.msra.gmra.mrb[28].mxu0 %v7046_v53  ;;  %3561 = vmatpush1.bf16.msra.mxu1 %v1645_v56  ;;  %v1725_v56 = vld [vmem:[#allocation2 + $0x6b0] sm:$0xff] }
 0x50c   :  { %3397 = vmatpush1.bf16.msra.mxu0 %v2155_v8  ;;  %3562 = vmatprep.subr.bf16.mxu1 %v1654_v36  ;;  %v2235_v8 = vld [vmem:[#allocation2 + $0x16a0] sm:$0xff]  ;;  %v1734_v36 = vld [vmem:[#allocation2 + $0x6f8] sm:$0xff] }
 0x50d   :  { %3398 = vmatprep.subr.bf16.mxu0 %v2164_v34  ;;  %3428 = vmatprep.mubr.bf16.mxu0 %v7051_v48  ;;  %v2244_v34 = vld [vmem:[#allocation2 + $0x16e8] sm:$0xff] }
 0x50e   :  { %3592 = vmatprep.mubr.bf16.mxu1 %v7013_v38  ;;  %v2187_v38 = vld [vmem:[#allocation2 + $0x1520] sm:$0xff] }
 0x50f   :  { %3563 = vmatpush1.bf16.msra.mxu1 %v1653_v63  ;;  %v1733_v63 = vld [vmem:[#allocation2 + $0x6f0] sm:$0xff] }
 0x510   :  { %3399 = vmatpush1.bf16.msra.mxu0 %v2163_v3  ;;  %3564 = vmatprep.subr.bf16.mxu1 %v1662_v42  ;;  %v2243_v3 = vld [vmem:[#allocation2 + $0x16e0] sm:$0xff]  ;;  %v1742_v42 = vld [vmem:[#allocation2 + $0x738] sm:$0xff] }
 0x511   :  { %3400 = vmatprep.subr.bf16.mxu0 %v2172_v30  ;;  %v2252_v30 = vld [vmem:[#allocation2 + $0x1728] sm:$0xff] }
 0x513   :  { %3565 = vmatpush1.bf16.msra.mxu1 %v1661_v5  ;;  %v1741_v5 = vld [vmem:[#allocation2 + $0x730] sm:$0xff] }
 0x514   :  { %3401 = vmatpush1.bf16.msra.mxu0 %v2171_v49  ;;  %3566 = vmatprep.subr.bf16.mxu1 %v1670_v55  ;;  %v2251_v49 = vld [vmem:[#allocation2 + $0x1720] sm:$0xff]  ;;  %v1750_v55 = vld [vmem:[#allocation2 + $0x778] sm:$0xff] }
 0x515   :  { %3402 = vmatprep.subr.bf16.mxu0 %v2180_v39  ;;  %v2260_v39 = vld [vmem:[#allocation2 + $0x1768] sm:$0xff] }
 0x517   :  { %3567 = vmatpush1.bf16.msra.mxu1 %v1669_v27  ;;  %v1749_v27 = vld [vmem:[#allocation2 + $0x770] sm:$0xff] }
 0x518   :  { %3403 = vmatpush1.bf16.msra.mxu0 %v2179_v40  ;;  %3568 = vmatprep.subr.bf16.mxu1 %v1678_v6  ;;  %v2259_v40 = vld [vmem:[#allocation2 + $0x1760] sm:$0xff]  ;;  %v1758_v6 = vld [vmem:[#allocation2 + $0x7b8] sm:$0xff] }
 0x519   :  { %3404 = vmatprep.subr.bf16.mxu0 %v2188_v46  ;;  %v2268_v46 = vld [vmem:[#allocation2 + $0x17a8] sm:$0xff] }
 0x51b   :  { %3569 = vmatpush1.bf16.msra.mxu1 %v1677_v33  ;;  %v1757_v33 = vld [vmem:[#allocation2 + $0x7b0] sm:$0xff] }
 0x51c   :  { %3405 = vmatpush1.bf16.msra.mxu0 %v2187_v38  ;;  %3570 = vmatprep.subr.bf16.mxu1 %v1686_v43  ;;  %v2267_v38 = vld [vmem:[#allocation2 + $0x17a0] sm:$0xff]  ;;  %v1766_v43 = vld [vmem:[#allocation2 + $0x7f8] sm:$0xff] }
 0x51d   :  { %3406 = vmatprep.subr.bf16.mxu0 %v2196_v45  ;;  %v2276_v45 = vld [vmem:[#allocation2 + $0x17e8] sm:$0xff] }
 0x51f   :  { %3571 = vmatpush1.bf16.msra.mxu1 %v1685_v13  ;;  %v1765_v13 = vld [vmem:[#allocation2 + $0x7f0] sm:$0xff] }
 0x520   :  { %3407 = vmatpush1.bf16.msra.mxu0 %v2195_v11  ;;  %3572 = vmatprep.subr.bf16.mxu1 %v1694_v44  ;;  %v2275_v11 = vld [vmem:[#allocation2 + $0x17e0] sm:$0xff]  ;;  %v1774_v44 = vld [vmem:[#allocation2 + $0x838] sm:$0xff] }
 0x521   :  { %3408 = vmatprep.subr.bf16.mxu0 %v2204_v32  ;;  %v2284_v32 = vld [vmem:[#allocation2 + $0x1828] sm:$0xff] }
 0x523   :  { %3573 = vmatpush1.bf16.msra.mxu1 %v1693_v1  ;;  %v1773_v1 = vld [vmem:[#allocation2 + $0x830] sm:$0xff] }
 0x524   :  { %3409 = vmatpush1.bf16.msra.mxu0 %v2203_v14  ;;  %3574 = vmatprep.subr.bf16.mxu1 %v1702_v52  ;;  %v2283_v14 = vld [vmem:[#allocation2 + $0x1820] sm:$0xff]  ;;  %v1782_v52 = vld [vmem:[#allocation2 + $0x878] sm:$0xff] }
 0x525   :  { %3410 = vmatprep.subr.bf16.mxu0 %v2212_v51  ;;  %v2292_v51 = vld [vmem:[#allocation2 + $0x1868] sm:$0xff] }
 0x527   :  { %3575 = vmatpush1.bf16.msra.mxu1 %v1701_v61  ;;  %v1781_v61 = vld [vmem:[#allocation2 + $0x870] sm:$0xff] }
 0x528   :  { %3411 = vmatpush1.bf16.msra.mxu0 %v2211_v25  ;;  %3576 = vmatprep.subr.bf16.mxu1 %v1710_v57  ;;  %v2291_v25 = vld [vmem:[#allocation2 + $0x1860] sm:$0xff]  ;;  %v1790_v57 = vld [vmem:[#allocation2 + $0x8b8] sm:$0xff] }
 0x529   :  { %3412 = vmatprep.subr.bf16.mxu0 %v2220_v26  ;;  %v2300_v26 = vld [vmem:[#allocation2 + $0x18a8] sm:$0xff] }
 0x52b   :  { %3577 = vmatpush1.bf16.msra.mxu1 %v1709_v35  ;;  %v1789_v35 = vld [vmem:[#allocation2 + $0x8b0] sm:$0xff] }
 0x52c   :  { %3413 = vmatpush1.bf16.msra.mxu0 %v2219_v22  ;;  %3578 = vmatprep.subr.bf16.mxu1 %v1718_v47  ;;  %v2299_v22 = vld [vmem:[#allocation2 + $0x18a0] sm:$0xff] }
 0x52d   :  { %3414 = vmatprep.subr.bf16.mxu0 %v2228_v29  ;;  %v2308_v29 = vld [vmem:[#allocation2 + $0x18e8] sm:$0xff]  ;;  %v2307_v47 = vld [vmem:[#allocation2 + $0x18e0] sm:$0xff] }
 0x52f   :  { %3579 = vmatpush1.bf16.msra.mxu1 %v1717_v19  ;;  %v2316_v19 = vld [vmem:[#allocation2 + $0x1928] sm:$0xff] }
 0x530   :  { %3415 = vmatpush1.bf16.msra.mxu0 %v2227_v4  ;;  %3580 = vmatprep.subr.bf16.mxu1 %v1726_v0  ;;  %v1797_v4 = vld [vmem:[#allocation2 + $0x8f0] sm:$0xff] }
 0x531   :  { %3416 = vmatprep.subr.bf16.mxu0 %v2236_v58  ;;  %v1806_v58 = vld [vmem:[#allocation2 + $0x938] sm:$0xff]  ;;  %v1805_v0 = vld [vmem:[#allocation2 + $0x930] sm:$0xff] }
 0x533   :  { %3581 = vmatpush1.bf16.msra.mxu1 %v1725_v56  ;;  %v1814_v56 = vld [vmem:[#allocation2 + $0x978] sm:$0xff] }
 0x534   :  { %3417 = vmatpush1.bf16.msra.mxu0 %v2235_v8  ;;  %3582 = vmatprep.subr.bf16.mxu1 %v1734_v36  ;;  %v2324_v8 = vld [vmem:[#allocation2 + $0x1968] sm:$0xff]  ;;  %v1813_v36 = vld [vmem:[#allocation2 + $0x970] sm:$0xff] }
 0x535   :  { %3418 = vmatprep.subr.bf16.mxu0 %v2244_v34  ;;  %v2323_v34 = vld [vmem:[#allocation2 + $0x1960] sm:$0xff] }
 0x537   :  { %3583 = vmatpush1.bf16.msra.mxu1 %v1733_v63  ;;  %v1822_v63 = vld [vmem:[#allocation2 + $0x9b8] sm:$0xff] }
 0x538   :  { %3419 = vmatpush1.bf16.msra.mxu0 %v2243_v3  ;;  %3584 = vmatprep.subr.bf16.mxu1 %v1742_v42  ;;  %v2332_v3 = vld [vmem:[#allocation2 + $0x19a8] sm:$0xff]  ;;  %v1821_v42 = vld [vmem:[#allocation2 + $0x9b0] sm:$0xff] }
 0x539   :  { %3420 = vmatprep.subr.bf16.mxu0 %v2252_v30  ;;  %v2331_v30 = vld [vmem:[#allocation2 + $0x19a0] sm:$0xff] }
 0x53b   :  { %3585 = vmatpush1.bf16.msra.mxu1 %v1741_v5  ;;  %v1830_v5 = vld [vmem:[#allocation2 + $0x9f8] sm:$0xff] }
 0x53c   :  { %3421 = vmatpush1.bf16.msra.mxu0 %v2251_v49  ;;  %3586 = vmatprep.subr.bf16.mxu1 %v1750_v55  ;;  %v2340_v49 = vld [vmem:[#allocation2 + $0x19e8] sm:$0xff]  ;;  %v1829_v55 = vld [vmem:[#allocation2 + $0x9f0] sm:$0xff] }
 0x53d   :  { %3422 = vmatprep.subr.bf16.mxu0 %v2260_v39  ;;  %v2339_v39 = vld [vmem:[#allocation2 + $0x19e0] sm:$0xff] }
 0x53f   :  { %3587 = vmatpush1.bf16.msra.mxu1 %v1749_v27  ;;  %v1838_v27 = vld [vmem:[#allocation2 + $0xa38] sm:$0xff] }
 0x540   :  { %3423 = vmatpush1.bf16.msra.mxu0 %v2259_v40  ;;  %3588 = vmatprep.subr.bf16.mxu1 %v1758_v6  ;;  %v2348_v40 = vld [vmem:[#allocation2 + $0x1a28] sm:$0xff]  ;;  %v1837_v6 = vld [vmem:[#allocation2 + $0xa30] sm:$0xff] }
 0x541   :  { %3424 = vmatprep.subr.bf16.mxu0 %v2268_v46  ;;  %v2347_v46 = vld [vmem:[#allocation2 + $0x1a20] sm:$0xff] }
 0x543   :  { %3589 = vmatpush1.bf16.msra.mxu1 %v1757_v33  ;;  %v1846_v33 = vld [vmem:[#allocation2 + $0xa78] sm:$0xff] }
 0x544   :  { %3425 = vmatpush1.bf16.msra.mxu0 %v2267_v38  ;;  %3590 = vmatprep.subr.bf16.mxu1 %v1766_v43  ;;  %v2356_v38 = vld [vmem:[#allocation2 + $0x1a68] sm:$0xff]  ;;  %v1845_v43 = vld [vmem:[#allocation2 + $0xa70] sm:$0xff] }
 0x545   :  { %3426 = vmatprep.subr.bf16.mxu0 %v2276_v45  ;;  %v2355_v45 = vld [vmem:[#allocation2 + $0x1a60] sm:$0xff] }
 0x547   :  { %3591 = vmatpush1.bf16.msra.mxu1 %v1765_v13  ;;  %v1854_v13 = vld [vmem:[#allocation2 + $0xab8] sm:$0xff] }
 0x548   :  { %3427 = vmatpush1.bf16.msra.mxu0 %v2275_v11  ;;  %3601 = vmatprep.subr.bf16.mxu1 %v1774_v44  ;;  %v2364_v11 = vld [vmem:[#allocation2 + $0x1aa8] sm:$0xff]  ;;  %v1853_v44 = vld [vmem:[#allocation2 + $0xab0] sm:$0xff] }
 0x549   :  { %3437 = vmatprep.subr.bf16.mxu0 %v2284_v32  ;;  %v2363_v32 = vld [vmem:[#allocation2 + $0x1aa0] sm:$0xff] }
 0x54a   :  { %3593 = vmatmul.mubr.bf16.vlgmr.msra.gmra.mrb[16].mxu1 %v7027_v10  ;;  %v1798_v10 = vld [vmem:[#allocation2 + $0x8f8] sm:$0xff] }
 0x54b   :  { %3429 = vmatmul.mubr.bf16.vlgmr.msra.gmra.mrb[28].mxu0 %v7060_v20  ;;  %3602 = vmatpush1.bf16.msra.mxu1 %v1773_v1  ;;  %v1862_v1 = vld [vmem:[#allocation2 + $0xaf8] sm:$0xff] }
 0x54c   :  { %3438 = vmatpush1.bf16.msra.mxu0 %v2283_v14  ;;  %3603 = vmatprep.subr.bf16.mxu1 %v1782_v52  ;;  %v2372_v14 = vld [vmem:[#allocation2 + $0x1ae8] sm:$0xff]  ;;  %v1861_v52 = vld [vmem:[#allocation2 + $0xaf0] sm:$0xff] }
 0x54d   :  { %3439 = vmatprep.subr.bf16.mxu0 %v2292_v51  ;;  %3469 = vmatprep.mubr.bf16.mxu0 %v7065_v54  ;;  %v2371_v51 = vld [vmem:[#allocation2 + $0x1ae0] sm:$0xff] }
 0x54e   :  { %3633 = vmatprep.mubr.bf16.mxu1 %v6996_v12  ;;  %v2315_v12 = vld [vmem:[#allocation2 + $0x1920] sm:$0xff] }
 0x54f   :  { %3604 = vmatpush1.bf16.msra.mxu1 %v1781_v61  ;;  %v1870_v61 = vld [vmem:[#allocation2 + $0xb38] sm:$0xff] }
 0x550   :  { %3440 = vmatpush1.bf16.msra.mxu0 %v2291_v25  ;;  %3605 = vmatprep.subr.bf16.mxu1 %v1790_v57  ;;  %v2380_v25 = vld [vmem:[#allocation2 + $0x1b28] sm:$0xff]  ;;  %v1869_v57 = vld [vmem:[#allocation2 + $0xb30] sm:$0xff] }
 0x551   :  { %3441 = vmatprep.subr.bf16.mxu0 %v2300_v26  ;;  %v2379_v26 = vld [vmem:[#allocation2 + $0x1b20] sm:$0xff] }
 0x553   :  { %3606 = vmatpush1.bf16.msra.mxu1 %v1789_v35  ;;  %v1878_v35 = vld [vmem:[#allocation2 + $0xb78] sm:$0xff] }
 0x554   :  { %3442 = vmatpush1.bf16.msra.mxu0 %v2299_v22  ;;  %3607 = vmatprep.subr.bf16.mxu1 %v1798_v10  ;;  %v2388_v22 = vld [vmem:[#allocation2 + $0x1b68] sm:$0xff]  ;;  %v1877_v10 = vld [vmem:[#allocation2 + $0xb70] sm:$0xff] }
 0x555   :  { %3443 = vmatprep.subr.bf16.mxu0 %v2308_v29  ;;  %v2387_v29 = vld [vmem:[#allocation2 + $0x1b60] sm:$0xff] }
 0x557   :  { %3608 = vmatpush1.bf16.msra.mxu1 %v1797_v4  ;;  %v1886_v4 = vld [vmem:[#allocation2 + $0xbb8] sm:$0xff] }
 0x558   :  { %3444 = vmatpush1.bf16.msra.mxu0 %v2307_v47  ;;  %3609 = vmatprep.subr.bf16.mxu1 %v1806_v58  ;;  %v2396_v47 = vld [vmem:[#allocation2 + $0x1ba8] sm:$0xff]  ;;  %v1885_v58 = vld [vmem:[#allocation2 + $0xbb0] sm:$0xff] }
 0x559   :  { %3445 = vmatprep.subr.bf16.mxu0 %v2316_v19  ;;  %v2395_v19 = vld [vmem:[#allocation2 + $0x1ba0] sm:$0xff] }
 0x55b   :  { %3610 = vmatpush1.bf16.msra.mxu1 %v1805_v0  ;;  %v1894_v0 = vld [vmem:[#allocation2 + $0xbf8] sm:$0xff] }
 0x55c   :  { %3446 = vmatpush1.bf16.msra.mxu0 %v2315_v12  ;;  %3611 = vmatprep.subr.bf16.mxu1 %v1814_v56  ;;  %v2404_v12 = vld [vmem:[#allocation2 + $0x1be8] sm:$0xff]  ;;  %v1893_v56 = vld [vmem:[#allocation2 + $0xbf0] sm:$0xff] }
 0x55d   :  { %3447 = vmatprep.subr.bf16.mxu0 %v2324_v8  ;;  %v2403_v8 = vld [vmem:[#allocation2 + $0x1be0] sm:$0xff] }
 0x55f   :  { %3612 = vmatpush1.bf16.msra.mxu1 %v1813_v36  ;;  %v1902_v36 = vld [vmem:[#allocation2 + $0xc38] sm:$0xff] }
 0x560   :  { %3448 = vmatpush1.bf16.msra.mxu0 %v2323_v34  ;;  %3613 = vmatprep.subr.bf16.mxu1 %v1822_v63  ;;  %v2412_v34 = vld [vmem:[#allocation2 + $0x1c28] sm:$0xff]  ;;  %v1901_v63 = vld [vmem:[#allocation2 + $0xc30] sm:$0xff] }
 0x561   :  { %3449 = vmatprep.subr.bf16.mxu0 %v2332_v3  ;;  %v2411_v3 = vld [vmem:[#allocation2 + $0x1c20] sm:$0xff] }
 0x563   :  { %3614 = vmatpush1.bf16.msra.mxu1 %v1821_v42  ;;  %v1910_v42 = vld [vmem:[#allocation2 + $0xc78] sm:$0xff] }
 0x564   :  { %3450 = vmatpush1.bf16.msra.mxu0 %v2331_v30  ;;  %3615 = vmatprep.subr.bf16.mxu1 %v1830_v5  ;;  %v2420_v30 = vld [vmem:[#allocation2 + $0x1c68] sm:$0xff]  ;;  %v1909_v5 = vld [vmem:[#allocation2 + $0xc70] sm:$0xff] }
 0x565   :  { %3451 = vmatprep.subr.bf16.mxu0 %v2340_v49  ;;  %v2419_v49 = vld [vmem:[#allocation2 + $0x1c60] sm:$0xff] }
 0x567   :  { %3616 = vmatpush1.bf16.msra.mxu1 %v1829_v55  ;;  %v1918_v55 = vld [vmem:[#allocation2 + $0xcb8] sm:$0xff] }
 0x568   :  { %3452 = vmatpush1.bf16.msra.mxu0 %v2339_v39  ;;  %3617 = vmatprep.subr.bf16.mxu1 %v1838_v27  ;;  %v2428_v39 = vld [vmem:[#allocation2 + $0x1ca8] sm:$0xff]  ;;  %v1917_v27 = vld [vmem:[#allocation2 + $0xcb0] sm:$0xff] }
 0x569   :  { %3453 = vmatprep.subr.bf16.mxu0 %v2348_v40  ;;  %v2427_v40 = vld [vmem:[#allocation2 + $0x1ca0] sm:$0xff] }
 0x56b   :  { %3618 = vmatpush1.bf16.msra.mxu1 %v1837_v6  ;;  %v2435_v6 = vld [vmem:[#allocation2 + $0x1ce0] sm:$0xff] }
 0x56c   :  { %3454 = vmatpush1.bf16.msra.mxu0 %v2347_v46  ;;  %3619 = vmatprep.subr.bf16.mxu1 %v1846_v33  ;;  %v2436_v46 = vld [vmem:[#allocation2 + $0x1ce8] sm:$0xff] }
 0x56d   :  { %3455 = vmatprep.subr.bf16.mxu0 %v2356_v38  ;;  %v1925_v38 = vld [vmem:[#allocation2 + $0xcf0] sm:$0xff]  ;;  %v2444_v33 = vld [vmem:[#allocation2 + $0x1d28] sm:$0xff] }
 0x56f   :  { %3620 = vmatpush1.bf16.msra.mxu1 %v1845_v43  ;;  %v1933_v43 = vld [vmem:[#allocation2 + $0xd30] sm:$0xff] }
 0x570   :  { %3456 = vmatpush1.bf16.msra.mxu0 %v2355_v45  ;;  %3621 = vmatprep.subr.bf16.mxu1 %v1854_v13  ;;  %v1934_v45 = vld [vmem:[#allocation2 + $0xd38] sm:$0xff] }
 0x571   :  { %3457 = vmatprep.subr.bf16.mxu0 %v2364_v11  ;;  %v2452_v11 = vld [vmem:[#allocation2 + $0x1d68] sm:$0xff]  ;;  %v1942_v13 = vld [vmem:[#allocation2 + $0xd78] sm:$0xff] }
 0x573   :  { %3622 = vmatpush1.bf16.msra.mxu1 %v1853_v44  ;;  %v1941_v44 = vld [vmem:[#allocation2 + $0xd70] sm:$0xff] }
 0x574   :  { %3458 = vmatpush1.bf16.msra.mxu0 %v2363_v32  ;;  %3623 = vmatprep.subr.bf16.mxu1 %v1862_v1  ;;  %v2451_v32 = vld [vmem:[#allocation2 + $0x1d60] sm:$0xff]  ;;  %v2460_v1 = vld [vmem:[#allocation2 + $0x1da8] sm:$0xff] }
 0x575   :  { %3459 = vmatprep.subr.bf16.mxu0 %v2372_v14 }
 0x577   :  { %3624 = vmatpush1.bf16.msra.mxu1 %v1861_v52 }
 0x578   :  { %3460 = vmatpush1.bf16.msra.mxu0 %v2371_v51  ;;  %3625 = vmatprep.subr.bf16.mxu1 %v1870_v61  ;;  %v1950_v51 = vld [vmem:[#allocation2 + $0xdb8] sm:$0xff] }
 0x579   :  { %3461 = vmatprep.subr.bf16.mxu0 %v2380_v25 }
 0x57b   :  { %3626 = vmatpush1.bf16.msra.mxu1 %v1869_v57 }
 0x57c   :  { %3462 = vmatpush1.bf16.msra.mxu0 %v2379_v26  ;;  %3627 = vmatprep.subr.bf16.mxu1 %v1878_v35  ;;  %v2459_v35 = vld [vmem:[#allocation2 + $0x1da0] sm:$0xff] }
 0x57d   :  { %3463 = vmatprep.subr.bf16.mxu0 %v2388_v22 }
 0x57f   :  { %3628 = vmatpush1.bf16.msra.mxu1 %v1877_v10 }
 0x580   :  { %3464 = vmatpush1.bf16.msra.mxu0 %v2387_v29  ;;  %3629 = vmatprep.subr.bf16.mxu1 %v1886_v4  ;;  %v1949_v29 = vld [vmem:[#allocation2 + $0xdb0] sm:$0xff]  ;;  %v1958_v4 = vld [vmem:[#allocation2 + $0xdf8] sm:$0xff] }
 0x581   :  { %3465 = vmatprep.subr.bf16.mxu0 %v2396_v47  ;;  %v2468_v47 = vld [vmem:[#allocation2 + $0x1de8] sm:$0xff] }
 0x583   :  { %3630 = vmatpush1.bf16.msra.mxu1 %v1885_v58 }
 0x584   :  { %3466 = vmatpush1.bf16.msra.mxu0 %v2395_v19  ;;  %3631 = vmatprep.subr.bf16.mxu1 %v1894_v0  ;;  %v2467_v0 = vld [vmem:[#allocation2 + $0x1de0] sm:$0xff] }
 0x585   :  { %3467 = vmatprep.subr.bf16.mxu0 %v2404_v12 }
 0x587   :  { %3632 = vmatpush1.bf16.msra.mxu1 %v1893_v56 }
 0x588   :  { %3468 = vmatpush1.bf16.msra.mxu0 %v2403_v8  ;;  %3642 = vmatprep.subr.bf16.mxu1 %v1902_v36  ;;  %v1957_v8 = vld [vmem:[#allocation2 + $0xdf0] sm:$0xff]  ;;  %v1966_v36 = vld [vmem:[#allocation2 + $0xe38] sm:$0xff] }
 0x589   :  { %3478 = vmatprep.subr.bf16.mxu0 %v2412_v34  ;;  %v2476_v34 = vld [vmem:[#allocation2 + $0x1e28] sm:$0xff] }
 0x58a   :  { %3634 = vmatmul.mubr.bf16.vlgmr.msra.gmra.mrb[16].mxu1 %v7008_v28  ;;  %v1926_v28 = vld [vmem:[#allocation2 + $0xcf8] sm:$0xff] }
 0x58b   :  { %3470 = vmatmul.mubr.bf16.vlgmr.msra.gmra.mrb[28].mxu0 %v7074_v2  ;;  %3643 = vmatpush1.bf16.msra.mxu1 %v1901_v63 }
 0x58c   :  { %3479 = vmatpush1.bf16.msra.mxu0 %v2411_v3  ;;  %3644 = vmatprep.subr.bf16.mxu1 %v1910_v42  ;;  %v2475_v42 = vld [vmem:[#allocation2 + $0x1e20] sm:$0xff] }
 0x58d   :  { %3480 = vmatprep.subr.bf16.mxu0 %v2420_v30  ;;  %3510 = vmatprep.mubr.bf16.mxu0 %v7079_v50 }
 0x58e   :  { %3674 = vmatprep.mubr.bf16.mxu1 %v7018_v21  ;;  %v2443_v21 = vld [vmem:[#allocation2 + $0x1d20] sm:$0xff] }
 0x58f   :  { %3645 = vmatpush1.bf16.msra.mxu1 %v1909_v5 }
 0x590   :  { %3481 = vmatpush1.bf16.msra.mxu0 %v2419_v49  ;;  %3646 = vmatprep.subr.bf16.mxu1 %v1918_v55  ;;  %v1965_v49 = vld [vmem:[#allocation2 + $0xe30] sm:$0xff]  ;;  %v1974_v55 = vld [vmem:[#allocation2 + $0xe78] sm:$0xff] }
 0x591   :  { %3482 = vmatprep.subr.bf16.mxu0 %v2428_v39  ;;  %v2484_v39 = vld [vmem:[#allocation2 + $0x1e68] sm:$0xff] }
 0x593   :  { %3647 = vmatpush1.bf16.msra.mxu1 %v1917_v27 }
 0x594   :  { %3483 = vmatpush1.bf16.msra.mxu0 %v2427_v40  ;;  %3648 = vmatprep.subr.bf16.mxu1 %v1926_v28  ;;  %v2483_v28 = vld [vmem:[#allocation2 + $0x1e60] sm:$0xff] }
 0x595   :  { %3484 = vmatprep.subr.bf16.mxu0 %v2436_v46 }
 0x597   :  { %3649 = vmatpush1.bf16.msra.mxu1 %v1925_v38 }
 0x598   :  { %3485 = vmatpush1.bf16.msra.mxu0 %v2435_v6  ;;  %3650 = vmatprep.subr.bf16.mxu1 %v1934_v45  ;;  %v1973_v6 = vld [vmem:[#allocation2 + $0xe70] sm:$0xff]  ;;  %v1982_v45 = vld [vmem:[#allocation2 + $0xeb8] sm:$0xff] }
 0x599   :  { %3486 = vmatprep.subr.bf16.mxu0 %v2444_v33  ;;  %v2492_v33 = vld [vmem:[#allocation2 + $0x1ea8] sm:$0xff] }
 0x59b   :  { %3651 = vmatpush1.bf16.msra.mxu1 %v1933_v43 }
 0x59c   :  { %3487 = vmatpush1.bf16.msra.mxu0 %v2443_v21  ;;  %3652 = vmatprep.subr.bf16.mxu1 %v1942_v13  ;;  %v2491_v13 = vld [vmem:[#allocation2 + $0x1ea0] sm:$0xff] }
 0x59d   :  { %3488 = vmatprep.subr.bf16.mxu0 %v2452_v11  ;;  %v7132_v14 = vpop.f32.mrb[12].mxu1 }
 0x59e   :  { %v3861_v52 = vrot.slane %v7132_v14, 4  ;;  %v7135_v25 = vpop.f32.mrb[13].mxu1 }
 0x59f   :  { %v3867_v61 = vrot.slane %v7135_v25, 4  ;;  %v3188_v26 = vpop.f32.mrb[14].mxu1  ;;  %3653 = vmatpush1.bf16.msra.mxu1 %v1941_v44 }
 0x5a0   :  { %3489 = vmatpush1.bf16.msra.mxu0 %v2451_v32  ;;  %v3862_v57 = vadd.f32 %v3861_v52, %v7132_v14  ;;  %v3189_v22 = vpop.f32.mrb[15].mxu1  ;;  %3654 = vmatprep.subr.bf16.mxu1 %v1950_v51  ;;  %v1981_v32 = vld [vmem:[#allocation2 + $0xeb0] sm:$0xff]  ;;  %v1990_v51 = vld [vmem:[#allocation2 + $0xef8] sm:$0xff] }
 0x5a1   :  { %3490 = vmatprep.subr.bf16.mxu0 %v2460_v1  ;;  %v3868_v10 = vadd.f32 %v3867_v61, %v7135_v25  ;;  %v2500_v1 = vld [vmem:[#allocation2 + $0x1ee8] sm:$0xff]  ;;  %v1989_v22 = vld [vmem:[#allocation2 + $0xef0] sm:$0xff] }
 0x5a2   :  { %v3863_v19 = vrot.slane %v3862_v57, 2 }
 0x5a3   :  { %v3869_v58 = vrot.slane %v3868_v10, 2  ;;  %3655 = vmatpush1.bf16.msra.mxu1 %v1949_v29  ;;  %v2508_v29 = vld [vmem:[#allocation2 + $0x1f28] sm:$0xff] }
 0x5a4   :  { %3491 = vmatpush1.bf16.msra.mxu0 %v2459_v35  ;;  %v3864_v12 = vadd.f32 %v3863_v19, %v3862_v57  ;;  %3656 = vmatprep.subr.bf16.mxu1 %v1958_v4  ;;  %v2499_v57 = vld [vmem:[#allocation2 + $0x1ee0] sm:$0xff] }
 0x5a5   :  { %3492 = vmatprep.subr.bf16.mxu0 %v2468_v47  ;;  %v3870_v56 = vadd.f32 %v3869_v58, %v3868_v10  ;;  %v1998_v10 = vld [vmem:[#allocation2 + $0xf38] sm:$0xff]  ;;  %v2507_v58 = vld [vmem:[#allocation2 + $0x1f20] sm:$0xff] }
 0x5a6   :  { %v3865_v3 = vrot.slane %v3864_v12, 1 }
 0x5a7   :  { %v3871_v63 = vrot.slane %v3870_v56, 1  ;;  %3657 = vmatpush1.bf16.msra.mxu1 %v1957_v8  ;;  %v2516_v8 = vld [vmem:[#allocation2 + $0x1f68] sm:$0xff] }
 0x5a8   :  { %3493 = vmatpush1.bf16.msra.mxu0 %v2467_v0  ;;  %v3866_v30 = vadd.f32 %v3865_v3, %v3864_v12  ;;  %3658 = vmatprep.subr.bf16.mxu1 %v1966_v36  ;;  %v1997_v12 = vld [vmem:[#allocation2 + $0xf30] sm:$0xff] }
 0x5a9   :  { %3494 = vmatprep.subr.bf16.mxu0 %v2476_v34  ;;  %v3872_v5 = vadd.f32 %v3871_v63, %v3870_v56  ;;  %v2006_v56 = vld [vmem:[#allocation2 + $0xf78] sm:$0xff]  ;;  %v2515_v63 = vld [vmem:[#allocation2 + $0x1f60] sm:$0xff] }
 0x5aa   :  { %v7140_v40 = vmul.f32 0.125, %v3866_v30  ;;  %v2005_v30 = vld [vmem:[#allocation2 + $0xf70] sm:$0xff] }
 0x5ab   :  { %v7142_v27 = vmul.f32 0.125, %v3872_v5  ;;  %3659 = vmatpush1.bf16.msra.mxu1 %v1965_v49  ;;  %v2524_v49 = vld [vmem:[#allocation2 + $0x1fa8] sm:$0xff]  ;;  %v2014_v5 = vld [vmem:[#allocation2 + $0xfb8] sm:$0xff] }
 0x5ac   :  { %3495 = vmatpush1.bf16.msra.mxu0 %v2475_v42  ;;  %v3907_v46 = vsub.f32 %v7132_v14, %v7140_v40  ;;  %3660 = vmatprep.subr.bf16.mxu1 %v1974_v55 }
 0x5ad   :  { %3496 = vmatprep.subr.bf16.mxu0 %v2484_v39  ;;  %v3908_v38 = vsub.f32 %v7135_v25, %v7142_v27 }
 0x5ae   :  { %v3915_v21 = vmul.f32 %v3907_v46, %v3907_v46  ;;  %v2523_v46 = vld [vmem:[#allocation2 + $0x1fa0] sm:$0xff] }
 0x5af   :  { %v3916_v43 = vmul.f32 %v3908_v38, %v3908_v38  ;;  %3661 = vmatpush1.bf16.msra.mxu1 %v1973_v6  ;;  %v2532_v6 = vld [vmem:[#allocation2 + $0x1fe8] sm:$0xff]  ;;  %v2022_v38 = vld [vmem:[#allocation2 + $0xff8] sm:$0xff] }
 0x5b0   :  { %3497 = vmatpush1.bf16.msra.mxu0 %v2483_v28  ;;  %v3933_v11 = vrot.slane %v3915_v21, 4  ;;  %3662 = vmatprep.subr.bf16.mxu1 %v1982_v45  ;;  %v2013_v28 = vld [vmem:[#allocation2 + $0xfb0] sm:$0xff] }
 0x5b1   :  { %3498 = vmatprep.subr.bf16.mxu0 %v2492_v33  ;;  %v3939_v44 = vrot.slane %v3916_v43, 4  ;;  %v2531_v33 = vld [vmem:[#allocation2 + $0x1fe0] sm:$0xff]  ;;  %v2021_v45 = vld [vmem:[#allocation2 + $0xff0] sm:$0xff] }
 0x5b2   :  { %v3934_v52 = vadd.f32 %v3933_v11, %v3915_v21  ;;  %v2030_v21 = vld [vmem:[#allocation2 + $0x1038] sm:$0xff] }
 0x5b3   :  { %v3940_v61 = vadd.f32 %v3939_v44, %v3916_v43  ;;  %3663 = vmatpush1.bf16.msra.mxu1 %v1981_v32  ;;  %v2029_v43 = vld [vmem:[#allocation2 + $0x1030] sm:$0xff]  ;;  %v2038_v11 = vld [vmem:[#allocation2 + $0x1078] sm:$0xff] }
 0x5b4   :  { %3499 = vmatpush1.bf16.msra.mxu0 %v2491_v13  ;;  %v3935_v26 = vrot.slane %v3934_v52, 2  ;;  %3664 = vmatprep.subr.bf16.mxu1 %v1990_v51  ;;  %v2046_v51 = vld [vmem:[#allocation2 + $0x10b8] sm:$0xff] }
 0x5b5   :  { %3500 = vmatprep.subr.bf16.mxu0 %v2500_v1  ;;  %v3941_v35 = vrot.slane %v3940_v61, 2  ;;  %v2037_v1 = vld [vmem:[#allocation2 + $0x1070] sm:$0xff] }
 0x5b6   :  { %v3936_v47 = vadd.f32 %v3935_v26, %v3934_v52  ;;  %v2045_v52 = vld [vmem:[#allocation2 + $0x10b0] sm:$0xff] }
 0x5b7   :  { %v3942_v4 = vadd.f32 %v3941_v35, %v3940_v61  ;;  %3665 = vmatpush1.bf16.msra.mxu1 %v1989_v22  ;;  %v2054_v61 = vld [vmem:[#allocation2 + $0x10f8] sm:$0xff]  ;;  %v2053_v26 = vld [vmem:[#allocation2 + $0x10f0] sm:$0xff] }
 0x5b8   :  { %3501 = vmatpush1.bf16.msra.mxu0 %v2499_v57  ;;  %v3937_v19 = vrot.slane %v3936_v47, 1  ;;  %3666 = vmatprep.subr.bf16.mxu1 %v1998_v10  ;;  %v2062_v57 = vld [vmem:[#allocation2 + $0x1138] sm:$0xff] }
 0x5b9   :  { %3502 = vmatprep.subr.bf16.mxu0 %v2508_v29  ;;  %v3943_v0 = vrot.slane %v3942_v4, 1  ;;  %v2070_v22 = vld [vmem:[#allocation2 + $0x1178] sm:$0xff]  ;;  %v2077_v29 = vld [vmem:[#allocation2 + $0x11b0] sm:$0xff] }
 0x5ba   :  { %v3938_v34 = vadd.f32 %v3937_v19, %v3936_v47  ;;  %v2078_v35 = vld [vmem:[#allocation2 + $0x11b8] sm:$0xff]  ;;  %v2085_v47 = vld [vmem:[#allocation2 + $0x11f0] sm:$0xff] }
 0x5bb   :  { %v3944_v36 = vadd.f32 %v3943_v0, %v3942_v4  ;;  %3667 = vmatpush1.bf16.msra.mxu1 %v1997_v12  ;;  %v2086_v10 = vld [vmem:[#allocation2 + $0x11f8] sm:$0xff]  ;;  %v2093_v19 = vld [vmem:[#allocation2 + $0x1230] sm:$0xff] }
 0x5bc   :  { %3503 = vmatpush1.bf16.msra.mxu0 %v2507_v58  ;;  %v3971_v3 = vmul.f32 0.125, %v3938_v34  ;;  %3668 = vmatprep.subr.bf16.mxu1 %v2006_v56  ;;  %v2094_v4 = vld [vmem:[#allocation2 + $0x1238] sm:$0xff]  ;;  %v2101_v12 = vld [vmem:[#allocation2 + $0x1270] sm:$0xff] }
 0x5bd   :  { %3504 = vmatprep.subr.bf16.mxu0 %v2516_v8  ;;  %v3972_v42 = vmul.f32 0.125, %v3944_v36  ;;  %v2102_v58 = vld [vmem:[#allocation2 + $0x1278] sm:$0xff]  ;;  %v2109_v8 = vld [vmem:[#allocation2 + $0x12b0] sm:$0xff] }
 0x5be   :  { %v3979_v39 = vadd.f32 1e-05, %v3971_v3  ;;  %v2110_v0 = vld [vmem:[#allocation2 + $0x12b8] sm:$0xff]  ;;  %v2117_v34 = vld [vmem:[#allocation2 + $0x12f0] sm:$0xff] }
 0x5bf   :  { %v3980_v55 = vadd.f32 1e-05, %v3972_v42  ;;  %3669 = vmatpush1.bf16.msra.mxu1 %v2005_v30  ;;  %v2118_v56 = vld [vmem:[#allocation2 + $0x12f8] sm:$0xff]  ;;  %v2125_v3 = vld [vmem:[#allocation2 + $0x1330] sm:$0xff] }
 0x5c0   :  { %3505 = vmatpush1.bf16.msra.mxu0 %v2515_v63  ;;  %6071 = vrsqrt.f32 %v3979_v39  ;;  %3670 = vmatprep.subr.bf16.mxu1 %v2014_v5  ;;  %v2126_v36 = vld [vmem:[#allocation2 + $0x1338] sm:$0xff]  ;;  %v2133_v30 = vld [vmem:[#allocation2 + $0x1370] sm:$0xff] }
 0x5c1   :  { %3506 = vmatprep.subr.bf16.mxu0 %v2524_v49  ;;  %6073 = vrsqrt.f32 %v3980_v55  ;;  %v2134_v63 = vld [vmem:[#allocation2 + $0x1378] sm:$0xff]  ;;  %v2141_v49 = vld [vmem:[#allocation2 + $0x13b0] sm:$0xff] }
 0x5c2   :  { %v2142_v42 = vld [vmem:[#allocation2 + $0x13b8] sm:$0xff]  ;;  %v2149_v39 = vld [vmem:[#allocation2 + $0x13f0] sm:$0xff] }
 0x5c3   :  { %3671 = vmatpush1.bf16.msra.mxu1 %v2013_v28  ;;  %v2150_v5 = vld [vmem:[#allocation2 + $0x13f8] sm:$0xff] }
 0x5c4   :  { %3507 = vmatpush1.bf16.msra.mxu0 %v2523_v46  ;;  %3672 = vmatprep.subr.bf16.mxu1 %v2022_v38  ;;  %v2158_v55 = vld [vmem:[#allocation2 + $0x1438] sm:$0xff]  ;;  %v2157_v46 = vld [vmem:[#allocation2 + $0x1430] sm:$0xff] }
 0x5c5   :  { %3508 = vmatprep.subr.bf16.mxu0 %v2532_v6  ;;  %v2166_v28 = vld [vmem:[#allocation2 + $0x1478] sm:$0xff]  ;;  %v2165_v6 = vld [vmem:[#allocation2 + $0x1470] sm:$0xff] }
 0x5c6   :  { %v2174_v38 = vld [vmem:[#allocation2 + $0x14b8] sm:$0xff] }
 0x5c7   :  { %3673 = vmatpush1.bf16.msra.mxu1 %v2021_v45  ;;  %v2182_v45 = vld [vmem:[#allocation2 + $0x14f8] sm:$0xff] }
 0x5c8   :  { %3509 = vmatpush1.bf16.msra.mxu0 %v2531_v33  ;;  %3683 = vmatprep.subr.bf16.mxu1 %v2030_v21  ;;  %v2173_v33 = vld [vmem:[#allocation2 + $0x14b0] sm:$0xff] }
 0x5c9   :  { %v2181_v21 = vld [vmem:[#allocation2 + $0x14f0] sm:$0xff] }
 0x5ca   :  { %v7148_v13 = vpop.eup %6071  ;;  %3675 = vmatmul.mubr.bf16.vlgmr.msra.gmra.mrb[16].mxu1 %v7032_v18  ;;  %v2061_v18 = vld [vmem:[#allocation2 + $0x1130] sm:$0xff] }
 0x5cb   :  { %3511 = vmatmul.mubr.bf16.vlgmr.msra.gmra.mrb[28].mxu0 %v7092_v37  ;;  %v7152_v32 = vpop.eup %6073  ;;  %3684 = vmatpush1.bf16.msra.mxu1 %v2029_v43  ;;  %v2190_v43 = vld [vmem:[#allocation2 + $0x1538] sm:$0xff] }
 0x5cc   :  { %3715 = vmatprep.mubr.bf16.mxu1 %v7037_v62  ;;  %v4002_v44 = vcombine.low %v7148_v13, %v7152_v32  ;;  %3685 = vmatprep.subr.bf16.mxu1 %v2038_v11  ;;  %v2069_v62 = vld [vmem:[#allocation2 + $0x1170] sm:$0xff] }
 0x5cd   :  { %v2189_v11 = vld [vmem:[#allocation2 + $0x1530] sm:$0xff] }
 0x5cf   :  { %3686 = vmatpush1.bf16.msra.mxu1 %v2037_v1  ;;  %v2198_v1 = vld [vmem:[#allocation2 + $0x1578] sm:$0xff] }
 0x5d0   :  { %3687 = vmatprep.subr.bf16.mxu1 %v2046_v51  ;;  %v2206_v51 = vld [vmem:[#allocation2 + $0x15b8] sm:$0xff] }
 0x5d3   :  { %3688 = vmatpush1.bf16.msra.mxu1 %v2045_v52  ;;  %v2214_v52 = vld [vmem:[#allocation2 + $0x15f8] sm:$0xff] }
 0x5d4   :  { %3689 = vmatprep.subr.bf16.mxu1 %v2054_v61  ;;  %v2213_v61 = vld [vmem:[#allocation2 + $0x15f0] sm:$0xff] }
 0x5d7   :  { %3690 = vmatpush1.bf16.msra.mxu1 %v2053_v26  ;;  %v2222_v26 = vld [vmem:[#allocation2 + $0x1638] sm:$0xff] }
 0x5d8   :  { %3691 = vmatprep.subr.bf16.mxu1 %v2062_v57  ;;  %v2221_v57 = vld [vmem:[#allocation2 + $0x1630] sm:$0xff] }
 0x5db   :  { %3692 = vmatpush1.bf16.msra.mxu1 %v2061_v18  ;;  %v2230_v18 = vld [vmem:[#allocation2 + $0x1678] sm:$0xff] }
 0x5dc   :  { %3693 = vmatprep.subr.bf16.mxu1 %v2070_v22  ;;  %v2229_v22 = vld [vmem:[#allocation2 + $0x1670] sm:$0xff] }
 0x5df   :  { %3694 = vmatpush1.bf16.msra.mxu1 %v2069_v62  ;;  %v2238_v62 = vld [vmem:[#allocation2 + $0x16b8] sm:$0xff] }
 0x5e0   :  { %3695 = vmatprep.subr.bf16.mxu1 %v2078_v35  ;;  %v2237_v35 = vld [vmem:[#allocation2 + $0x16b0] sm:$0xff] }
 0x5e3   :  { %3696 = vmatpush1.bf16.msra.mxu1 %v2077_v29  ;;  %v2246_v29 = vld [vmem:[#allocation2 + $0x16f8] sm:$0xff] }
 0x5e4   :  { %3697 = vmatprep.subr.bf16.mxu1 %v2086_v10  ;;  %v2245_v10 = vld [vmem:[#allocation2 + $0x16f0] sm:$0xff] }
 0x5e7   :  { %3698 = vmatpush1.bf16.msra.mxu1 %v2085_v47  ;;  %v2254_v47 = vld [vmem:[#allocation2 + $0x1738] sm:$0xff] }
 0x5e8   :  { %3699 = vmatprep.subr.bf16.mxu1 %v2094_v4  ;;  %v2253_v4 = vld [vmem:[#allocation2 + $0x1730] sm:$0xff] }
 0x5eb   :  { %3700 = vmatpush1.bf16.msra.mxu1 %v2093_v19  ;;  %v2262_v19 = vld [vmem:[#allocation2 + $0x1778] sm:$0xff] }
 0x5ec   :  { %3701 = vmatprep.subr.bf16.mxu1 %v2102_v58  ;;  %v2261_v58 = vld [vmem:[#allocation2 + $0x1770] sm:$0xff] }
 0x5ef   :  { %3702 = vmatpush1.bf16.msra.mxu1 %v2101_v12  ;;  %v2270_v12 = vld [vmem:[#allocation2 + $0x17b8] sm:$0xff] }
 0x5f0   :  { %3703 = vmatprep.subr.bf16.mxu1 %v2110_v0  ;;  %v2269_v0 = vld [vmem:[#allocation2 + $0x17b0] sm:$0xff] }
 0x5f3   :  { %3704 = vmatpush1.bf16.msra.mxu1 %v2109_v8  ;;  %v2278_v8 = vld [vmem:[#allocation2 + $0x17f8] sm:$0xff] }
 0x5f4   :  { %3705 = vmatprep.subr.bf16.mxu1 %v2118_v56  ;;  %v2277_v56 = vld [vmem:[#allocation2 + $0x17f0] sm:$0xff] }
 0x5f7   :  { %3706 = vmatpush1.bf16.msra.mxu1 %v2117_v34  ;;  %v2286_v34 = vld [vmem:[#allocation2 + $0x1838] sm:$0xff] }
 0x5f8   :  { %3707 = vmatprep.subr.bf16.mxu1 %v2126_v36  ;;  %v2285_v36 = vld [vmem:[#allocation2 + $0x1830] sm:$0xff] }
 0x5fb   :  { %3708 = vmatpush1.bf16.msra.mxu1 %v2125_v3  ;;  %v2294_v3 = vld [vmem:[#allocation2 + $0x1878] sm:$0xff] }
 0x5fc   :  { %3709 = vmatprep.subr.bf16.mxu1 %v2134_v63  ;;  %v2293_v63 = vld [vmem:[#allocation2 + $0x1870] sm:$0xff] }
 0x5ff   :  { %3710 = vmatpush1.bf16.msra.mxu1 %v2133_v30  ;;  %v2302_v30 = vld [vmem:[#allocation2 + $0x18b8] sm:$0xff] }
 0x600   :  { %3711 = vmatprep.subr.bf16.mxu1 %v2142_v42  ;;  %v2301_v42 = vld [vmem:[#allocation2 + $0x18b0] sm:$0xff] }
 0x603   :  { %3712 = vmatpush1.bf16.msra.mxu1 %v2141_v49  ;;  %v2310_v49 = vld [vmem:[#allocation2 + $0x18f8] sm:$0xff] }
 0x604   :  { %3713 = vmatprep.subr.bf16.mxu1 %v2150_v5  ;;  %v2309_v5 = vld [vmem:[#allocation2 + $0x18f0] sm:$0xff] }
 0x607   :  { %3714 = vmatpush1.bf16.msra.mxu1 %v2149_v39  ;;  %v2318_v39 = vld [vmem:[#allocation2 + $0x1938] sm:$0xff] }
 0x608   :  { %3724 = vmatprep.subr.bf16.mxu1 %v2158_v55  ;;  %v2317_v55 = vld [vmem:[#allocation2 + $0x1930] sm:$0xff] }
 0x60a   :  { %3716 = vmatmul.mubr.bf16.vlgmr.msra.gmra.mrb[16].mxu1 %v7046_v53  ;;  %v2197_v53 = vld [vmem:[#allocation2 + $0x1570] sm:$0xff] }
 0x60b   :  { %3725 = vmatpush1.bf16.msra.mxu1 %v2157_v46  ;;  %3756 = vmatprep.mubr.bf16.mxu1 %v7051_v48  ;;  %v2205_v48 = vld [vmem:[#allocation2 + $0x15b0] sm:$0xff]  ;;  %v2326_v46 = vld [vmem:[#allocation2 + $0x1978] sm:$0xff] }
 0x60c   :  { %3726 = vmatprep.subr.bf16.mxu1 %v2166_v28  ;;  %v2334_v28 = vld [vmem:[#allocation2 + $0x19b8] sm:$0xff] }
 0x60f   :  { %3727 = vmatpush1.bf16.msra.mxu1 %v2165_v6  ;;  %v2342_v6 = vld [vmem:[#allocation2 + $0x19f8] sm:$0xff] }
 0x610   :  { %3728 = vmatprep.subr.bf16.mxu1 %v2174_v38  ;;  %v2341_v38 = vld [vmem:[#allocation2 + $0x19f0] sm:$0xff] }
 0x613   :  { %3729 = vmatpush1.bf16.msra.mxu1 %v2173_v33  ;;  %v2350_v33 = vld [vmem:[#allocation2 + $0x1a38] sm:$0xff] }
 0x614   :  { %3730 = vmatprep.subr.bf16.mxu1 %v2182_v45  ;;  %v2349_v45 = vld [vmem:[#allocation2 + $0x1a30] sm:$0xff] }
 0x617   :  { %3731 = vmatpush1.bf16.msra.mxu1 %v2181_v21  ;;  %v2358_v21 = vld [vmem:[#allocation2 + $0x1a78] sm:$0xff] }
 0x618   :  { %3732 = vmatprep.subr.bf16.mxu1 %v2190_v43  ;;  %v2357_v43 = vld [vmem:[#allocation2 + $0x1a70] sm:$0xff] }
 0x61b   :  { %3733 = vmatpush1.bf16.msra.mxu1 %v2189_v11  ;;  %v2366_v11 = vld [vmem:[#allocation2 + $0x1ab8] sm:$0xff] }
 0x61c   :  { %3734 = vmatprep.subr.bf16.mxu1 %v2198_v1  ;;  %v2365_v1 = vld [vmem:[#allocation2 + $0x1ab0] sm:$0xff] }
 0x61f   :  { %3735 = vmatpush1.bf16.msra.mxu1 %v2197_v53  ;;  %v2374_v53 = vld [vmem:[#allocation2 + $0x1af8] sm:$0xff] }
 0x620   :  { %3736 = vmatprep.subr.bf16.mxu1 %v2206_v51  ;;  %v2373_v51 = vld [vmem:[#allocation2 + $0x1af0] sm:$0xff] }
 0x623   :  { %3737 = vmatpush1.bf16.msra.mxu1 %v2205_v48  ;;  %v2382_v48 = vld [vmem:[#allocation2 + $0x1b38] sm:$0xff] }
 0x624   :  { %3738 = vmatprep.subr.bf16.mxu1 %v2214_v52  ;;  %v2381_v52 = vld [vmem:[#allocation2 + $0x1b30] sm:$0xff] }
 0x627   :  { %3739 = vmatpush1.bf16.msra.mxu1 %v2213_v61  ;;  %v2390_v61 = vld [vmem:[#allocation2 + $0x1b78] sm:$0xff] }
 0x628   :  { %3740 = vmatprep.subr.bf16.mxu1 %v2222_v26  ;;  %v2389_v26 = vld [vmem:[#allocation2 + $0x1b70] sm:$0xff] }
 0x62b   :  { %3741 = vmatpush1.bf16.msra.mxu1 %v2221_v57  ;;  %v2398_v57 = vld [vmem:[#allocation2 + $0x1bb8] sm:$0xff] }
 0x62c   :  { %3742 = vmatprep.subr.bf16.mxu1 %v2230_v18  ;;  %v2397_v18 = vld [vmem:[#allocation2 + $0x1bb0] sm:$0xff] }
 0x62f   :  { %3743 = vmatpush1.bf16.msra.mxu1 %v2229_v22  ;;  %v2406_v22 = vld [vmem:[#allocation2 + $0x1bf8] sm:$0xff] }
 0x630   :  { %3744 = vmatprep.subr.bf16.mxu1 %v2238_v62  ;;  %v2405_v62 = vld [vmem:[#allocation2 + $0x1bf0] sm:$0xff] }
 0x633   :  { %3745 = vmatpush1.bf16.msra.mxu1 %v2237_v35  ;;  %v2414_v35 = vld [vmem:[#allocation2 + $0x1c38] sm:$0xff] }
 0x634   :  { %3746 = vmatprep.subr.bf16.mxu1 %v2246_v29  ;;  %v2413_v29 = vld [vmem:[#allocation2 + $0x1c30] sm:$0xff] }
 0x637   :  { %3747 = vmatpush1.bf16.msra.mxu1 %v2245_v10  ;;  %v2422_v10 = vld [vmem:[#allocation2 + $0x1c78] sm:$0xff] }
 0x638   :  { %3748 = vmatprep.subr.bf16.mxu1 %v2254_v47  ;;  %v2421_v47 = vld [vmem:[#allocation2 + $0x1c70] sm:$0xff] }
 0x63b   :  { %3749 = vmatpush1.bf16.msra.mxu1 %v2253_v4  ;;  %v2430_v4 = vld [vmem:[#allocation2 + $0x1cb8] sm:$0xff] }
 0x63c   :  { %3750 = vmatprep.subr.bf16.mxu1 %v2262_v19  ;;  %v2429_v19 = vld [vmem:[#allocation2 + $0x1cb0] sm:$0xff] }
 0x63f   :  { %3751 = vmatpush1.bf16.msra.mxu1 %v2261_v58  ;;  %v2438_v58 = vld [vmem:[#allocation2 + $0x1cf8] sm:$0xff] }
 0x640   :  { %3752 = vmatprep.subr.bf16.mxu1 %v2270_v12  ;;  %v2437_v12 = vld [vmem:[#allocation2 + $0x1cf0] sm:$0xff] }
 0x643   :  { %3753 = vmatpush1.bf16.msra.mxu1 %v2269_v0  ;;  %v2446_v0 = vld [vmem:[#allocation2 + $0x1d38] sm:$0xff] }
 0x644   :  { %3754 = vmatprep.subr.bf16.mxu1 %v2278_v8  ;;  %v2445_v8 = vld [vmem:[#allocation2 + $0x1d30] sm:$0xff] }
 0x647   :  { %3755 = vmatpush1.bf16.msra.mxu1 %v2277_v56  ;;  %v2454_v56 = vld [vmem:[#allocation2 + $0x1d78] sm:$0xff] }
 0x648   :  { %3765 = vmatprep.subr.bf16.mxu1 %v2286_v34 }
 0x64a   :  { %3757 = vmatmul.mubr.bf16.vlgmr.msra.gmra.mrb[16].mxu1 %v7060_v20  ;;  %v2325_v20 = vld [vmem:[#allocation2 + $0x1970] sm:$0xff] }
 0x64b   :  { %3766 = vmatpush1.bf16.msra.mxu1 %v2285_v36  ;;  %3797 = vmatprep.mubr.bf16.mxu1 %v7065_v54  ;;  %v2333_v54 = vld [vmem:[#allocation2 + $0x19b0] sm:$0xff] }
 0x64c   :  { %3767 = vmatprep.subr.bf16.mxu1 %v2294_v3 }
 0x64f   :  { %3768 = vmatpush1.bf16.msra.mxu1 %v2293_v63 }
 0x650   :  { %3769 = vmatprep.subr.bf16.mxu1 %v2302_v30 }
 0x653   :  { %3770 = vmatpush1.bf16.msra.mxu1 %v2301_v42 }
 0x654   :  { %3771 = vmatprep.subr.bf16.mxu1 %v2310_v49 }
 0x657   :  { %3772 = vmatpush1.bf16.msra.mxu1 %v2309_v5  ;;  %v2461_v5 = vld [vmem:[#allocation2 + $0x1db0] sm:$0xff] }
 0x658   :  { %3773 = vmatprep.subr.bf16.mxu1 %v2318_v39 }
 0x65b   :  { %3774 = vmatpush1.bf16.msra.mxu1 %v2317_v55  ;;  %v2470_v55 = vld [vmem:[#allocation2 + $0x1df8] sm:$0xff] }
 0x65c   :  { %3775 = vmatprep.subr.bf16.mxu1 %v2326_v46 }
 0x65f   :  { %3776 = vmatpush1.bf16.msra.mxu1 %v2325_v20 }
 0x660   :  { %3777 = vmatprep.subr.bf16.mxu1 %v2334_v28 }
 0x663   :  { %3778 = vmatpush1.bf16.msra.mxu1 %v2333_v54  ;;  %v2469_v54 = vld [vmem:[#allocation2 + $0x1df0] sm:$0xff] }
 0x664   :  { %3779 = vmatprep.subr.bf16.mxu1 %v2342_v6 }
 0x667   :  { %3780 = vmatpush1.bf16.msra.mxu1 %v2341_v38  ;;  %v2478_v38 = vld [vmem:[#allocation2 + $0x1e38] sm:$0xff] }
 0x668   :  { %3781 = vmatprep.subr.bf16.mxu1 %v2350_v33 }
 0x66b   :  { %3782 = vmatpush1.bf16.msra.mxu1 %v2349_v45 }
 0x66c   :  { %3783 = vmatprep.subr.bf16.mxu1 %v2358_v21 }
 0x66f   :  { %3784 = vmatpush1.bf16.msra.mxu1 %v2357_v43  ;;  %v2477_v43 = vld [vmem:[#allocation2 + $0x1e30] sm:$0xff] }
 0x670   :  { %3785 = vmatprep.subr.bf16.mxu1 %v2366_v11 }
 0x673   :  { %3786 = vmatpush1.bf16.msra.mxu1 %v2365_v1  ;;  %v2486_v1 = vld [vmem:[#allocation2 + $0x1e78] sm:$0xff] }
 0x674   :  { %3787 = vmatprep.subr.bf16.mxu1 %v2374_v53 }
 0x677   :  { %3788 = vmatpush1.bf16.msra.mxu1 %v2373_v51 }
 0x678   :  { %3789 = vmatprep.subr.bf16.mxu1 %v2382_v48 }
 0x67b   :  { %3790 = vmatpush1.bf16.msra.mxu1 %v2381_v52  ;;  %v2485_v52 = vld [vmem:[#allocation2 + $0x1e70] sm:$0xff] }
 0x67c   :  { %3791 = vmatprep.subr.bf16.mxu1 %v2390_v61 }
 0x67f   :  { %3792 = vmatpush1.bf16.msra.mxu1 %v2389_v26  ;;  %v2494_v26 = vld [vmem:[#allocation2 + $0x1eb8] sm:$0xff] }
 0x680   :  { %3793 = vmatprep.subr.bf16.mxu1 %v2398_v57 }
 0x683   :  { %3794 = vmatpush1.bf16.msra.mxu1 %v2397_v18 }
 0x684   :  { %3795 = vmatprep.subr.bf16.mxu1 %v2406_v22 }
 0x687   :  { %3796 = vmatpush1.bf16.msra.mxu1 %v2405_v62  ;;  %v2493_v62 = vld [vmem:[#allocation2 + $0x1eb0] sm:$0xff] }
 0x688   :  { %3806 = vmatprep.subr.bf16.mxu1 %v2414_v35 }
 0x68a   :  { %3798 = vmatmul.mubr.bf16.vlgmr.msra.gmra.mrb[16].mxu1 %v7074_v2  ;;  %v2453_v2 = vld [vmem:[#allocation2 + $0x1d70] sm:$0xff] }
 0x68b   :  { %3807 = vmatpush1.bf16.msra.mxu1 %v2413_v29  ;;  %3838 = vmatprep.mubr.bf16.mxu1 %v7079_v50  ;;  %v2462_v50 = vld [vmem:[#allocation2 + $0x1db8] sm:$0xff] }
 0x68c   :  { %3808 = vmatprep.subr.bf16.mxu1 %v2422_v10  ;;  %v2502_v29 = vld [vmem:[#allocation2 + $0x1ef8] sm:$0xff] }
 0x68f   :  { %3809 = vmatpush1.bf16.msra.mxu1 %v2421_v47 }
 0x690   :  { %3810 = vmatprep.subr.bf16.mxu1 %v2430_v4 }
 0x693   :  { %3811 = vmatpush1.bf16.msra.mxu1 %v2429_v19  ;;  %v2501_v19 = vld [vmem:[#allocation2 + $0x1ef0] sm:$0xff] }
 0x694   :  { %3812 = vmatprep.subr.bf16.mxu1 %v2438_v58 }
 0x697   :  { %3813 = vmatpush1.bf16.msra.mxu1 %v2437_v12  ;;  %v2510_v12 = vld [vmem:[#allocation2 + $0x1f38] sm:$0xff] }
 0x698   :  { %3814 = vmatprep.subr.bf16.mxu1 %v2446_v0 }
 0x69b   :  { %3815 = vmatpush1.bf16.msra.mxu1 %v2445_v8 }
 0x69c   :  { %3816 = vmatprep.subr.bf16.mxu1 %v2454_v56 }
 0x69e   :  { %v7163_v34 = vpop.f32.mrb[28].mxu0 }
 0x69f   :  { %v3873_v36 = vrot.slane %v7163_v34, 4  ;;  %v7166_v3 = vpop.f32.mrb[29].mxu0  ;;  %3817 = vmatpush1.bf16.msra.mxu1 %v2453_v2  ;;  %v2509_v2 = vld [vmem:[#allocation2 + $0x1f30] sm:$0xff] }
 0x6a0   :  { %v3879_v63 = vrot.slane %v7166_v3, 4  ;;  %v3516_v30 = vpop.f32.mrb[30].mxu0  ;;  %3818 = vmatprep.subr.bf16.mxu1 %v2462_v50 }
 0x6a1   :  { %v3874_v42 = vadd.f32 %v3873_v36, %v7163_v34  ;;  %v3517_v49 = vpop.f32.mrb[31].mxu0  ;;  %v2518_v36 = vld [vmem:[#allocation2 + $0x1f78] sm:$0xff] }
 0x6a2   :  { %v3880_v39 = vadd.f32 %v3879_v63, %v7166_v3  ;;  %v2517_v49 = vld [vmem:[#allocation2 + $0x1f70] sm:$0xff] }
 0x6a3   :  { %v3875_v46 = vrot.slane %v3874_v42, 2  ;;  %3819 = vmatpush1.bf16.msra.mxu1 %v2461_v5 }
 0x6a4   :  { %v3881_v20 = vrot.slane %v3880_v39, 2  ;;  %3820 = vmatprep.subr.bf16.mxu1 %v2470_v55 }
 0x6a5   :  { %v3876_v28 = vadd.f32 %v3875_v46, %v3874_v42 }
 0x6a6   :  { %v3882_v6 = vadd.f32 %v3881_v20, %v3880_v39  ;;  %v2526_v39 = vld [vmem:[#allocation2 + $0x1fb8] sm:$0xff]  ;;  %v2525_v20 = vld [vmem:[#allocation2 + $0x1fb0] sm:$0xff] }
 0x6a7   :  { %v3877_v33 = vrot.slane %v3876_v28, 1  ;;  %3821 = vmatpush1.bf16.msra.mxu1 %v2469_v54  ;;  %v2533_v54 = vld [vmem:[#allocation2 + $0x1ff0] sm:$0xff] }
 0x6a8   :  { %v3883_v45 = vrot.slane %v3882_v6, 1  ;;  %3822 = vmatprep.subr.bf16.mxu1 %v2478_v38 }
 0x6a9   :  { %v3878_v21 = vadd.f32 %v3877_v33, %v3876_v28  ;;  %v2534_v28 = vld [vmem:[#allocation2 + $0x1ff8] sm:$0xff] }
 0x6aa   :  { %v3884_v11 = vadd.f32 %v3883_v45, %v3882_v6  ;;  %v5865_v45 = vld [vmem:[#allocation15 + $0x4] ss:$8 sps:$4 sm:$0xff]  }
 0x6ab   :  { %v7171_v53 = vmul.f32 0.125, %v3878_v21  ;;  %3823 = vmatpush1.bf16.msra.mxu1 %v2477_v43  ;;  %v5863_v21 = vld [vmem:[#allocation15] ss:$8 sps:$4 sm:$0xff]   ;;  %5001 = vmatprep.subr.bf16.mxu0 %v5865_v45  ;;  %v5868_v43 = vld [vmem:[#allocation15 + $0x14] ss:$8 sps:$4 sm:$0xff]  }
 0x6ac   :  { %v7173_v51 = vmul.f32 0.125, %v3884_v11  ;;  %3824 = vmatprep.subr.bf16.mxu1 %v2486_v1  ;;  %5002 = vmatpush1.bf16.msra.mxu0 %v5863_v21  ;;  %v5866_v11 = vld [vmem:[#allocation15 + $0x10] ss:$8 sps:$4 sm:$0xff]   ;;  %v5871_v1 = vld [vmem:[#allocation15 + $0x24] ss:$8 sps:$4 sm:$0xff]  }
 0x6ad   :  { %v3909_v48 = vsub.f32 %v7163_v34, %v7171_v53  ;;  %5003 = vmatprep.subr.bf16.mxu0 %v5868_v43 }
 0x6ae   :  { %v3910_v61 = vsub.f32 %v7166_v3, %v7173_v51 }
 0x6af   :  { %v3917_v57 = vmul.f32 %v3909_v48, %v3909_v48  ;;  %3825 = vmatpush1.bf16.msra.mxu1 %v2485_v52  ;;  %v5869_v48 = vld [vmem:[#allocation15 + $0x20] ss:$8 sps:$4 sm:$0xff]   ;;  %v5874_v52 = vld [vmem:[#allocation15 + $0x34] ss:$8 sps:$4 sm:$0xff]  }
 0x6b0   :  { %v3918_v18 = vmul.f32 %v3910_v61, %v3910_v61  ;;  %3826 = vmatprep.subr.bf16.mxu1 %v2494_v26  ;;  %5004 = vmatpush1.bf16.msra.mxu0 %v5866_v11  ;;  %v5872_v61 = vld [vmem:[#allocation15 + $0x30] ss:$8 sps:$4 sm:$0xff]   ;;  %v5875_v26 = vld [vmem:[#allocation15 + $0x40] ss:$8 sps:$4 sm:$0xff]  }
 0x6b1   :  { %v3945_v22 = vrot.slane %v3917_v57, 4  ;;  %5005 = vmatprep.subr.bf16.mxu0 %v5871_v1 }
 0x6b2   :  { %v3951_v35 = vrot.slane %v3918_v18, 4 }
 0x6b3   :  { %v3946_v10 = vadd.f32 %v3945_v22, %v3917_v57  ;;  %3827 = vmatpush1.bf16.msra.mxu1 %v2493_v62  ;;  %v5880_v57 = vld [vmem:[#allocation15 + $0x54] ss:$8 sps:$4 sm:$0xff]   ;;  %v5883_v22 = vld [vmem:[#allocation15 + $0x64] ss:$8 sps:$4 sm:$0xff]   ;;  %v5881_v62 = vld [vmem:[#allocation15 + $0x60] ss:$8 sps:$4 sm:$0xff]  }
 0x6b4   :  { %v3952_v47 = vadd.f32 %v3951_v35, %v3918_v18  ;;  %3828 = vmatprep.subr.bf16.mxu1 %v2502_v29  ;;  %5006 = vmatpush1.bf16.msra.mxu0 %v5869_v48  ;;  %v5878_v18 = vld [vmem:[#allocation15 + $0x50] ss:$8 sps:$4 sm:$0xff]   ;;  %v5886_v35 = vld [vmem:[#allocation15 + $0x74] ss:$8 sps:$4 sm:$0xff]  }
 0x6b5   :  { %v3947_v4 = vrot.slane %v3946_v10, 2  ;;  %5007 = vmatprep.subr.bf16.mxu0 %v5874_v52  ;;  %v5884_v29 = vld [vmem:[#allocation15 + $0x70] ss:$8 sps:$4 sm:$0xff]  }
 0x6b6   :  { %v3953_v58 = vrot.slane %v3952_v47, 2 }
 0x6b7   :  { %v3948_v0 = vadd.f32 %v3947_v4, %v3946_v10  ;;  %3829 = vmatpush1.bf16.msra.mxu1 %v2501_v19  ;;  %v5889_v10 = vld [vmem:[#allocation15 + $0x84] ss:$8 sps:$4 sm:$0xff]   ;;  %v5892_v4 = vld [vmem:[#allocation15 + $0x94] ss:$8 sps:$4 sm:$0xff]   ;;  %v5890_v19 = vld [vmem:[#allocation15 + $0x90] ss:$8 sps:$4 sm:$0xff]  }
 0x6b8   :  { %v3954_v8 = vadd.f32 %v3953_v58, %v3952_v47  ;;  %3830 = vmatprep.subr.bf16.mxu1 %v2510_v12  ;;  %5008 = vmatpush1.bf16.msra.mxu0 %v5872_v61  ;;  %v5887_v47 = vld [vmem:[#allocation15 + $0x80] ss:$8 sps:$4 sm:$0xff]   ;;  %v5895_v58 = vld [vmem:[#allocation15 + $0xa4] ss:$8 sps:$4 sm:$0xff]  }
 0x6b9   :  { %v3949_v56 = vrot.slane %v3948_v0, 1  ;;  %v5893_v12 = vld [vmem:[#allocation15 + $0xa0] ss:$8 sps:$4 sm:$0xff]  }
 0x6ba   :  { %v3955_v50 = vrot.slane %v3954_v8, 1 }
 0x6bb   :  { %v3950_v63 = vadd.f32 %v3949_v56, %v3948_v0  ;;  %3831 = vmatpush1.bf16.msra.mxu1 %v2509_v2  ;;  %v5898_v0 = vld [vmem:[#allocation15 + $0xb4] ss:$8 sps:$4 sm:$0xff]   ;;  %v5901_v56 = vld [vmem:[#allocation15 + $0xc4] ss:$8 sps:$4 sm:$0xff]   ;;  %v5899_v2 = vld [vmem:[#allocation15 + $0xc0] ss:$8 sps:$4 sm:$0xff]  }
 0x6bc   :  { %v3956_v30 = vadd.f32 %v3955_v50, %v3954_v8  ;;  %3832 = vmatprep.subr.bf16.mxu1 %v2518_v36  ;;  %v5896_v8 = vld [vmem:[#allocation15 + $0xb0] ss:$8 sps:$4 sm:$0xff]   ;;  %v5904_v36 = vld [vmem:[#allocation15 + $0xd4] ss:$8 sps:$4 sm:$0xff]  }
 0x6bd   :  { %v3973_v42 = vmul.f32 0.125, %v3950_v63  ;;  %v5902_v50 = vld [vmem:[#allocation15 + $0xd0] ss:$8 sps:$4 sm:$0xff]   ;;  %v5907_v63 = vld [vmem:[#allocation15 + $0xe4] ss:$8 sps:$4 sm:$0xff]  }
 0x6be   :  { %v3974_v5 = vmul.f32 0.125, %v3956_v30  ;;  %v5905_v30 = vld [vmem:[#allocation15 + $0xe0] ss:$8 sps:$4 sm:$0xff]  }
 0x6bf   :  { %v3981_v55 = vadd.f32 1e-05, %v3973_v42  ;;  %3833 = vmatpush1.bf16.msra.mxu1 %v2517_v49  ;;  %v5910_v42 = vld [vmem:[#allocation15 + $0xf4] ss:$8 sps:$4 sm:$0xff]   ;;  %v5908_v49 = vld [vmem:[#allocation15 + $0xf0] ss:$8 sps:$4 sm:$0xff]  }
 0x6c0   :  { %v3982_v46 = vadd.f32 1e-05, %v3974_v5  ;;  %3834 = vmatprep.subr.bf16.mxu1 %v2526_v39  ;;  %v5913_v5 = vld [vmem:[#allocation15 + $0x104] ss:$8 sps:$4 sm:$0xff]   ;;  %v3849_v39 = vrot.slane %v7111_v7, 4 }
 0x6c1   :  { %6075 = vrsqrt.f32 %v3981_v55  ;;  %v3855_v55 = vrot.slane %v7114_v41, 4 }
 0x6c2   :  { %6077 = vrsqrt.f32 %v3982_v46  ;;  %v3850_v46 = vadd.f32 %v7111_v7, %v3849_v39 }
 0x6c3   :  { %3835 = vmatpush1.bf16.msra.mxu1 %v2525_v20  ;;  %v3856_v20 = vadd.f32 %v7114_v41, %v3855_v55 }
 0x6c4   :  { %3836 = vmatprep.subr.bf16.mxu1 %v2534_v28  ;;  %v3851_v28 = vrot.slane %v3850_v46, 2 }
 0x6c6   :  { %v3852_v45 = vadd.f32 %v3851_v28, %v3850_v46 }
 0x6c7   :  { %3837 = vmatpush1.bf16.msra.mxu1 %v2533_v54  ;;  %v3857_v54 = vrot.slane %v3856_v20, 2 }
 0x6c8   :  { %v3853_v43 = vrot.slane %v3852_v45, 1 }
 0x6c9   :  { %v3858_v21 = vadd.f32 %v3857_v54, %v3856_v20 }
 0x6ca   :  { %3839 = vmatmul.mubr.bf16.vlgmr.msra.gmra.mrb[16].mxu1 %v7092_v37  ;;  %v5877_v37 = vld [vmem:[#allocation15 + $0x44] ss:$8 sps:$4 sm:$0xff]   ;;  %v3854_v1 = vadd.f32 %v3853_v43, %v3852_v45 }
 0x6cb   :  { %v7179_v6 = vpop.eup %6075  ;;  %5009 = vmatprep.subr.bf16.mxu0 %v5877_v37  ;;  %v3859_v11 = vrot.slane %v3858_v21, 1 }
 0x6cc   :  { %v7182_v38 = vpop.eup %6077  ;;  %5010 = vmatpush1.bf16.msra.mxu0 %v5875_v26  ;;  %v7190_v52 = vmul.f32 0.125, %v3854_v1 }
 0x6cd   :  { %v4003_v33 = vcombine.low %v7179_v6, %v7182_v38  ;;  %5011 = vmatprep.subr.bf16.mxu0 %v5880_v57  ;;  %v3860_v48 = vadd.f32 %v3859_v11, %v3858_v21 }
 0x6ce   :  { %v3905_v37 = vsub.f32 %v7111_v7, %v7190_v52 }
 0x6cf   :  { %v7192_v61 = vmul.f32 0.125, %v3860_v48 }
 0x6d0   :  { %5012 = vmatpush1.bf16.msra.mxu0 %v5878_v18  ;;  %v3913_v57 = vmul.f32 %v3905_v37, %v3905_v37 }
 0x6d1   :  { %5013 = vmatprep.subr.bf16.mxu0 %v5883_v22  ;;  %v3906_v26 = vsub.f32 %v7114_v41, %v7192_v61 }
 0x6d2   :  { %v3921_v22 = vrot.slane %v3913_v57, 4 }
 0x6d3   :  { %v3914_v18 = vmul.f32 %v3906_v26, %v3906_v26 }
 0x6d4   :  { %5014 = vmatpush1.bf16.msra.mxu0 %v5881_v62 }
 0x6d5   :  { %5015 = vmatprep.subr.bf16.mxu0 %v5886_v35  ;;  %v3927_v62 = vrot.slane %v3914_v18, 4 }
 0x6d8   :  { %5016 = vmatpush1.bf16.msra.mxu0 %v5884_v29  ;;  %v3922_v29 = vadd.f32 %v3921_v22, %v3913_v57 }
 0x6d9   :  { %5017 = vmatprep.subr.bf16.mxu0 %v5889_v10 }
 0x6dc   :  { %5018 = vmatpush1.bf16.msra.mxu0 %v5887_v47 }
 0x6dd   :  { %5019 = vmatprep.subr.bf16.mxu0 %v5892_v4  ;;  %v3928_v4 = vadd.f32 %v3927_v62, %v3914_v18 }
 0x6e0   :  { %5020 = vmatpush1.bf16.msra.mxu0 %v5890_v19 }
 0x6e1   :  { %5021 = vmatprep.subr.bf16.mxu0 %v5895_v58 }
 0x6e4   :  { %5022 = vmatpush1.bf16.msra.mxu0 %v5893_v12 }
 0x6e5   :  { %5023 = vmatprep.subr.bf16.mxu0 %v5898_v0 }
 0x6e8   :  { %5024 = vmatpush1.bf16.msra.mxu0 %v5896_v8 }
 0x6e9   :  { %5025 = vmatprep.subr.bf16.mxu0 %v5901_v56  ;;  %v3923_v56 = vrot.slane %v3922_v29, 2 }
 0x6ec   :  { %5026 = vmatpush1.bf16.msra.mxu0 %v5899_v2 }
 0x6ed   :  { %5027 = vmatprep.subr.bf16.mxu0 %v5904_v36 }
 0x6f0   :  { %5028 = vmatpush1.bf16.msra.mxu0 %v5902_v50  ;;  %v3929_v50 = vrot.slane %v3928_v4, 2 }
 0x6f1   :  { %5029 = vmatprep.subr.bf16.mxu0 %v5907_v63 }
 0x6f4   :  { %5030 = vmatpush1.bf16.msra.mxu0 %v5905_v30 }
 0x6f5   :  { %5031 = vmatprep.subr.bf16.mxu0 %v5910_v42  ;;  %v3924_v42 = vadd.f32 %v3923_v56, %v3922_v29 }
 0x6f7   :  { %v3925_v20 = vrot.slane %v3924_v42, 1 }
 0x6f8   :  { %5032 = vmatpush1.bf16.msra.mxu0 %v5908_v49 }
 0x6f9   :  { %5042 = vmatprep.subr.bf16.mxu0 %v5913_v5  ;;  %v3930_v5 = vadd.f32 %v3929_v50, %v3928_v4  ;;  %v3926_v11 = vadd.f32 %v3925_v20, %v3924_v42 }
 0x6fb   :  { %v3931_v54 = vrot.slane %v3930_v5, 1  ;;  %v3969_v18 = vmul.f32 0.125, %v3926_v11  ;;  %v4025_v11 = vrot.slane %v4003_v33, %v6755_v9 }
 0x6fd   :  { %v3932_v48 = vadd.f32 %v3931_v54, %v3930_v5 }
 0x6ff   :  { %v3970_v62 = vmul.f32 0.125, %v3932_v48 }
 0x79d   :  { %v7198_v35 = vpop.f32.mrb[16].mxu1 }
 0x79e   :  { %v3885_v10 = vrot.slane %v7198_v35, 4  ;;  %v7201_v47 = vpop.f32.mrb[17].mxu1 }
 0x79f   :  { %v3891_v19 = vrot.slane %v7201_v47, 4  ;;  %v3844_v58 = vpop.f32.mrb[18].mxu1 }
 0x7a0   :  { %v3886_v12 = vadd.f32 %v3885_v10, %v7198_v35  ;;  %v3845_v0 = vpop.f32.mrb[19].mxu1 }
 0x7a1   :  { %v3892_v8 = vadd.f32 %v3891_v19, %v7201_v47  ;;  %v3977_v19 = vadd.f32 1e-05, %v3969_v18 }
 0x7a2   :  { %v3887_v2 = vrot.slane %v3886_v12, 2 }
 0x7a3   :  { %v3893_v36 = vrot.slane %v3892_v8, 2  ;;  %6079 = vrsqrt.f32 %v3977_v19 }
 0x7a4   :  { %v3888_v63 = vadd.f32 %v3887_v2, %v3886_v12  ;;  %v3978_v12 = vadd.f32 1e-05, %v3970_v62 }
 0x7a5   :  { %v3894_v30 = vadd.f32 %v3893_v36, %v3892_v8 }
 0x7a6   :  { %v3889_v49 = vrot.slane %v3888_v63, 1  ;;  %6081 = vrsqrt.f32 %v3978_v12 }
 0x7a7   :  { %v3895_v39 = vrot.slane %v3894_v30, 1 }
 0x7a8   :  { %v3890_v55 = vadd.f32 %v3889_v49, %v3888_v63 }
 0x7a9   :  { %v3896_v46 = vadd.f32 %v3895_v39, %v3894_v30 }
 0x7aa   :  { %v3903_v28 = vmul.f32 0.125, %v3890_v55 }
 0x7ab   :  { %v3904_v45 = vmul.f32 0.125, %v3896_v46  ;;  %v4018_v46 = vrot.slane %v4002_v44, %v6755_v9 }
 0x7ac   :  { %v3911_v21 = vsub.f32 %v7198_v35, %v3903_v28 }
 0x7ad   :  { %v3912_v43 = vsub.f32 %v7201_v47, %v3904_v45  ;;  %v6080_v49 = vpop.eup %6079 }
 0x7ae   :  { %v3919_v1 = vmul.f32 %v3911_v21, %v3911_v21 }
 0x7af   :  { %v3920_v37 = vmul.f32 %v3912_v43, %v3912_v43 }
 0x7b0   :  { %v3957_v26 = vrot.slane %v3919_v1, 4  ;;  %v6082_v5 = vpop.eup %6081 }
 0x7b1   :  { %v3963_v57 = vrot.slane %v3920_v37, 4  ;;  %v4001_v39 = vcombine.low %v6080_v49, %v6082_v5  ;;  %v3848_v5 = vld [vmem:[#allocation13] sm:$0xff] }
 0x7b2   :  { %v3958_v22 = vadd.f32 %v3957_v26, %v3919_v1 }
 0x7b3   :  { %v3964_v29 = vadd.f32 %v3963_v57, %v3920_v37  ;;  %v4011_v54 = vrot.slane %v4001_v39, %v6755_v9  ;;  %v3847_v57 = vld [vmem:[#allocation12] sm:$0xff] }
 0x7b4   :  { %v3959_v10 = vrot.slane %v3958_v22, 2 }
 0x7b5   :  { %v3965_v4 = vrot.slane %v3964_v29, 2  ;;  %v4033_v43 = vcombine.low %v4011_v54, %v4018_v46 }
 0x7b6   :  { %v3960_v58 = vadd.f32 %v3959_v10, %v3958_v22 }
 0x7b7   :  { %v3966_v0 = vadd.f32 %v3965_v4, %v3964_v29  ;;  %v4041_v37 = vrot.slane %v4033_v43, %v6755_v9 }
 0x7b8   :  { %v3961_v8 = vrot.slane %v3960_v58, 1 }
 0x7b9   :  { %v3967_v56 = vrot.slane %v3966_v0, 1 }
 0x7ba   :  { %v3962_v2 = vadd.f32 %v3961_v8, %v3960_v58 }
 0x7bb   :  { %v3968_v50 = vadd.f32 %v3967_v56, %v3966_v0 }
 0x7bc   :  { %v3975_v36 = vmul.f32 0.125, %v3962_v2 }
 0x7bd   :  { %v3976_v63 = vmul.f32 0.125, %v3968_v50 }
 0x7be   :  { %v3983_v30 = vadd.f32 1e-05, %v3975_v36 }
 0x7bf   :  { %v3984_v42 = vadd.f32 1e-05, %v3976_v63 }
 0x7c0   :  { %6083 = vrsqrt.f32 %v3983_v30 }
 0x7c1   :  { %6085 = vrsqrt.f32 %v3984_v42 }
 0x7ca   :  { %v6084_v55 = vpop.eup %6083 }
 0x7cb   :  { %v6086_v20 = vpop.eup %6085 }
 0x7cc   :  { %v4004_v21 = vcombine.low %v6084_v55, %v6086_v20 }
 0x7ce   :  { %v4032_v1 = vrot.slane %v4004_v21, %v6755_v9 }
 0x7d0   :  { %v4034_v48 = vcombine.low %v4025_v11, %v4032_v1 }
 0x7d2   :  { %v4048_v26 = vrot.slane %v4034_v48, %v6755_v9 }
 0x7d4   :  { %v4049_v13 = vcombine.low %v4041_v37, %v4048_v26 }
 0x7d6   :  { %v4051_v32 = vmul.f32 %v4049_v13, %v3847_v57 }
 0x7d8   :  { %v4072_v44 = vrot.slane %v4051_v32, %v6841_v60  ;;  %v4076_v18 = vrot.slane %v4051_v32, %v6844_v15  ;;  %v4080_v22 = vrot.slane %v4051_v32, %v6847_v31  ;;  %v4084_v62 = vrot.slane %v4051_v32, %v6850_v23 }
 0x7d9   :  { %v4056_v6 = vrot.slane %v4051_v32, %v6829_v16  ;;  %v4060_v38 = vrot.slane %v4051_v32, %v6832_v59  ;;  %v4064_v33 = vrot.slane %v4051_v32, %v6835_v17  ;;  %v4068_v29 = vrot.slane %v4051_v32, %v6838_v24 }
 0x7da   :  { %v4097_v10 = vmul.f32 %v4072_v44, %v7171_v53  ;;  %v4098_v4 = vmul.f32 %v4076_v18, %v7173_v51  ;;  %v4099_v19 = vmul.f32 %v4080_v22, %v3903_v28  ;;  %v4100_v58 = vmul.f32 %v4084_v62, %v3904_v45 }
 0x7db   :  { %v4167_v12 = vmul.f32 %v4084_v62, %v7201_v47  ;;  %v4093_v0 = vmul.f32 %v4056_v6, %v7190_v52  ;;  %v4094_v8 = vmul.f32 %v4060_v38, %v7192_v61  ;;  %v4095_v56 = vmul.f32 %v4064_v33, %v7140_v40  ;;  %v5919_v62 = vld [vmem:[#allocation15 + $0x124] ss:$8 sps:$4 sm:$0xff]  }
 0x7dc   :  { %v4111_v2 = vcombine.low %v4097_v10, %v4098_v4  ;;  %v4112_v50 = vcombine.low %v4099_v19, %v4100_v58  ;;  %v4096_v36 = vmul.f32 %v4068_v29, %v7142_v27  ;;  %v4163_v30 = vmul.f32 %v4068_v29, %v7135_v25  ;;  %v5925_v29 = vld [vmem:[#allocation15 + $0x144] ss:$8 sps:$4 sm:$0xff]   ;;  %v5923_v10 = vld [vmem:[#allocation15 + $0x140] ss:$8 sps:$4 sm:$0xff]   ;;  %v5928_v4 = vld [vmem:[#allocation15 + $0x154] ss:$8 sps:$4 sm:$0xff]  }
 0x7dd   :  { %v4109_v63 = vcombine.low %v4093_v0, %v4094_v8  ;;  %v4162_v53 = vmul.f32 %v4064_v33, %v7132_v14  ;;  %v4165_v52 = vmul.f32 %v4076_v18, %v7166_v3  ;;  %v4164_v40 = vmul.f32 %v4072_v44, %v7163_v34  ;;  %v5920_v33 = vld [vmem:[#allocation15 + $0x130] ss:$8 sps:$4 sm:$0xff]   ;;  %v5931_v58 = vld [vmem:[#allocation15 + $0x164] ss:$8 sps:$4 sm:$0xff]   ;;  %v5934_v0 = vld [vmem:[#allocation15 + $0x174] ss:$8 sps:$4 sm:$0xff]  }
 0x7de   :  { %v4133_v51 = vrot.slane %v4111_v2, %v6755_v9  ;;  %v4140_v28 = vrot.slane %v4112_v50, %v6755_v9  ;;  %v4110_v47 = vcombine.low %v4095_v56, %v4096_v36  ;;  %v4166_v45 = vmul.f32 %v4080_v22, %v7198_v35  ;;  %v5914_v22 = vld [vmem:[#allocation15 + $0x110] ss:$8 sps:$4 sm:$0xff]   ;;  %v5937_v56 = vld [vmem:[#allocation15 + $0x184] ss:$8 sps:$4 sm:$0xff]   ;;  %v5935_v2 = vld [vmem:[#allocation15 + $0x180] ss:$8 sps:$4 sm:$0xff]  }
 0x7df   :  { %v4119_v61 = vrot.slane %v4109_v63, %v6755_v9  ;;  %v4161_v46 = vmul.f32 %v7114_v41, %v4060_v38  ;;  %v4160_v3 = vmul.f32 %v7111_v7, %v4056_v6  ;;  %v5917_v6 = vld [vmem:[#allocation15 + $0x120] ss:$8 sps:$4 sm:$0xff]   ;;  %v5922_v38 = vld [vmem:[#allocation15 + $0x134] ss:$8 sps:$4 sm:$0xff]   ;;  %v5926_v19 = vld [vmem:[#allocation15 + $0x150] ss:$8 sps:$4 sm:$0xff]  }
 0x7e0   :  { %v4142_v42 = vcombine.low %v4133_v51, %v4140_v28  ;;  %v4126_v27 = vrot.slane %v4110_v47, %v6755_v9  ;;  %v5932_v8 = vld [vmem:[#allocation15 + $0x170] ss:$8 sps:$4 sm:$0xff]   ;;  %v5940_v50 = vld [vmem:[#allocation15 + $0x194] ss:$8 sps:$4 sm:$0xff]   ;;  %v5943_v63 = vld [vmem:[#allocation15 + $0x1a4] ss:$8 sps:$4 sm:$0xff]  }
 0x7e1   :  { %v5938_v36 = vld [vmem:[#allocation15 + $0x190] ss:$8 sps:$4 sm:$0xff]   ;;  %v5949_v28 = vld [vmem:[#allocation15 + $0x1c4] ss:$8 sps:$4 sm:$0xff]   ;;  %v5947_v47 = vld [vmem:[#allocation15 + $0x1c0] ss:$8 sps:$4 sm:$0xff]  }
 0x7e2   :  { %v4156_v25 = vrot.slane %v4142_v42, %v6755_v9  ;;  %v4141_v49 = vcombine.low %v4119_v61, %v4126_v27  ;;  %v5944_v51 = vld [vmem:[#allocation15 + $0x1b0] ss:$8 sps:$4 sm:$0xff]   ;;  %v5958_v42 = vld [vmem:[#allocation15 + $0x1f4] ss:$8 sps:$4 sm:$0xff]  }
 0x7e3   :  { %v5950_v61 = vld [vmem:[#allocation15 + $0x1d0] ss:$8 sps:$4 sm:$0xff]  }
 0x7e4   :  { %v4149_v14 = vrot.slane %v4141_v49, %v6755_v9  ;;  %v5956_v27 = vld [vmem:[#allocation15 + $0x1f0] ss:$8 sps:$4 sm:$0xff]   ;;  %v5961_v49 = vld [vmem:[#allocation15 + $0x204] ss:$8 sps:$4 sm:$0xff]  }
 0x7e6   :  { %v4157_v39 = vcombine.low %v4149_v14, %v4156_v25 }
 0x7e8   :  { %v4159_v55 = vsub.f32 %v3848_v5, %v4157_v39  ;;  %v5959_v5 = vld [vmem:[#allocation15 + $0x200] ss:$8 sps:$4 sm:$0xff]  }
 0x7ea   :  { %v4176_v20 = vrot.slane %v4159_v55, %v6832_v59  ;;  %v4172_v34 = vrot.slane %v4159_v55, %v6829_v16  ;;  %v4184_v35 = vrot.slane %v4159_v55, %v6838_v24  ;;  %v4180_v54 = vrot.slane %v4159_v55, %v6835_v17 }
 0x7eb   :  { %v4192_v21 = vrot.slane %v4159_v55, %v6844_v15  ;;  %v4188_v43 = vrot.slane %v4159_v55, %v6841_v60  ;;  %v4200_v11 = vrot.slane %v4159_v55, %v6850_v23  ;;  %v4196_v1 = vrot.slane %v4159_v55, %v6847_v31  ;;  %v5911_v23 = vld [vmem:[#allocation15 + $0x100] ss:$8 sps:$4 sm:$0xff]   ;;  %v5916_v31 = vld [vmem:[#allocation15 + $0x114] ss:$8 sps:$4 sm:$0xff]  }
 0x7ec   :  { %v4210_v48 = vadd.f32 %v4176_v20, %v4161_v46  ;;  %v4209_v41 = vadd.f32 %v4172_v34, %v4160_v3  ;;  %v4212_v37 = vadd.f32 %v4184_v35, %v4163_v30  ;;  %v7256_v7 = vadd.f32 %v4180_v54, %v4162_v53  ;;  %v5941_v30 = vld [vmem:[#allocation15 + $0x1a0] ss:$8 sps:$4 sm:$0xff]   ;;  %v5946_v53 = vld [vmem:[#allocation15 + $0x1b4] ss:$8 sps:$4 sm:$0xff]   ;;  %v5962_v3 = vld [vmem:[#allocation15 + $0x210] ss:$8 sps:$4 sm:$0xff]  }
 0x7ed   :  { %v7258_v26 = vadd.f32 %v4192_v21, %v4165_v52  ;;  %v7260_v57 = vadd.f32 %v4188_v43, %v4164_v40  ;;  %v7262_v24 = vadd.f32 %v4200_v11, %v4167_v12  ;;  %v7264_v17 = vadd.f32 %v4196_v1, %v4166_v45  ;;  %v5929_v12 = vld [vmem:[#allocation15 + $0x160] ss:$8 sps:$4 sm:$0xff]   ;;  %v5952_v52 = vld [vmem:[#allocation15 + $0x1d4] ss:$8 sps:$4 sm:$0xff]   ;;  %v5955_v40 = vld [vmem:[#allocation15 + $0x1e4] ss:$8 sps:$4 sm:$0xff]  }
 0x7ee   :  { %v4218_v15 = vmax.f32 %v4210_v48, 0.0  ;;  %v4217_v13 = vmax.f32 %v4209_v41, 0.0  ;;  %v4220_v60 = vmax.f32 %v4212_v37, 0.0  ;;  %v5953_v45 = vld [vmem:[#allocation15 + $0x1e0] ss:$8 sps:$4 sm:$0xff]   ;;  %v4219_v25 = vmax.f32 %v7256_v7, 0.0 }
 0x7ef   :  { %v4222_v14 = vmax.f32 %v7258_v26, 0.0  ;;  %v5964_v55 = vld [vmem:[#allocation15 + $0x214] ss:$8 sps:$4 sm:$0xff]   ;;  %v5967_v20 = vld [vmem:[#allocation15 + $0x224] ss:$8 sps:$4 sm:$0xff]  }
 0x7f0   :  { %v4226_v32 = vpack.c.bf16 %v4218_v15, %v4218_v15  ;;  %v4225_v44 = vpack.c.bf16 %v4217_v13, %v4217_v13  ;;  %v4228_v18 = vpack.c.bf16 %v4220_v60, %v4220_v60  ;;  %v4227_v39 = vpack.c.bf16 %v4219_v25, %v4219_v25  ;;  %v5965_v34 = vld [vmem:[#allocation15 + $0x220] ss:$8 sps:$4 sm:$0xff]   ;;  %v5970_v35 = vld [vmem:[#allocation15 + $0x234] ss:$8 sps:$4 sm:$0xff]   ;;  %v5968_v54 = vld [vmem:[#allocation15 + $0x230] ss:$8 sps:$4 sm:$0xff]  }
 0x7f1   :  { %v4230_v46 = vpack.c.bf16 %v4222_v14, %v4222_v14  ;;  %v5973_v21 = vld [vmem:[#allocation15 + $0x244] ss:$8 sps:$4 sm:$0xff]   ;;  %v5971_v43 = vld [vmem:[#allocation15 + $0x240] ss:$8 sps:$4 sm:$0xff]   ;;  %v5976_v11 = vld [vmem:[#allocation15 + $0x254] ss:$8 sps:$4 sm:$0xff]  }
 0x7f2   :  { %5033 = vmatprep.mubr.bf16.mxu0 %v4226_v32  ;;  %v5974_v1 = vld [vmem:[#allocation15 + $0x250] ss:$8 sps:$4 sm:$0xff]   ;;  %v5979_v48 = vld [vmem:[#allocation15 + $0x264] ss:$8 sps:$4 sm:$0xff]   ;;  %v5977_v41 = vld [vmem:[#allocation15 + $0x260] ss:$8 sps:$4 sm:$0xff]  }
 0x7f3   :  { %5034 = vmatmul.mubr.bf16.vlgmr.msra.gmra.mrb[32].mxu0 %v4225_v44  ;;  %v5982_v37 = vld [vmem:[#allocation15 + $0x274] ss:$8 sps:$4 sm:$0xff]   ;;  %v5980_v7 = vld [vmem:[#allocation15 + $0x270] ss:$8 sps:$4 sm:$0xff]   ;;  %v5985_v26 = vld [vmem:[#allocation15 + $0x284] ss:$8 sps:$4 sm:$0xff]  }
 0x7f4   :  { %5043 = vmatpush1.bf16.msra.mxu0 %v5911_v23  ;;  %5074 = vmatprep.mubr.bf16.mxu0 %v4228_v18  ;;  %v5983_v15 = vld [vmem:[#allocation15 + $0x280] ss:$8 sps:$4 sm:$0xff]   ;;  %v5988_v13 = vld [vmem:[#allocation15 + $0x294] ss:$8 sps:$4 sm:$0xff]   ;;  %v5986_v60 = vld [vmem:[#allocation15 + $0x290] ss:$8 sps:$4 sm:$0xff]  }
 0x7f5   :  { %5044 = vmatprep.subr.bf16.mxu0 %v5916_v31  ;;  %v5991_v32 = vld [vmem:[#allocation15 + $0x2a4] ss:$8 sps:$4 sm:$0xff]   ;;  %v5989_v23 = vld [vmem:[#allocation15 + $0x2a0] ss:$8 sps:$4 sm:$0xff]   ;;  %v5994_v44 = vld [vmem:[#allocation15 + $0x2b4] ss:$8 sps:$4 sm:$0xff]  }
 0x7f6   :  { %v5992_v31 = vld [vmem:[#allocation15 + $0x2b0] ss:$8 sps:$4 sm:$0xff]   ;;  %v5997_v18 = vld [vmem:[#allocation15 + $0x2c4] ss:$8 sps:$4 sm:$0xff]   ;;  %v6042_v14 = vld [vmem:[#allocation15 + $0x3b4] ss:$8 sps:$4 sm:$0xff]  }
 0x7f7   :  { %v6039_v25 = vld [vmem:[#allocation15 + $0x3a4] ss:$8 sps:$4 sm:$0xff]  }
 0x7f8   :  { %5045 = vmatpush1.bf16.msra.mxu0 %v5914_v22  ;;  %v5995_v22 = vld [vmem:[#allocation15 + $0x2c0] ss:$8 sps:$4 sm:$0xff]  }
 0x7f9   :  { %5046 = vmatprep.subr.bf16.mxu0 %v5919_v62  ;;  %v6000_v62 = vld [vmem:[#allocation15 + $0x2d4] ss:$8 sps:$4 sm:$0xff]  }
 0x7fc   :  { %5047 = vmatpush1.bf16.msra.mxu0 %v5917_v6  ;;  %v5998_v6 = vld [vmem:[#allocation15 + $0x2d0] ss:$8 sps:$4 sm:$0xff]  }
 0x7fd   :  { %5048 = vmatprep.subr.bf16.mxu0 %v5922_v38  ;;  %v6003_v38 = vld [vmem:[#allocation15 + $0x2e4] ss:$8 sps:$4 sm:$0xff]  }
 0x800   :  { %5049 = vmatpush1.bf16.msra.mxu0 %v5920_v33  ;;  %v6001_v33 = vld [vmem:[#allocation15 + $0x2e0] ss:$8 sps:$4 sm:$0xff]  }
 0x801   :  { %5050 = vmatprep.subr.bf16.mxu0 %v5925_v29  ;;  %v6006_v29 = vld [vmem:[#allocation15 + $0x2f4] ss:$8 sps:$4 sm:$0xff]  }
 0x804   :  { %5051 = vmatpush1.bf16.msra.mxu0 %v5923_v10  ;;  %v6004_v10 = vld [vmem:[#allocation15 + $0x2f0] ss:$8 sps:$4 sm:$0xff]  }
 0x805   :  { %5052 = vmatprep.subr.bf16.mxu0 %v5928_v4  ;;  %v4221_v4 = vmax.f32 %v7260_v57, 0.0  ;;  %v6016_v57 = vld [vmem:[#allocation15 + $0x330] ss:$8 sps:$4 sm:$0xff]  }
 0x808   :  { %5053 = vmatpush1.bf16.msra.mxu0 %v5926_v19  ;;  %v6009_v19 = vld [vmem:[#allocation15 + $0x304] ss:$8 sps:$4 sm:$0xff]  }
 0x809   :  { %5054 = vmatprep.subr.bf16.mxu0 %v5931_v58  ;;  %v4224_v58 = vmax.f32 %v7262_v24, 0.0  ;;  %v6021_v24 = vld [vmem:[#allocation15 + $0x344] ss:$8 sps:$4 sm:$0xff]  }
 0x80c   :  { %5055 = vmatpush1.bf16.msra.mxu0 %v5929_v12  ;;  %v6007_v12 = vld [vmem:[#allocation15 + $0x300] ss:$8 sps:$4 sm:$0xff]  }
 0x80d   :  { %5056 = vmatprep.subr.bf16.mxu0 %v5934_v0  ;;  %v4229_v0 = vpack.c.bf16 %v4221_v4, %v4221_v4 }
 0x810   :  { %5057 = vmatpush1.bf16.msra.mxu0 %v5932_v8  ;;  %v6012_v8 = vld [vmem:[#allocation15 + $0x314] ss:$8 sps:$4 sm:$0xff]  }
 0x811   :  { %5058 = vmatprep.subr.bf16.mxu0 %v5937_v56  ;;  %v4232_v56 = vpack.c.bf16 %v4224_v58, %v4224_v58 }
 0x814   :  { %5059 = vmatpush1.bf16.msra.mxu0 %v5935_v2  ;;  %v6010_v2 = vld [vmem:[#allocation15 + $0x310] ss:$8 sps:$4 sm:$0xff]  }
 0x815   :  { %5060 = vmatprep.subr.bf16.mxu0 %v5940_v50  ;;  %v6015_v50 = vld [vmem:[#allocation15 + $0x324] ss:$8 sps:$4 sm:$0xff]  }
 0x818   :  { %5061 = vmatpush1.bf16.msra.mxu0 %v5938_v36  ;;  %v6013_v36 = vld [vmem:[#allocation15 + $0x320] ss:$8 sps:$4 sm:$0xff]  }
 0x819   :  { %5062 = vmatprep.subr.bf16.mxu0 %v5943_v63  ;;  %v6018_v63 = vld [vmem:[#allocation15 + $0x334] ss:$8 sps:$4 sm:$0xff]  }
 0x81c   :  { %5063 = vmatpush1.bf16.msra.mxu0 %v5941_v30  ;;  %v6019_v30 = vld [vmem:[#allocation15 + $0x340] ss:$8 sps:$4 sm:$0xff]  }
 0x81d   :  { %5064 = vmatprep.subr.bf16.mxu0 %v5946_v53  ;;  %v6024_v53 = vld [vmem:[#allocation15 + $0x354] ss:$8 sps:$4 sm:$0xff]  }
 0x820   :  { %5065 = vmatpush1.bf16.msra.mxu0 %v5944_v51  ;;  %v6022_v51 = vld [vmem:[#allocation15 + $0x350] ss:$8 sps:$4 sm:$0xff]  }
 0x821   :  { %5066 = vmatprep.subr.bf16.mxu0 %v5949_v28  ;;  %v6027_v28 = vld [vmem:[#allocation15 + $0x364] ss:$8 sps:$4 sm:$0xff]  }
 0x824   :  { %5067 = vmatpush1.bf16.msra.mxu0 %v5947_v47  ;;  %v6025_v47 = vld [vmem:[#allocation15 + $0x360] ss:$8 sps:$4 sm:$0xff]  }
 0x825   :  { %5068 = vmatprep.subr.bf16.mxu0 %v5952_v52  ;;  %v6030_v52 = vld [vmem:[#allocation15 + $0x374] ss:$8 sps:$4 sm:$0xff]  }
 0x828   :  { %5069 = vmatpush1.bf16.msra.mxu0 %v5950_v61  ;;  %v6028_v61 = vld [vmem:[#allocation15 + $0x370] ss:$8 sps:$4 sm:$0xff]  }
 0x829   :  { %5070 = vmatprep.subr.bf16.mxu0 %v5955_v40  ;;  %v6033_v40 = vld [vmem:[#allocation15 + $0x384] ss:$8 sps:$4 sm:$0xff]  }
 0x82c   :  { %5071 = vmatpush1.bf16.msra.mxu0 %v5953_v45  ;;  %v6031_v45 = vld [vmem:[#allocation15 + $0x380] ss:$8 sps:$4 sm:$0xff]  }
 0x82d   :  { %5072 = vmatprep.subr.bf16.mxu0 %v5958_v42  ;;  %v6036_v42 = vld [vmem:[#allocation15 + $0x394] ss:$8 sps:$4 sm:$0xff]  }
 0x830   :  { %5073 = vmatpush1.bf16.msra.mxu0 %v5956_v27  ;;  %v6034_v27 = vld [vmem:[#allocation15 + $0x390] ss:$8 sps:$4 sm:$0xff]  }
 0x831   :  { %5083 = vmatprep.subr.bf16.mxu0 %v5961_v49  ;;  %v6037_v49 = vld [vmem:[#allocation15 + $0x3a0] ss:$8 sps:$4 sm:$0xff]  }
 0x833   :  { %5075 = vmatmul.mubr.bf16.vlgmr.msra.gmra.mrb[32].mxu0 %v4227_v39  ;;  %v6045_v39 = vld [vmem:[#allocation15 + $0x3c4] ss:$8 sps:$4 sm:$0xff]  }
 0x834   :  { %5084 = vmatpush1.bf16.msra.mxu0 %v5959_v5  ;;  %5115 = vmatprep.mubr.bf16.mxu0 %v4230_v46  ;;  %v6040_v5 = vld [vmem:[#allocation15 + $0x3b0] ss:$8 sps:$4 sm:$0xff]   ;;  %v6048_v46 = vld [vmem:[#allocation15 + $0x3d4] ss:$8 sps:$4 sm:$0xff]  }
 0x835   :  { %5085 = vmatprep.subr.bf16.mxu0 %v5964_v55  ;;  %v6043_v55 = vld [vmem:[#allocation15 + $0x3c0] ss:$8 sps:$4 sm:$0xff]  }
 0x838   :  { %5086 = vmatpush1.bf16.msra.mxu0 %v5962_v3  ;;  %v6046_v3 = vld [vmem:[#allocation15 + $0x3d0] ss:$8 sps:$4 sm:$0xff]  }
 0x839   :  { %5087 = vmatprep.subr.bf16.mxu0 %v5967_v20  ;;  %v6051_v20 = vld [vmem:[#allocation15 + $0x3e4] ss:$8 sps:$4 sm:$0xff]  }
 0x83c   :  { %5088 = vmatpush1.bf16.msra.mxu0 %v5965_v34  ;;  %v6049_v34 = vld [vmem:[#allocation15 + $0x3e0] ss:$8 sps:$4 sm:$0xff]  }
 0x83d   :  { %5089 = vmatprep.subr.bf16.mxu0 %v5970_v35  ;;  %v6054_v35 = vld [vmem:[#allocation15 + $0x3f4] ss:$8 sps:$4 sm:$0xff]  }
 0x840   :  { %5090 = vmatpush1.bf16.msra.mxu0 %v5968_v54  ;;  %v6052_v54 = vld [vmem:[#allocation15 + $0x3f0] ss:$8 sps:$4 sm:$0xff]  }
 0x841   :  { %5091 = vmatprep.subr.bf16.mxu0 %v5973_v21  ;;  %v4223_v21 = vmax.f32 %v7264_v17, 0.0  ;;  %v6063_v17 = vld [vmem:[#allocation19 + $0x60] sm:$0xff]  }
 0x844   :  { %5092 = vmatpush1.bf16.msra.mxu0 %v5971_v43  ;;  %v4231_v43 = vpack.c.bf16 %v4223_v21, %v4223_v21 }
 0x845   :  { %5093 = vmatprep.subr.bf16.mxu0 %v5976_v11  ;;  %v6055_v11 = vld [vmem:[#allocation19 + $0x40] sm:$0xff]  }
 0x846   :  { %5663 = vmatprep.subr.bf16.mxu1 %v6055_v11 }
 0x848   :  { %5094 = vmatpush1.bf16.msra.mxu0 %v5974_v1  ;;  %v6056_v1 = vld [vmem:[#allocation19] sm:$0xff]  }
 0x849   :  { %5095 = vmatprep.subr.bf16.mxu0 %v5979_v48  ;;  %5664 = vmatpush3.bf16.msra.mxu1 %v6056_v1  ;;  %v6057_v48 = vld [vmem:[#allocation19 + $0x48] sm:$0xff]  }
 0x84a   :  { %5665 = vmatprep.subr.bf16.mxu1 %v6057_v48 }
 0x84c   :  { %5096 = vmatpush1.bf16.msra.mxu0 %v5977_v41  ;;  %v6058_v41 = vld [vmem:[#allocation19 + $0x8] sm:$0xff]  }
 0x84d   :  { %5097 = vmatprep.subr.bf16.mxu0 %v5982_v37  ;;  %5666 = vmatpush3.bf16.msra.mxu1 %v6058_v41  ;;  %v6059_v37 = vld [vmem:[#allocation19 + $0x50] sm:$0xff]  }
 0x84e   :  { %5667 = vmatprep.subr.bf16.mxu1 %v6059_v37 }
 0x850   :  { %5098 = vmatpush1.bf16.msra.mxu0 %v5980_v7  ;;  %v6060_v7 = vld [vmem:[#allocation19 + $0x10] sm:$0xff]  }
 0x851   :  { %5099 = vmatprep.subr.bf16.mxu0 %v5985_v26  ;;  %5668 = vmatpush3.bf16.msra.mxu1 %v6060_v7  ;;  %v6061_v26 = vld [vmem:[#allocation19 + $0x58] sm:$0xff]  }
 0x852   :  { %5669 = vmatprep.subr.bf16.mxu1 %v6061_v26 }
 0x854   :  { %5100 = vmatpush1.bf16.msra.mxu0 %v5983_v15  ;;  %v6062_v15 = vld [vmem:[#allocation19 + $0x18] sm:$0xff]  }
 0x855   :  { %5101 = vmatprep.subr.bf16.mxu0 %v5988_v13  ;;  %5670 = vmatpush3.bf16.msra.mxu1 %v6062_v15  ;;  %v6064_v13 = vld [vmem:[#allocation19 + $0x20] sm:$0xff]  }
 0x856   :  { %5671 = vmatprep.subr.bf16.mxu1 %v6063_v17  ;;  %v5166_v17 = vld [vmem:[#allocation18] sm:$0x3] }
 0x858   :  { %5102 = vmatpush1.bf16.msra.mxu0 %v5986_v60  ;;  %v6065_v60 = vld [vmem:[#allocation19 + $0x68] sm:$0xff]  }
 0x859   :  { %5103 = vmatprep.subr.bf16.mxu0 %v5991_v32  ;;  %5672 = vmatpush3.bf16.msra.mxu1 %v6064_v13  ;;  %v6066_v32 = vld [vmem:[#allocation19 + $0x28] sm:$0xff]  }
 0x85a   :  { %5673 = vmatprep.subr.bf16.mxu1 %v6065_v60 }
 0x85c   :  { %5104 = vmatpush1.bf16.msra.mxu0 %v5989_v23  ;;  %v6067_v23 = vld [vmem:[#allocation19 + $0x70] sm:$0xff]  }
 0x85d   :  { %5105 = vmatprep.subr.bf16.mxu0 %v5994_v44  ;;  %5674 = vmatpush3.bf16.msra.mxu1 %v6066_v32  ;;  %v6068_v44 = vld [vmem:[#allocation19 + $0x30] sm:$0xff]  }
 0x85e   :  { %5675 = vmatprep.subr.bf16.mxu1 %v6067_v23 }
 0x860   :  { %5106 = vmatpush1.bf16.msra.mxu0 %v5992_v31  ;;  %v6069_v31 = vld [vmem:[#allocation19 + $0x78] sm:$0xff]  }
 0x861   :  { %5107 = vmatprep.subr.bf16.mxu0 %v5997_v18  ;;  %5676 = vmatpush3.bf16.msra.mxu1 %v6068_v44  ;;  %v6070_v18 = vld [vmem:[#allocation19 + $0x38] sm:$0xff]  }
 0x862   :  { %5677 = vmatprep.subr.bf16.mxu1 %v6069_v31 }
 0x864   :  { %5108 = vmatpush1.bf16.msra.mxu0 %v5995_v22 }
 0x865   :  { %5109 = vmatprep.subr.bf16.mxu0 %v6000_v62  ;;  %5678 = vmatpush3.bf16.msra.mxu1 %v6070_v18 }
 0x868   :  { %5110 = vmatpush1.bf16.msra.mxu0 %v5998_v6 }
 0x869   :  { %5111 = vmatprep.subr.bf16.mxu0 %v6003_v38 }
 0x86c   :  { %5112 = vmatpush1.bf16.msra.mxu0 %v6001_v33 }
 0x86d   :  { %5113 = vmatprep.subr.bf16.mxu0 %v6006_v29 }
 0x870   :  { %5114 = vmatpush1.bf16.msra.mxu0 %v6004_v10 }
 0x871   :  { %5124 = vmatprep.subr.bf16.mxu0 %v6009_v19 }
 0x873   :  { %5116 = vmatmul.mubr.bf16.vlgmr.msra.gmra.mrb[32].mxu0 %v4229_v0 }
 0x874   :  { %5125 = vmatpush1.bf16.msra.mxu0 %v6007_v12  ;;  %5156 = vmatprep.mubr.bf16.mxu0 %v4232_v56 }
 0x875   :  { %5126 = vmatprep.subr.bf16.mxu0 %v6012_v8 }
 0x878   :  { %5127 = vmatpush1.bf16.msra.mxu0 %v6010_v2 }
 0x879   :  { %5128 = vmatprep.subr.bf16.mxu0 %v6015_v50 }
 0x87c   :  { %5129 = vmatpush1.bf16.msra.mxu0 %v6013_v36 }
 0x87d   :  { %5130 = vmatprep.subr.bf16.mxu0 %v6018_v63 }
 0x880   :  { %5131 = vmatpush1.bf16.msra.mxu0 %v6016_v57 }
 0x881   :  { %5132 = vmatprep.subr.bf16.mxu0 %v6021_v24 }
 0x884   :  { %5133 = vmatpush1.bf16.msra.mxu0 %v6019_v30 }
 0x885   :  { %5134 = vmatprep.subr.bf16.mxu0 %v6024_v53 }
 0x888   :  { %5135 = vmatpush1.bf16.msra.mxu0 %v6022_v51 }
 0x889   :  { %5136 = vmatprep.subr.bf16.mxu0 %v6027_v28 }
 0x88c   :  { %5137 = vmatpush1.bf16.msra.mxu0 %v6025_v47 }
 0x88d   :  { %5138 = vmatprep.subr.bf16.mxu0 %v6030_v52 }
 0x890   :  { %5139 = vmatpush1.bf16.msra.mxu0 %v6028_v61 }
 0x891   :  { %5140 = vmatprep.subr.bf16.mxu0 %v6033_v40 }
 0x894   :  { %5141 = vmatpush1.bf16.msra.mxu0 %v6031_v45 }
 0x895   :  { %5142 = vmatprep.subr.bf16.mxu0 %v6036_v42 }
 0x898   :  { %5143 = vmatpush1.bf16.msra.mxu0 %v6034_v27 }
 0x899   :  { %5144 = vmatprep.subr.bf16.mxu0 %v6039_v25 }
 0x89c   :  { %5145 = vmatpush1.bf16.msra.mxu0 %v6037_v49 }
 0x89d   :  { %5146 = vmatprep.subr.bf16.mxu0 %v6042_v14 }
 0x8a0   :  { %5147 = vmatpush1.bf16.msra.mxu0 %v6040_v5 }
 0x8a1   :  { %5148 = vmatprep.subr.bf16.mxu0 %v6045_v39 }
 0x8a4   :  { %5149 = vmatpush1.bf16.msra.mxu0 %v6043_v55 }
 0x8a5   :  { %5150 = vmatprep.subr.bf16.mxu0 %v6048_v46 }
 0x8a8   :  { %5151 = vmatpush1.bf16.msra.mxu0 %v6046_v3 }
 0x8a9   :  { %5152 = vmatprep.subr.bf16.mxu0 %v6051_v20 }
 0x8ac   :  { %5153 = vmatpush1.bf16.msra.mxu0 %v6049_v34 }
 0x8ad   :  { %5154 = vmatprep.subr.bf16.mxu0 %v6054_v35 }
 0x8b0   :  { %5155 = vmatpush1.bf16.msra.mxu0 %v6052_v54  ;;  %v5165_v54 = vld [vmem:[#allocation16] sm:$0x3] }
 0x8b3   :  { %5157 = vmatmul.mubr.bf16.vlgmr.msra.gmra.mrb[32].mxu0 %v4231_v43 }
 0x986   :  { %v5158_v22 = vpop.f32.mrb[32].mxu0 }
 0x987   :  { %v5167_v62 = vrot.slane %v5158_v22, 4  ;;  %v5160_v6 = vpop.f32.mrb[33].mxu0 }
 0x988   :  { %v5173_v38 = vrot.slane %v5160_v6, 4  ;;  %v5162_v33 = vpop.f32.mrb[34].mxu0 }
 0x989   :  { %v5168_v29 = vadd.f32 %v5167_v62, %v5158_v22  ;;  %v5163_v10 = vpop.f32.mrb[35].mxu0 }
 0x98a   :  { %v5174_v4 = vadd.f32 %v5173_v38, %v5160_v6 }
 0x98b   :  { %v5169_v19 = vrot.slane %v5168_v29, 2 }
 0x98c   :  { %v5175_v58 = vrot.slane %v5174_v4, 2 }
 0x98d   :  { %v5170_v12 = vadd.f32 %v5169_v19, %v5168_v29 }
 0x98e   :  { %v5176_v0 = vadd.f32 %v5175_v58, %v5174_v4 }
 0x98f   :  { %v5171_v8 = vrot.slane %v5170_v12, 1 }
 0x990   :  { %v5177_v56 = vrot.slane %v5176_v0, 1 }
 0x991   :  { %v5172_v2 = vadd.f32 %v5171_v8, %v5170_v12 }
 0x992   :  { %v5178_v50 = vadd.f32 %v5177_v56, %v5176_v0 }
 0x993   :  { %v5179_v36 = vmul.f32 0.125, %v5172_v2 }
 0x994   :  { %v5180_v63 = vmul.f32 0.125, %v5178_v50 }
 0x995   :  { %v5181_v57 = vsub.f32 %v5158_v22, %v5179_v36 }
 0x996   :  { %v5182_v24 = vsub.f32 %v5160_v6, %v5180_v63 }
 0x997   :  { %v5183_v30 = vmul.f32 %v5181_v57, %v5181_v57 }
 0x998   :  { %v5184_v53 = vmul.f32 %v5182_v24, %v5182_v24 }
 0x999   :  { %v5185_v51 = vrot.slane %v5183_v30, 4 }
 0x99a   :  { %v5191_v28 = vrot.slane %v5184_v53, 4 }
 0x99b   :  { %v5186_v47 = vadd.f32 %v5185_v51, %v5183_v30 }
 0x99c   :  { %v5192_v52 = vadd.f32 %v5191_v28, %v5184_v53 }
 0x99d   :  { %v5187_v61 = vrot.slane %v5186_v47, 2 }
 0x99e   :  { %v5193_v40 = vrot.slane %v5192_v52, 2 }
 0x99f   :  { %v5188_v45 = vadd.f32 %v5187_v61, %v5186_v47 }
 0x9a0   :  { %v5194_v42 = vadd.f32 %v5193_v40, %v5192_v52 }
 0x9a1   :  { %v5189_v27 = vrot.slane %v5188_v45, 1 }
 0x9a2   :  { %v5195_v25 = vrot.slane %v5194_v42, 1 }
 0x9a3   :  { %v5190_v49 = vadd.f32 %v5189_v27, %v5188_v45 }
 0x9a4   :  { %v5196_v14 = vadd.f32 %v5195_v25, %v5194_v42 }
 0x9a5   :  { %v5197_v5 = vmul.f32 0.125, %v5190_v49 }
 0x9a6   :  { %v5198_v39 = vmul.f32 0.125, %v5196_v14 }
 0x9a7   :  { %v5199_v55 = vadd.f32 1e-05, %v5197_v5 }
 0x9a8   :  { %v5200_v46 = vadd.f32 1e-05, %v5198_v39 }
 0x9a9   :  { %6087 = vrsqrt.f32 %v5199_v55 }
 0x9aa   :  { %6089 = vrsqrt.f32 %v5200_v46 }
 0x9b3   :  { %v6088_v3 = vpop.eup %6087 }
 0x9b4   :  { %v6090_v20 = vpop.eup %6089 }
 0x9b5   :  { %v5205_v34 = vcombine.low %v6088_v3, %v6090_v20 }
 0x9b7   :  { %v5212_v35 = vrot.slane %v5205_v34, %v6755_v9 }
 0x9b9   :  { %v5219_v21 = vrot.slane %v5212_v35, %v6755_v9 }
 0x9bb   :  { %v5221_v43 = vmul.f32 %v5219_v21, %v5165_v54 }
 0x9bd   :  { %v5226_v11 = vrot.slane %v5221_v43, %v6829_v16  ;;  %v5230_v1 = vrot.slane %v5221_v43, %v6832_v59 }
 0x9bf   :  { %v5233_v48 = vmul.f32 %v5226_v11, %v5179_v36  ;;  %v5234_v41 = vmul.f32 %v5230_v1, %v5180_v63  ;;  %v5255_v37 = vmul.f32 %v5230_v1, %v5160_v6  ;;  %v5254_v7 = vmul.f32 %v5226_v11, %v5158_v22  ;;  %v5645_v6 = vld [vmem:[#allocation21] ss:$0 sm:$0xff] }
 0x9c1   :  { %v5237_v26 = vcombine.low %v5233_v48, %v5234_v41 }
 0x9c3   :  { %v5244_v15 = vrot.slane %v5237_v26, %v6755_v9 }
 0x9c5   :  { %v5251_v13 = vrot.slane %v5244_v15, %v6755_v9 }
 0x9c7   :  { %v5253_v60 = vsub.f32 %v5166_v17, %v5251_v13 }
 0x9c9   :  { %v5264_v32 = vrot.slane %v5253_v60, %v6832_v59  ;;  %v5260_v23 = vrot.slane %v5253_v60, %v6829_v16 }
 0x9cb   :  { %v5268_v44 = vadd.f32 %v5264_v32, %v5255_v37  ;;  %v5267_v31 = vadd.f32 %v5260_v23, %v5254_v7 }
 0x9cd   :  { %v5270_v18 = vmax.f32 %v5268_v44, 0.0  ;;  %v5269_v62 = vmax.f32 %v5267_v31, 0.0 }
 0x9cf   :  { %v5272_v38 = vpack.c.bf16 %v5270_v18, %v5270_v18  ;;  %v5271_v33 = vpack.c.bf16 %v5269_v62, %v5269_v62 }
 0x9d1   :  { %5440 = vmatprep.mubr.bf16.mxu1 %v5272_v38 }
 0x9d2   :  { %5441 = vmatmul.mubr.bf16.vlgmr.msra.gmra.mrb[20].mxu1 %v5271_v33 }
 0xaa5   :  { %v5679_v22 = vpop.f32.mrb[20].mxu1 }
 0xaa6   :  { %v5680_v29 = vpop.f32.mrb[21].mxu1 }
 0xaa7   :  { %v5681_v10 = vadd.f32 %v5680_v29, %v5679_v22  ;;  %v5682_v9 = vpop.f32.mrb[22].mxu1 }
 0xaa8   :  { %v5683_v4 = vpop.f32.mrb[23].mxu1 }
 0xaa9   :  { %v5443_v19 = vadd.f32 %v5681_v10, %v5645_v6 }
 0xaab   :  { %5448 = vst [vmem:[#allocation22] sm:$0xff] %v5443_v19 }
 0xaac   :  { %6344 = shalt.err (!%p6341_p8)
}
 0xaad   :  { %s6345_s7 = scalar_lea.hbm %s7303_s12, 128 }
 0xaae   :  { %p6346_p9 = scmp.ne.s32.totalorder %s7303_s12, %s6345_s7  ;;  %p6349_p10 = scmp.lt.u32.totalorder %s6345_s7, %s7303_s12 }
 0xab0   :  { %p6351_p11 = pnand %p6349_p10, %p6346_p9 }
 0xab2   :  { %6354 = shalt.err (!%p6351_p11)
}
 0xab3   :  { %5458 = dma.vmem_to_hbm [thread:$0]  %s5456_s14, 128, %s7303_s12, [#allocation6]  }
 0xab4   :  { %6369 = dma.done.wait [#allocation6], 128  }
 0xab5   :  { %6370 = vsyncadd [#allocation6], 4294967168 }
 0xab6   :  { %5462 = vsyncpa [#allocation5], 1 }
 0xab7   :  { %5463 = vsyncpa [#allocation8], 1 }
 0xab8   :  { %5464 = vsyncpa [#allocation11], 1 }
 0xab9   :  { %5465 = vsyncpa [#allocation14], 1 }
 0xaba   :  { %5466 = vsyncpa [#allocation17], 1 }
 0xabb   :  { %5467 = vsyncpa [#allocation20], 1 }
 0xabc   :  { %5468 = vsyncpa [#allocation6], 1 }
 0xabd   :  { %5469 = vsyncmov [#allocation3] }
 0xac0   :  { %s5470_s0 = vpop.sfrf %5469 }
 0xac1   :  { %p5662_p12 = scmp.ne.s32.totalorder %s5470_s0, 0 }
 0xac3   :  { %5474 = shalt.err (%p5662_p12)  }

</bundles_post_ra>
